<compile_context>
chip_gen: v7x
topology: tpu7x:2x2x1
jax: 0.10.0
libtpu: 0.0.40
codegen_flags: <defaults>
</compile_context>

<pallas_src>
import jax
import jax.numpy as jnp
import numpy as np
from jax.experimental import pallas as pl
from jax.experimental.pallas import tpu as pltpu

L_IN = 100               # conv out: 100-8+1 = 93 -> maxpool(2) -> 46  (matches fc1: 32*46)
KSIZE = 8
C_OUT = 32
T_POOL = 46
FLAT = C_OUT * T_POOL    # 1472
HID = 10
K_PAD = 104              # 100 time samples + 1 bias(ones) row, padded to a multiple of 8
MAX_TILE_N = 512         # batch-tile cap (lane axis); ~12 MiB live VMEM/step -> fits every chip


def _round_up(a, m):
    return ((a + m - 1) // m) * m


def _cdiv(a, m):
    return (a + m - 1) // m


def fused_kernel(x_ref, we_ref, wo_ref, w1_ref, b1_ref, w2_ref, b2_ref, out_ref):
    """Whole forward pass for one batch tile; batch lives on the lane axis.

    x_ref  : (K_PAD, TN)  input, rows 0..99 = time samples, row 100 = 1.0 (bias), rest 0
    we_ref : (1472, K_PAD) conv weights for even output positions (bias folded), rows = c*46+s
    wo_ref : (1472, K_PAD) conv weights for odd  output positions (bias folded)
    w1_ref : (10, 1472)    fc1 weight (PyTorch layout; flatten order matches rows of we/wo)
    b1_ref : (10, 1)       fc1 bias
    w2_ref : (10, 1)       fc2 weight (as a column)
    b2_ref : (1, 1)        fc2 bias
    out_ref: (1, TN)       sigmoid output (lane-dense)
    """
    x = x_ref[...]                                                        # (K_PAD, TN)

    # Conv1d on the MXU: even / odd output positions as two 2-D matmuls (bias included
    # via the ones-row), so MaxPool1d(2) is a plain elementwise maximum.
    conv_e = jnp.dot(we_ref[...], x, preferred_element_type=jnp.float32)  # (1472, TN)
    conv_o = jnp.dot(wo_ref[...], x, preferred_element_type=jnp.float32)  # (1472, TN)

    # max-pool + ReLU (ReLU commutes with max); rows already in PyTorch flatten order c*46+s.
    pooled = jnp.maximum(jnp.maximum(conv_e, conv_o), 0.0)                # (1472, TN)

    # fc1 on the MXU, f32 accumulate, then ReLU.
    h = jnp.dot(w1_ref[...], pooled, preferred_element_type=jnp.float32) + b1_ref[...]
    h = jnp.maximum(h, 0.0)                                               # (10, TN)

    # TODO(synk): nn.Dropout(p=0.5) is identity in eval mode; training-mode RNG masking not implemented.

    # fc2 (10 -> 1) on the VPU: lane-wise multiply + sublane reduce (cheaper than a 1-col matmul).
    z = jnp.sum(h * w2_ref[...], axis=0, keepdims=True) + b2_ref[...]     # (1, TN)
    out_ref[...] = jax.nn.sigmoid(z)


def prepare_params(pt_params):
    """Fold conv+pool structure and bias into Toeplitz weights (done once, host-side)."""
    conv_w, conv_b, fc1_w, fc1_b, fc2_w, fc2_b = [np.asarray(p, np.float32) for p in pt_params]
    w = conv_w[:, 0, :]                                   # (32, 8)
    we = np.zeros((FLAT, K_PAD), np.float32)
    wo = np.zeros((FLAT, K_PAD), np.float32)
    for c in range(C_OUT):
        for s in range(T_POOL):
            r = c * T_POOL + s                            # == PyTorch flatten index
            we[r, 2 * s: 2 * s + KSIZE] = w[c]            # even output position t = 2s
            wo[r, 2 * s + 1: 2 * s + 1 + KSIZE] = w[c]    # odd  output position t = 2s+1
            we[r, L_IN] = conv_b[c]                       # bias via the ones-row
            wo[r, L_IN] = conv_b[c]
    return (jnp.asarray(we), jnp.asarray(wo),
            jnp.asarray(fc1_w), jnp.asarray(fc1_b.reshape(HID, 1)),
            jnp.asarray(fc2_w.T), jnp.asarray(fc2_b.reshape(1, 1)))


def net_forward(x, kparams):
    """x: (N, 1, 100) NCL float32 -> (N, 1) sigmoid outputs."""
    we, wo, w1, b1, w2, b2 = kparams
    n = x.shape[0]

    # Batch tiling (static): aim for >= 2 grid steps so v7x's two TensorCores both get work,
    # capped at MAX_TILE_N lanes per step.
    n128 = _round_up(n, 128)
    tile = min(MAX_TILE_N, _round_up(max(n128 // 2, 128), 128))
    ntiles = _cdiv(n128, tile)
    n_pad = ntiles * tile

    # Build (K_PAD, n_pad): time on sublanes, batch on lanes, ones-row for the conv bias.
    xs = x[:, 0, :].astype(jnp.float32)                                   # (N, 100)
    xa = jnp.concatenate(
        [xs, jnp.ones((n, 1), jnp.float32), jnp.zeros((n, K_PAD - L_IN - 1), jnp.float32)],
        axis=1)                                                           # (N, K_PAD)
    if n_pad != n:
        xa = jnp.pad(xa, ((0, n_pad - n), (0, 0)))                        # zero rows sliced off below
    xt = xa.T                                                             # (K_PAD, n_pad)

    flops = n_pad * (2 * 2 * FLAT * K_PAD + 2 * HID * FLAT + 4 * FLAT + 4 * HID)
    bytes_accessed = 4 * (K_PAD * n_pad + 2 * FLAT * K_PAD + HID * FLAT + 2 * HID + 1 + n_pad)

    out_t = pl.pallas_call(
        fused_kernel,
        out_shape=jax.ShapeDtypeStruct((1, n_pad), jnp.float32),
        grid=(ntiles,),
        in_specs=[
            pl.BlockSpec((K_PAD, tile), lambda i: (0, i)),        # input tile (batch on lanes)
            pl.BlockSpec((FLAT, K_PAD), lambda i: (0, 0)),        # conv-even Toeplitz weight (resident)
            pl.BlockSpec((FLAT, K_PAD), lambda i: (0, 0)),        # conv-odd  Toeplitz weight (resident)
            pl.BlockSpec((HID, FLAT), lambda i: (0, 0)),          # fc1 weight
            pl.BlockSpec((HID, 1), lambda i: (0, 0)),             # fc1 bias
            pl.BlockSpec((HID, 1), lambda i: (0, 0)),             # fc2 weight
            pl.BlockSpec((1, 1), lambda i: (0, 0)),               # fc2 bias
        ],
        out_specs=pl.BlockSpec((1, tile), lambda i: (0, i)),
        compiler_params=pltpu.CompilerParams(
            dimension_semantics=("parallel",),                    # shard batch tiles over TCs
            vmem_limit_bytes=32 * 1024 * 1024),
        cost_estimate=pl.CostEstimate(
            flops=int(flops), transcendentals=int(n_pad), bytes_accessed=int(bytes_accessed)),
    )(xt, we, wo, w1, b1, w2, b2)

    return out_t[0, :n, None]                                             # (N, 1)


def net_reference(x, pt_params):
    """Pure-JAX reference matching the PyTorch forward (eval mode), PyTorch layouts."""
    conv_w, conv_b, fc1_w, fc1_b, fc2_w, fc2_b = pt_params
    n = x.shape[0]
    xs = x[:, 0, :]
    l_conv = L_IN - KSIZE + 1                                                   # 93
    cols = jnp.stack([xs[:, k:k + l_conv] for k in range(KSIZE)], axis=-1)      # (N,93,8)
    conv = jnp.einsum('ntk,ck->nct', cols, conv_w[:, 0, :]) + conv_b[None, :, None]
    conv = jnp.maximum(conv, 0.0)                                               # (N,32,93)
    pooled = jnp.max(conv[:, :, :2 * T_POOL].reshape(n, C_OUT, T_POOL, 2), axis=-1)
    flat = pooled.reshape(n, FLAT)                                              # channel-major
    h = jnp.maximum(flat @ fc1_w.T + fc1_b[None, :], 0.0)
    z = h @ fc2_w.T + fc2_b[None, :]
    return jax.nn.sigmoid(z)


def init_params(key):
    """PyTorch-default-style uniform init, in PyTorch layouts."""
    ks = jax.random.split(key, 6)
    b_c = 1.0 / np.sqrt(1 * KSIZE)
    conv_w = jax.random.uniform(ks[0], (C_OUT, 1, KSIZE), jnp.float32, -b_c, b_c)
    conv_b = jax.random.uniform(ks[1], (C_OUT,), jnp.float32, -b_c, b_c)
    b_1 = 1.0 / np.sqrt(FLAT)
    fc1_w = jax.random.uniform(ks[2], (HID, FLAT), jnp.float32, -b_1, b_1)
    fc1_b = jax.random.uniform(ks[3], (HID,), jnp.float32, -b_1, b_1)
    b_2 = 1.0 / np.sqrt(HID)
    fc2_w = jax.random.uniform(ks[4], (1, HID), jnp.float32, -b_2, b_2)
    fc2_b = jax.random.uniform(ks[5], (1,), jnp.float32, -b_2, b_2)
    return conv_w, conv_b, fc1_w, fc1_b, fc2_w, fc2_b


if __name__ == "__main__":
    key = jax.random.PRNGKey(0)
    pkey, xkey = jax.random.split(key)
    pt_params = init_params(pkey)
    kparams = prepare_params(pt_params)

    x = jax.random.normal(xkey, (2, 1, L_IN), jnp.float32)   # PyTorch NCL input (N=2, C=1, L=100)

    fwd = jax.jit(net_forward)
    out = jax.block_until_ready(fwd(x, kparams))
    ref = jax.block_until_ready(net_reference(x, pt_params))

    assert out.shape == (2, 1), out.shape
    np.testing.assert_allclose(np.asarray(out), np.asarray(ref), rtol=1e-5, atol=1e-5)
    print("KERNEL_OK")
</pallas_src>

<mosaic_0001>
module attributes {stable_mosaic.version = 11 : i64} {
  func.func @fused_kernel(%arg0: i32, %arg1: memref<104x128xf32, #tpu.memory_space<vmem>>, %arg2: memref<1472x104xf32, #tpu.memory_space<vmem>>, %arg3: memref<1472x104xf32, #tpu.memory_space<vmem>>, %arg4: memref<10x1472xf32, #tpu.memory_space<vmem>>, %arg5: memref<10x1xf32, #tpu.memory_space<vmem>>, %arg6: memref<10x1xf32, #tpu.memory_space<vmem>>, %arg7: memref<1x1xf32, #tpu.memory_space<vmem>>, %arg8: memref<1x128xf32, #tpu.memory_space<vmem>>) attributes {dimension_semantics = [#tpu.dimension_semantics<parallel>], iteration_bounds = array<i64: 1>, scalar_prefetch = 0 : i64, scratch_operands = 0 : i64, tpu.core_type = #tpu.core_type<tc>, window_params = [{transform_indices = @transform_0, window_bounds = array<i64: 104, 128>}, {pipeline_mode = #tpu.pipeline_mode<synchronous>, transform_indices = @transform_1, window_bounds = array<i64: 1472, 104>}, {pipeline_mode = #tpu.pipeline_mode<synchronous>, transform_indices = @transform_2, window_bounds = array<i64: 1472, 104>}, {pipeline_mode = #tpu.pipeline_mode<synchronous>, transform_indices = @transform_3, window_bounds = array<i64: 10, 1472>}, {pipeline_mode = #tpu.pipeline_mode<synchronous>, transform_indices = @transform_4, window_bounds = array<i64: 10, 1>}, {pipeline_mode = #tpu.pipeline_mode<synchronous>, transform_indices = @transform_5, window_bounds = array<i64: 10, 1>}, {pipeline_mode = #tpu.pipeline_mode<synchronous>, transform_indices = @transform_6, window_bounds = array<i64: 1, 1>}, {transform_indices = @transform_7, window_bounds = array<i64: 1, 128>}]} {
    %c0 = arith.constant 0 : index
    %c0_0 = arith.constant 0 : index
    %0 = vector.load %arg1[%c0, %c0_0] : memref<104x128xf32, #tpu.memory_space<vmem>>, vector<104x128xf32>
    %c0_1 = arith.constant 0 : index
    %c0_2 = arith.constant 0 : index
    %1 = vector.load %arg2[%c0_1, %c0_2] : memref<1472x104xf32, #tpu.memory_space<vmem>>, vector<1472x104xf32>
    %cst = arith.constant dense<0.000000e+00> : vector<1472x128xf32>
    %2 = tpu.matmul %1, %0, %cst {dimension_numbers = #tpu.dot_dimension_numbers<[1], [0], [0], [1], [0, 0, 1, 1], [], []>} : vector<1472x104xf32>, vector<104x128xf32>, vector<1472x128xf32> -> vector<1472x128xf32>
    %c0_3 = arith.constant 0 : index
    %c0_4 = arith.constant 0 : index
    %3 = vector.load %arg3[%c0_3, %c0_4] : memref<1472x104xf32, #tpu.memory_space<vmem>>, vector<1472x104xf32>
    %cst_5 = arith.constant dense<0.000000e+00> : vector<1472x128xf32>
    %4 = tpu.matmul %3, %0, %cst_5 {dimension_numbers = #tpu.dot_dimension_numbers<[1], [0], [0], [1], [0, 0, 1, 1], [], []>} : vector<1472x104xf32>, vector<104x128xf32>, vector<1472x128xf32> -> vector<1472x128xf32>
    %5 = arith.maximumf %2, %4 : vector<1472x128xf32>
    %cst_6 = arith.constant 0.000000e+00 : f32
    %6 = vector.broadcast %cst_6 : f32 to vector<1472x128xf32>
    %7 = arith.maximumf %5, %6 : vector<1472x128xf32>
    %c0_7 = arith.constant 0 : index
    %c0_8 = arith.constant 0 : index
    %8 = vector.load %arg4[%c0_7, %c0_8] : memref<10x1472xf32, #tpu.memory_space<vmem>>, vector<10x1472xf32>
    %cst_9 = arith.constant dense<0.000000e+00> : vector<10x128xf32>
    %9 = tpu.matmul %8, %7, %cst_9 {dimension_numbers = #tpu.dot_dimension_numbers<[1], [0], [0], [1], [0, 0, 1, 1], [], []>} : vector<10x1472xf32>, vector<1472x128xf32>, vector<10x128xf32> -> vector<10x128xf32>
    %c0_10 = arith.constant 0 : index
    %c0_11 = arith.constant 0 : index
    %10 = vector.load %arg5[%c0_10, %c0_11] : memref<10x1xf32, #tpu.memory_space<vmem>>, vector<10x1xf32>
    %11 = vector.broadcast %10 : vector<10x1xf32> to vector<10x128xf32>
    %12 = arith.addf %9, %11 : vector<10x128xf32>
    %cst_12 = arith.constant 0.000000e+00 : f32
    %13 = vector.broadcast %cst_12 : f32 to vector<10x128xf32>
    %14 = arith.maximumf %12, %13 : vector<10x128xf32>
    %c0_13 = arith.constant 0 : index
    %c0_14 = arith.constant 0 : index
    %15 = vector.load %arg6[%c0_13, %c0_14] : memref<10x1xf32, #tpu.memory_space<vmem>>, vector<10x1xf32>
    %16 = vector.broadcast %15 : vector<10x1xf32> to vector<10x128xf32>
    %17 = arith.mulf %14, %16 : vector<10x128xf32>
    %cst_15 = arith.constant dense<0.000000e+00> : vector<128xf32>
    %18 = vector.multi_reduction <add>, %17, %cst_15 [0] : vector<10x128xf32> to vector<128xf32>
    %19 = vector.shape_cast %18 : vector<128xf32> to vector<1x128xf32>
    %c0_16 = arith.constant 0 : index
    %c0_17 = arith.constant 0 : index
    %20 = vector.load %arg7[%c0_16, %c0_17] : memref<1x1xf32, #tpu.memory_space<vmem>>, vector<1x1xf32>
    %21 = vector.broadcast %20 : vector<1x1xf32> to vector<1x128xf32>
    %22 = arith.addf %19, %21 : vector<1x128xf32>
    %23 = arith.negf %22 : vector<1x128xf32>
    %24 = math.exp %23 : vector<1x128xf32>
    %cst_18 = arith.constant 1.000000e+00 : f32
    %25 = vector.broadcast %cst_18 : f32 to vector<1x128xf32>
    %26 = arith.addf %25, %24 : vector<1x128xf32>
    %27 = arith.divf %25, %26 : vector<1x128xf32>
    %c0_19 = arith.constant 0 : index
    %c0_20 = arith.constant 0 : index
    %28 = vector.load %arg8[%c0_19, %c0_20] : memref<1x128xf32, #tpu.memory_space<vmem>>, vector<1x128xf32>
    tpu.vector_store %arg8[%c0_19, %c0_20], %27 {strides = array<i32>} : memref<1x128xf32, #tpu.memory_space<vmem>>, vector<1x128xf32>,
    return
  }
  func.func @transform_0(%arg0: i32) -> (i32, i32) {
    %c0_i32 = arith.constant 0 : i32
    %c0_i32_0 = arith.constant 0 : i32
    return %c0_i32, %arg0 : i32, i32
  }
  func.func @transform_1(%arg0: i32) -> (i32, i32) {
    %c0_i32 = arith.constant 0 : i32
    %c0_i32_0 = arith.constant 0 : i32
    %c0_i32_1 = arith.constant 0 : i32
    return %c0_i32, %c0_i32_0 : i32, i32
  }
  func.func @transform_2(%arg0: i32) -> (i32, i32) {
    %c0_i32 = arith.constant 0 : i32
    %c0_i32_0 = arith.constant 0 : i32
    %c0_i32_1 = arith.constant 0 : i32
    return %c0_i32, %c0_i32_0 : i32, i32
  }
  func.func @transform_3(%arg0: i32) -> (i32, i32) {
    %c0_i32 = arith.constant 0 : i32
    %c0_i32_0 = arith.constant 0 : i32
    %c0_i32_1 = arith.constant 0 : i32
    return %c0_i32, %c0_i32_0 : i32, i32
  }
  func.func @transform_4(%arg0: i32) -> (i32, i32) {
    %c0_i32 = arith.constant 0 : i32
    %c0_i32_0 = arith.constant 0 : i32
    %c0_i32_1 = arith.constant 0 : i32
    return %c0_i32, %c0_i32_0 : i32, i32
  }
  func.func @transform_5(%arg0: i32) -> (i32, i32) {
    %c0_i32 = arith.constant 0 : i32
    %c0_i32_0 = arith.constant 0 : i32
    %c0_i32_1 = arith.constant 0 : i32
    return %c0_i32, %c0_i32_0 : i32, i32
  }
  func.func @transform_6(%arg0: i32) -> (i32, i32) {
    %c0_i32 = arith.constant 0 : i32
    %c0_i32_0 = arith.constant 0 : i32
    %c0_i32_1 = arith.constant 0 : i32
    return %c0_i32, %c0_i32_0 : i32, i32
  }
  func.func @transform_7(%arg0: i32) -> (i32, i32) {
    %c0_i32 = arith.constant 0 : i32
    %c0_i32_0 = arith.constant 0 : i32
    return %c0_i32, %arg0 : i32, i32
  }
}

</mosaic_0001>

<bundles_post_ra>
// kernel: net_forward.1
= control target key start
LH: loop header
LB: loop body
LE: loop exit
PB: predicated region body
PF: predicated region fallthrough
CT: control target
= control target key end

     0   :  { %vm225_vm0 = vcmask 850944   ;;  %vm3888_vm1 = vcmask 523264   ;;  %vm4361_vm2 = vcmask 1041408   ;;  %s8220_s0 = inlined_call_operand.vmem [shape: f32[104,128], index: 0, kind: input, shape index: {}]   ;;  %s8221_s1 = inlined_call_operand.vmem [shape: f32[1472,104], index: 1, kind: input, shape index: {}]   ;;  %s8222_s2 = inlined_call_operand.vmem [shape: f32[1472,104], index: 2, kind: input, shape index: {}]   ;;  %s8223_s3 = inlined_call_operand.vmem [shape: f32[10,1472], index: 3, kind: input, shape index: {}]   ;;  %s8224_s4 = inlined_call_operand.vmem [shape: f32[10,1], index: 4, kind: input, shape index: {}]   ;;  %s8225_s5 = inlined_call_operand.vmem [shape: f32[10,1], index: 5, kind: input, shape index: {}]   ;;  %s8226_s6 = inlined_call_operand.<no memory space> [shape: f32[1,1], index: 6, kind: input, shape index: {}]   ;;  %s8227_s7 = inlined_call_operand.vmem [shape: f32[1,128], index: 7, kind: output, shape index: {}]  }
   0x1   :  { %v28_v0 = vld [vmem:[%s8220_s0] sm:$0xff]  ;;  %v29_v1 = vld [vmem:[%s8220_s0 + $0x8] sm:$0xff]  ;;  %v30_v2 = vld [vmem:[%s8220_s0 + $0x10] sm:$0xff] }
   0x2   :  { %v5951_v3 = vpack.c.bf16 %v29_v1, %v28_v0  ;;  %v31_v4 = vld [vmem:[%s8220_s0 + $0x18] sm:$0xff]  ;;  %v32_v6 = vld [vmem:[%s8220_s0 + $0x20] sm:$0xff]  ;;  %v33_v7 = vld [vmem:[%s8220_s0 + $0x28] sm:$0xff] }
   0x3   :  { %v5955_v5 = vpack.c.bf16 %v31_v4, %v30_v2  ;;  %v41_v8 = vld [vmem:[%s8221_s1] sm:$0xff]  ;;  %v5959_v10 = vpack.c.bf16 %v33_v7, %v32_v6  ;;  %v34_v11 = vld [vmem:[%s8220_s0 + $0x30] sm:$0xff]  ;;  %v35_v12 = vld [vmem:[%s8220_s0 + $0x38] sm:$0xff] }
   0x4   :  { %5952 = vmatprep.subr.bf16.mxu0 %v5951_v3  ;;  %5976 = vmatprep.subr.bf16.mxu1 %v5951_v3  ;;  %v1763_v9 = vld [vmem:[%s8222_s2] sm:$0xff]  ;;  %v5963_v13 = vpack.c.bf16 %v35_v12, %v34_v11  ;;  %v37_v15 = vld [vmem:[%s8220_s0 + $0x48] sm:$0xff]  ;;  %v38_v17 = vld [vmem:[%s8220_s0 + $0x50] sm:$0xff] }
   0x5   :  { %5954 = vmatpush3.bf16.msra.mxu0 %v5951_v3  ;;  %5978 = vmatpush3.bf16.msra.mxu1 %v5951_v3  ;;  %v36_v14 = vld [vmem:[%s8220_s0 + $0x40] sm:$0xff]  ;;  %v39_v18 = vld [vmem:[%s8220_s0 + $0x58] sm:$0xff]  ;;  %v42_v21 = vld [vmem:[%s8221_s1 + $0x8] sm:$0xff] }
   0x6   :  { %5956 = vmatprep.subr.bf16.mxu0 %v5955_v5  ;;  %5980 = vmatprep.subr.bf16.mxu1 %v5955_v5  ;;  %v5967_v16 = vpack.c.bf16 %v37_v15, %v36_v14  ;;  %v5971_v19 = vpack.c.bf16 %v39_v18, %v38_v17  ;;  %v40_v20 = vld [vmem:[%s8220_s0 + $0x60] sm:$0xff]  ;;  %v1764_v22 = vld [vmem:[%s8222_s2 + $0x8] sm:$0xff]  ;;  %v43_v23 = vld [vmem:[%s8221_s1 + $0x10] sm:$0xff] }
   0x7   :  { %5373 = vmatprep.mubr.msk.f32.mxu0 %vm225_vm0, %v41_v8  ;;  %5675 = vmatprep.mubr.msk.f32.mxu1 %vm225_vm0, %v1763_v9  ;;  %v1765_v24 = vld [vmem:[%s8222_s2 + $0x10] sm:$0xff]  ;;  %v44_v25 = vld [vmem:[%s8221_s1 + $0x18] sm:$0xff]  ;;  %v45_v27 = vld [vmem:[%s8221_s1 + $0x20] sm:$0xff] }
   0x8   :  { %v1766_v26 = vld [vmem:[%s8222_s2 + $0x18] sm:$0xff]  ;;  %v1767_v28 = vld [vmem:[%s8222_s2 + $0x20] sm:$0xff]  ;;  %v46_v29 = vld [vmem:[%s8221_s1 + $0x28] sm:$0xff] }
   0x9   :  { %5958 = vmatpush3.bf16.msra.mxu0 %v5955_v5  ;;  %5982 = vmatpush3.bf16.msra.mxu1 %v5955_v5  ;;  %v1768_v30 = vld [vmem:[%s8222_s2 + $0x28] sm:$0xff]  ;;  %v47_v31 = vld [vmem:[%s8221_s1 + $0x30] sm:$0xff]  ;;  %v48_v33 = vld [vmem:[%s8221_s1 + $0x38] sm:$0xff] }
   0xa   :  { %5960 = vmatprep.subr.bf16.mxu0 %v5959_v10  ;;  %5984 = vmatprep.subr.bf16.mxu1 %v5959_v10  ;;  %v1769_v32 = vld [vmem:[%s8222_s2 + $0x30] sm:$0xff]  ;;  %v1770_v34 = vld [vmem:[%s8222_s2 + $0x38] sm:$0xff]  ;;  %v49_v35 = vld [vmem:[%s8221_s1 + $0x40] sm:$0xff] }
   0xb   :  { %v1771_v36 = vld [vmem:[%s8222_s2 + $0x40] sm:$0xff]  ;;  %v50_v37 = vld [vmem:[%s8221_s1 + $0x48] sm:$0xff]  ;;  %v51_v39 = vld [vmem:[%s8221_s1 + $0x50] sm:$0xff] }
   0xc   :  { %v1772_v38 = vld [vmem:[%s8222_s2 + $0x48] sm:$0xff]  ;;  %v1773_v40 = vld [vmem:[%s8222_s2 + $0x50] sm:$0xff]  ;;  %v52_v41 = vld [vmem:[%s8221_s1 + $0x58] sm:$0xff] }
   0xd   :  { %5962 = vmatpush3.bf16.msra.mxu0 %v5959_v10  ;;  %5986 = vmatpush3.bf16.msra.mxu1 %v5959_v10  ;;  %v1774_v42 = vld [vmem:[%s8222_s2 + $0x58] sm:$0xff]  ;;  %v53_v43 = vld [vmem:[%s8221_s1 + $0x60] sm:$0xff]  ;;  %v54_v45 = vld [vmem:[%s8221_s1 + $0x68] sm:$0xff] }
   0xe   :  { %5964 = vmatprep.subr.bf16.mxu0 %v5963_v13  ;;  %5988 = vmatprep.subr.bf16.mxu1 %v5963_v13  ;;  %v1775_v44 = vld [vmem:[%s8222_s2 + $0x60] sm:$0xff]  ;;  %v1776_v46 = vld [vmem:[%s8222_s2 + $0x68] sm:$0xff]  ;;  %v55_v47 = vld [vmem:[%s8221_s1 + $0x70] sm:$0xff] }
   0xf   :  { %v1777_v48 = vld [vmem:[%s8222_s2 + $0x70] sm:$0xff]  ;;  %v56_v49 = vld [vmem:[%s8221_s1 + $0x78] sm:$0xff]  ;;  %v57_v51 = vld [vmem:[%s8221_s1 + $0x80] sm:$0xff] }
  0x10   :  { %v1778_v50 = vld [vmem:[%s8222_s2 + $0x78] sm:$0xff]  ;;  %v1779_v52 = vld [vmem:[%s8222_s2 + $0x80] sm:$0xff]  ;;  %v58_v53 = vld [vmem:[%s8221_s1 + $0x88] sm:$0xff] }
  0x11   :  { %5966 = vmatpush3.bf16.msra.mxu0 %v5963_v13  ;;  %5990 = vmatpush3.bf16.msra.mxu1 %v5963_v13  ;;  %v1780_v54 = vld [vmem:[%s8222_s2 + $0x88] sm:$0xff]  ;;  %v59_v55 = vld [vmem:[%s8221_s1 + $0x90] sm:$0xff]  ;;  %v60_v57 = vld [vmem:[%s8221_s1 + $0x98] sm:$0xff] }
  0x12   :  { %5968 = vmatprep.subr.bf16.mxu0 %v5967_v16  ;;  %5992 = vmatprep.subr.bf16.mxu1 %v5967_v16  ;;  %v1781_v56 = vld [vmem:[%s8222_s2 + $0x90] sm:$0xff]  ;;  %v1782_v58 = vld [vmem:[%s8222_s2 + $0x98] sm:$0xff]  ;;  %v61_v59 = vld [vmem:[%s8221_s1 + $0xa0] sm:$0xff] }
  0x13   :  { %v1783_v60 = vld [vmem:[%s8222_s2 + $0xa0] sm:$0xff]  ;;  %v62_v61 = vld [vmem:[%s8221_s1 + $0xa8] sm:$0xff]  ;;  %v63_v63 = vld [vmem:[%s8221_s1 + $0xb0] sm:$0xff] }
  0x14   :  { %v1784_v62 = vld [vmem:[%s8222_s2 + $0xa8] sm:$0xff]  ;;  %v1785_v0 = vld [vmem:[%s8222_s2 + $0xb0] sm:$0xff]  ;;  %v64_v1 = vld [vmem:[%s8221_s1 + $0xb8] sm:$0xff] }
  0x15   :  { %5970 = vmatpush3.bf16.msra.mxu0 %v5967_v16  ;;  %5994 = vmatpush3.bf16.msra.mxu1 %v5967_v16  ;;  %v1786_v2 = vld [vmem:[%s8222_s2 + $0xb8] sm:$0xff]  ;;  %v65_v3 = vld [vmem:[%s8221_s1 + $0xc0] sm:$0xff]  ;;  %v66_v5 = vld [vmem:[%s8221_s1 + $0xc8] sm:$0xff] }
  0x16   :  { %5972 = vmatprep.subr.bf16.mxu0 %v5971_v19  ;;  %5996 = vmatprep.subr.bf16.mxu1 %v5971_v19  ;;  %v1787_v4 = vld [vmem:[%s8222_s2 + $0xc0] sm:$0xff]  ;;  %v1788_v6 = vld [vmem:[%s8222_s2 + $0xc8] sm:$0xff]  ;;  %v67_v7 = vld [vmem:[%s8221_s1 + $0xd0] sm:$0xff] }
  0x17   :  { %v1789_v8 = vld [vmem:[%s8222_s2 + $0xd0] sm:$0xff]  ;;  %v68_v9 = vld [vmem:[%s8221_s1 + $0xd8] sm:$0xff]  ;;  %v69_v11 = vld [vmem:[%s8221_s1 + $0xe0] sm:$0xff] }
  0x18   :  { %v1790_v10 = vld [vmem:[%s8222_s2 + $0xd8] sm:$0xff]  ;;  %v1791_v12 = vld [vmem:[%s8222_s2 + $0xe0] sm:$0xff]  ;;  %v70_v13 = vld [vmem:[%s8221_s1 + $0xe8] sm:$0xff] }
  0x19   :  { %5974 = vmatpush3.bf16.msra.mxu0 %v5971_v19  ;;  %5998 = vmatpush3.bf16.msra.mxu1 %v5971_v19  ;;  %v1792_v14 = vld [vmem:[%s8222_s2 + $0xe8] sm:$0xff]  ;;  %v71_v15 = vld [vmem:[%s8221_s1 + $0xf0] sm:$0xff]  ;;  %v72_v17 = vld [vmem:[%s8221_s1 + $0xf8] sm:$0xff] }
  0x1a   :  { %5371 = vmatprep.subr.mxu0 %v40_v20  ;;  %5673 = vmatprep.subr.mxu1 %v40_v20  ;;  %v1793_v16 = vld [vmem:[%s8222_s2 + $0xf0] sm:$0xff]  ;;  %v1794_v18 = vld [vmem:[%s8222_s2 + $0xf8] sm:$0xff]  ;;  %v73_v19 = vld [vmem:[%s8221_s1 + $0x100] sm:$0xff] }
  0x1d   :  { %5372 = vmatpush3.msra.mxu0 %v40_v20  ;;  %5674 = vmatpush3.msra.mxu1 %v40_v20  ;;  %v1795_v20 = vld [vmem:[%s8222_s2 + $0x100] sm:$0xff] }
  0x1e   :  { %5374 = vmatmul.mubr.msk.f32.vlgmr.msra.gmra.mrb[0].mxu0 %vm225_vm0, %v42_v21  ;;  %5676 = vmatmul.mubr.msk.f32.vlgmr.msra.gmra.mrb[0].mxu1 %vm225_vm0, %v1764_v22  ;;  %v74_v21 = vld [vmem:[%s8221_s1 + $0x108] sm:$0xff] }
  0x1f   :  { %5376 = vmatprep.mubr.msk.f32.mxu0 %vm225_vm0, %v43_v23  ;;  %5678 = vmatprep.mubr.msk.f32.mxu1 %vm225_vm0, %v1765_v24  ;;  %v1796_v22 = vld [vmem:[%s8222_s2 + $0x108] sm:$0xff]  ;;  %v75_v23 = vld [vmem:[%s8221_s1 + $0x110] sm:$0xff] }
  0x20   :  { %v1797_v24 = vld [vmem:[%s8222_s2 + $0x110] sm:$0xff] }
  0x22   :  { %5377 = vmatmul.mubr.msk.f32.gmra.mrb[2].mxu0 %vm225_vm0, %v44_v25  ;;  %5679 = vmatmul.mubr.msk.f32.gmra.mrb[2].mxu1 %vm225_vm0, %v1766_v26  ;;  %v76_v25 = vld [vmem:[%s8221_s1 + $0x118] sm:$0xff] }
  0x23   :  { %5379 = vmatprep.mubr.msk.f32.mxu0 %vm225_vm0, %v45_v27  ;;  %5681 = vmatprep.mubr.msk.f32.mxu1 %vm225_vm0, %v1767_v28  ;;  %v1798_v26 = vld [vmem:[%s8222_s2 + $0x118] sm:$0xff]  ;;  %v77_v27 = vld [vmem:[%s8221_s1 + $0x120] sm:$0xff] }
  0x24   :  { %v1799_v28 = vld [vmem:[%s8222_s2 + $0x120] sm:$0xff] }
  0x26   :  { %5380 = vmatmul.mubr.msk.f32.gmra.mrb[4].mxu0 %vm225_vm0, %v46_v29  ;;  %5682 = vmatmul.mubr.msk.f32.gmra.mrb[4].mxu1 %vm225_vm0, %v1768_v30  ;;  %v78_v29 = vld [vmem:[%s8221_s1 + $0x128] sm:$0xff] }
  0x27   :  { %5382 = vmatprep.mubr.msk.f32.mxu0 %vm225_vm0, %v47_v31  ;;  %5684 = vmatprep.mubr.msk.f32.mxu1 %vm225_vm0, %v1769_v32  ;;  %v1800_v30 = vld [vmem:[%s8222_s2 + $0x128] sm:$0xff]  ;;  %v79_v31 = vld [vmem:[%s8221_s1 + $0x130] sm:$0xff] }
  0x28   :  { %v1801_v32 = vld [vmem:[%s8222_s2 + $0x130] sm:$0xff] }
  0x2a   :  { %5383 = vmatmul.mubr.msk.f32.gmra.mrb[6].mxu0 %vm225_vm0, %v48_v33  ;;  %5685 = vmatmul.mubr.msk.f32.gmra.mrb[6].mxu1 %vm225_vm0, %v1770_v34  ;;  %v80_v33 = vld [vmem:[%s8221_s1 + $0x138] sm:$0xff] }
  0x2b   :  { %5385 = vmatprep.mubr.msk.f32.mxu0 %vm225_vm0, %v49_v35  ;;  %5687 = vmatprep.mubr.msk.f32.mxu1 %vm225_vm0, %v1771_v36  ;;  %v1802_v34 = vld [vmem:[%s8222_s2 + $0x138] sm:$0xff]  ;;  %v81_v35 = vld [vmem:[%s8221_s1 + $0x140] sm:$0xff] }
  0x2c   :  { %v1803_v36 = vld [vmem:[%s8222_s2 + $0x140] sm:$0xff] }
  0x2e   :  { %5386 = vmatmul.mubr.msk.f32.gmra.mrb[8].mxu0 %vm225_vm0, %v50_v37  ;;  %5688 = vmatmul.mubr.msk.f32.gmra.mrb[8].mxu1 %vm225_vm0, %v1772_v38  ;;  %v82_v37 = vld [vmem:[%s8221_s1 + $0x148] sm:$0xff] }
  0x2f   :  { %5388 = vmatprep.mubr.msk.f32.mxu0 %vm225_vm0, %v51_v39  ;;  %5690 = vmatprep.mubr.msk.f32.mxu1 %vm225_vm0, %v1773_v40  ;;  %v1804_v38 = vld [vmem:[%s8222_s2 + $0x148] sm:$0xff]  ;;  %v83_v39 = vld [vmem:[%s8221_s1 + $0x150] sm:$0xff] }
  0x30   :  { %v1805_v40 = vld [vmem:[%s8222_s2 + $0x150] sm:$0xff] }
  0x32   :  { %5389 = vmatmul.mubr.msk.f32.gmra.mrb[10].mxu0 %vm225_vm0, %v52_v41  ;;  %5691 = vmatmul.mubr.msk.f32.gmra.mrb[10].mxu1 %vm225_vm0, %v1774_v42  ;;  %v84_v41 = vld [vmem:[%s8221_s1 + $0x158] sm:$0xff] }
  0x33   :  { %5391 = vmatprep.mubr.msk.f32.mxu0 %vm225_vm0, %v53_v43  ;;  %5693 = vmatprep.mubr.msk.f32.mxu1 %vm225_vm0, %v1775_v44  ;;  %v1806_v42 = vld [vmem:[%s8222_s2 + $0x158] sm:$0xff]  ;;  %v85_v43 = vld [vmem:[%s8221_s1 + $0x160] sm:$0xff] }
  0x34   :  { %v1807_v44 = vld [vmem:[%s8222_s2 + $0x160] sm:$0xff] }
  0x36   :  { %5392 = vmatmul.mubr.msk.f32.gmra.mrb[12].mxu0 %vm225_vm0, %v54_v45  ;;  %5694 = vmatmul.mubr.msk.f32.gmra.mrb[12].mxu1 %vm225_vm0, %v1776_v46  ;;  %v86_v45 = vld [vmem:[%s8221_s1 + $0x168] sm:$0xff] }
  0x37   :  { %5394 = vmatprep.mubr.msk.f32.mxu0 %vm225_vm0, %v55_v47  ;;  %5696 = vmatprep.mubr.msk.f32.mxu1 %vm225_vm0, %v1777_v48  ;;  %v1808_v46 = vld [vmem:[%s8222_s2 + $0x168] sm:$0xff]  ;;  %v87_v47 = vld [vmem:[%s8221_s1 + $0x170] sm:$0xff] }
  0x38   :  { %v1809_v48 = vld [vmem:[%s8222_s2 + $0x170] sm:$0xff] }
  0x3a   :  { %5395 = vmatmul.mubr.msk.f32.gmra.mrb[14].mxu0 %vm225_vm0, %v56_v49  ;;  %5697 = vmatmul.mubr.msk.f32.gmra.mrb[14].mxu1 %vm225_vm0, %v1778_v50  ;;  %v88_v49 = vld [vmem:[%s8221_s1 + $0x178] sm:$0xff] }
  0x3b   :  { %5397 = vmatprep.mubr.msk.f32.mxu0 %vm225_vm0, %v57_v51  ;;  %5699 = vmatprep.mubr.msk.f32.mxu1 %vm225_vm0, %v1779_v52  ;;  %v1810_v50 = vld [vmem:[%s8222_s2 + $0x178] sm:$0xff]  ;;  %v89_v51 = vld [vmem:[%s8221_s1 + $0x180] sm:$0xff] }
  0x3c   :  { %v1811_v52 = vld [vmem:[%s8222_s2 + $0x180] sm:$0xff] }
  0x3e   :  { %5398 = vmatmul.mubr.msk.f32.gmra.mrb[16].mxu0 %vm225_vm0, %v58_v53  ;;  %5700 = vmatmul.mubr.msk.f32.gmra.mrb[16].mxu1 %vm225_vm0, %v1780_v54  ;;  %v90_v53 = vld [vmem:[%s8221_s1 + $0x188] sm:$0xff] }
  0x3f   :  { %5400 = vmatprep.mubr.msk.f32.mxu0 %vm225_vm0, %v59_v55  ;;  %5702 = vmatprep.mubr.msk.f32.mxu1 %vm225_vm0, %v1781_v56  ;;  %v1812_v54 = vld [vmem:[%s8222_s2 + $0x188] sm:$0xff]  ;;  %v91_v55 = vld [vmem:[%s8221_s1 + $0x190] sm:$0xff] }
  0x40   :  { %v1813_v56 = vld [vmem:[%s8222_s2 + $0x190] sm:$0xff] }
  0x42   :  { %5401 = vmatmul.mubr.msk.f32.gmra.mrb[18].mxu0 %vm225_vm0, %v60_v57  ;;  %5703 = vmatmul.mubr.msk.f32.gmra.mrb[18].mxu1 %vm225_vm0, %v1782_v58  ;;  %v92_v57 = vld [vmem:[%s8221_s1 + $0x198] sm:$0xff] }
  0x43   :  { %5403 = vmatprep.mubr.msk.f32.mxu0 %vm225_vm0, %v61_v59  ;;  %5705 = vmatprep.mubr.msk.f32.mxu1 %vm225_vm0, %v1783_v60  ;;  %v1814_v58 = vld [vmem:[%s8222_s2 + $0x198] sm:$0xff]  ;;  %v93_v59 = vld [vmem:[%s8221_s1 + $0x1a0] sm:$0xff] }
  0x44   :  { %v1815_v60 = vld [vmem:[%s8222_s2 + $0x1a0] sm:$0xff] }
  0x46   :  { %5404 = vmatmul.mubr.msk.f32.gmra.mrb[20].mxu0 %vm225_vm0, %v62_v61  ;;  %5706 = vmatmul.mubr.msk.f32.gmra.mrb[20].mxu1 %vm225_vm0, %v1784_v62  ;;  %v94_v61 = vld [vmem:[%s8221_s1 + $0x1a8] sm:$0xff] }
  0x47   :  { %5406 = vmatprep.mubr.msk.f32.mxu0 %vm225_vm0, %v63_v63  ;;  %5708 = vmatprep.mubr.msk.f32.mxu1 %vm225_vm0, %v1785_v0  ;;  %v1816_v62 = vld [vmem:[%s8222_s2 + $0x1a8] sm:$0xff]  ;;  %v95_v63 = vld [vmem:[%s8221_s1 + $0x1b0] sm:$0xff] }
  0x48   :  { %v1817_v0 = vld [vmem:[%s8222_s2 + $0x1b0] sm:$0xff] }
  0x4a   :  { %5407 = vmatmul.mubr.msk.f32.gmra.mrb[22].mxu0 %vm225_vm0, %v64_v1  ;;  %5709 = vmatmul.mubr.msk.f32.gmra.mrb[22].mxu1 %vm225_vm0, %v1786_v2  ;;  %v96_v1 = vld [vmem:[%s8221_s1 + $0x1b8] sm:$0xff] }
  0x4b   :  { %5409 = vmatprep.mubr.msk.f32.mxu0 %vm225_vm0, %v65_v3  ;;  %5711 = vmatprep.mubr.msk.f32.mxu1 %vm225_vm0, %v1787_v4  ;;  %v1818_v2 = vld [vmem:[%s8222_s2 + $0x1b8] sm:$0xff]  ;;  %v97_v3 = vld [vmem:[%s8221_s1 + $0x1c0] sm:$0xff] }
  0x4c   :  { %v1819_v4 = vld [vmem:[%s8222_s2 + $0x1c0] sm:$0xff] }
  0x4e   :  { %5410 = vmatmul.mubr.msk.f32.gmra.mrb[24].mxu0 %vm225_vm0, %v66_v5  ;;  %5712 = vmatmul.mubr.msk.f32.gmra.mrb[24].mxu1 %vm225_vm0, %v1788_v6  ;;  %v98_v5 = vld [vmem:[%s8221_s1 + $0x1c8] sm:$0xff] }
  0x4f   :  { %5412 = vmatprep.mubr.msk.f32.mxu0 %vm225_vm0, %v67_v7  ;;  %5714 = vmatprep.mubr.msk.f32.mxu1 %vm225_vm0, %v1789_v8  ;;  %v1820_v6 = vld [vmem:[%s8222_s2 + $0x1c8] sm:$0xff]  ;;  %v99_v7 = vld [vmem:[%s8221_s1 + $0x1d0] sm:$0xff] }
  0x50   :  { %v1821_v8 = vld [vmem:[%s8222_s2 + $0x1d0] sm:$0xff] }
  0x52   :  { %5413 = vmatmul.mubr.msk.f32.gmra.mrb[26].mxu0 %vm225_vm0, %v68_v9  ;;  %5715 = vmatmul.mubr.msk.f32.gmra.mrb[26].mxu1 %vm225_vm0, %v1790_v10  ;;  %v100_v9 = vld [vmem:[%s8221_s1 + $0x1d8] sm:$0xff] }
  0x53   :  { %5415 = vmatprep.mubr.msk.f32.mxu0 %vm225_vm0, %v69_v11  ;;  %5717 = vmatprep.mubr.msk.f32.mxu1 %vm225_vm0, %v1791_v12  ;;  %v1822_v10 = vld [vmem:[%s8222_s2 + $0x1d8] sm:$0xff]  ;;  %v101_v11 = vld [vmem:[%s8221_s1 + $0x1e0] sm:$0xff] }
  0x54   :  { %v1823_v12 = vld [vmem:[%s8222_s2 + $0x1e0] sm:$0xff] }
  0x56   :  { %5416 = vmatmul.mubr.msk.f32.gmra.mrb[28].mxu0 %vm225_vm0, %v70_v13  ;;  %5718 = vmatmul.mubr.msk.f32.gmra.mrb[28].mxu1 %vm225_vm0, %v1792_v14  ;;  %v102_v13 = vld [vmem:[%s8221_s1 + $0x1e8] sm:$0xff] }
  0x57   :  { %5418 = vmatprep.mubr.msk.f32.mxu0 %vm225_vm0, %v71_v15  ;;  %5720 = vmatprep.mubr.msk.f32.mxu1 %vm225_vm0, %v1793_v16  ;;  %v1824_v14 = vld [vmem:[%s8222_s2 + $0x1e8] sm:$0xff]  ;;  %v103_v15 = vld [vmem:[%s8221_s1 + $0x1f0] sm:$0xff] }
  0x58   :  { %v1825_v16 = vld [vmem:[%s8222_s2 + $0x1f0] sm:$0xff] }
  0x5a   :  { %5419 = vmatmul.mubr.msk.f32.gmra.mrb[30].mxu0 %vm225_vm0, %v72_v17  ;;  %5721 = vmatmul.mubr.msk.f32.gmra.mrb[30].mxu1 %vm225_vm0, %v1794_v18  ;;  %v104_v17 = vld [vmem:[%s8221_s1 + $0x1f8] sm:$0xff] }
  0x5b   :  { %5421 = vmatprep.mubr.msk.f32.mxu0 %vm225_vm0, %v73_v19  ;;  %5723 = vmatprep.mubr.msk.f32.mxu1 %vm225_vm0, %v1795_v20  ;;  %v1826_v18 = vld [vmem:[%s8222_s2 + $0x1f8] sm:$0xff]  ;;  %v105_v19 = vld [vmem:[%s8221_s1 + $0x200] sm:$0xff] }
  0x5c   :  { %v1827_v20 = vld [vmem:[%s8222_s2 + $0x200] sm:$0xff] }
  0x5e   :  { %5422 = vmatmul.mubr.msk.f32.gmra.mrb[32].mxu0 %vm225_vm0, %v74_v21  ;;  %5724 = vmatmul.mubr.msk.f32.gmra.mrb[32].mxu1 %vm225_vm0, %v1796_v22  ;;  %v106_v21 = vld [vmem:[%s8221_s1 + $0x208] sm:$0xff] }
  0x5f   :  { %5424 = vmatprep.mubr.msk.f32.mxu0 %vm225_vm0, %v75_v23  ;;  %5726 = vmatprep.mubr.msk.f32.mxu1 %vm225_vm0, %v1797_v24  ;;  %v1828_v22 = vld [vmem:[%s8222_s2 + $0x208] sm:$0xff]  ;;  %v107_v23 = vld [vmem:[%s8221_s1 + $0x210] sm:$0xff] }
  0x60   :  { %v1829_v24 = vld [vmem:[%s8222_s2 + $0x210] sm:$0xff] }
  0x62   :  { %5425 = vmatmul.mubr.msk.f32.gmra.mrb[34].mxu0 %vm225_vm0, %v76_v25  ;;  %5727 = vmatmul.mubr.msk.f32.gmra.mrb[34].mxu1 %vm225_vm0, %v1798_v26  ;;  %v108_v25 = vld [vmem:[%s8221_s1 + $0x218] sm:$0xff] }
  0x63   :  { %5427 = vmatprep.mubr.msk.f32.mxu0 %vm225_vm0, %v77_v27  ;;  %5729 = vmatprep.mubr.msk.f32.mxu1 %vm225_vm0, %v1799_v28  ;;  %v1830_v26 = vld [vmem:[%s8222_s2 + $0x218] sm:$0xff]  ;;  %v109_v27 = vld [vmem:[%s8221_s1 + $0x220] sm:$0xff] }
  0x64   :  { %v1831_v28 = vld [vmem:[%s8222_s2 + $0x220] sm:$0xff] }
  0x66   :  { %5428 = vmatmul.mubr.msk.f32.gmra.mrb[36].mxu0 %vm225_vm0, %v78_v29  ;;  %5730 = vmatmul.mubr.msk.f32.gmra.mrb[36].mxu1 %vm225_vm0, %v1800_v30  ;;  %v110_v29 = vld [vmem:[%s8221_s1 + $0x228] sm:$0xff] }
  0x67   :  { %5430 = vmatprep.mubr.msk.f32.mxu0 %vm225_vm0, %v79_v31  ;;  %5732 = vmatprep.mubr.msk.f32.mxu1 %vm225_vm0, %v1801_v32  ;;  %v1832_v30 = vld [vmem:[%s8222_s2 + $0x228] sm:$0xff]  ;;  %v111_v31 = vld [vmem:[%s8221_s1 + $0x230] sm:$0xff] }
  0x68   :  { %v1833_v32 = vld [vmem:[%s8222_s2 + $0x230] sm:$0xff] }
  0x6a   :  { %5431 = vmatmul.mubr.msk.f32.gmra.mrb[38].mxu0 %vm225_vm0, %v80_v33  ;;  %5733 = vmatmul.mubr.msk.f32.gmra.mrb[38].mxu1 %vm225_vm0, %v1802_v34  ;;  %v112_v33 = vld [vmem:[%s8221_s1 + $0x238] sm:$0xff] }
  0x6b   :  { %5433 = vmatprep.mubr.msk.f32.mxu0 %vm225_vm0, %v81_v35  ;;  %5735 = vmatprep.mubr.msk.f32.mxu1 %vm225_vm0, %v1803_v36  ;;  %v1834_v34 = vld [vmem:[%s8222_s2 + $0x238] sm:$0xff]  ;;  %v113_v35 = vld [vmem:[%s8221_s1 + $0x240] sm:$0xff] }
  0x6c   :  { %v1835_v36 = vld [vmem:[%s8222_s2 + $0x240] sm:$0xff] }
  0x6e   :  { %5434 = vmatmul.mubr.msk.f32.gmra.mrb[40].mxu0 %vm225_vm0, %v82_v37  ;;  %5736 = vmatmul.mubr.msk.f32.gmra.mrb[40].mxu1 %vm225_vm0, %v1804_v38  ;;  %v114_v37 = vld [vmem:[%s8221_s1 + $0x248] sm:$0xff] }
  0x6f   :  { %5436 = vmatprep.mubr.msk.f32.mxu0 %vm225_vm0, %v83_v39  ;;  %5738 = vmatprep.mubr.msk.f32.mxu1 %vm225_vm0, %v1805_v40  ;;  %v1836_v38 = vld [vmem:[%s8222_s2 + $0x248] sm:$0xff]  ;;  %v115_v39 = vld [vmem:[%s8221_s1 + $0x250] sm:$0xff] }
  0x70   :  { %v1837_v40 = vld [vmem:[%s8222_s2 + $0x250] sm:$0xff] }
  0x72   :  { %5437 = vmatmul.mubr.msk.f32.gmra.mrb[42].mxu0 %vm225_vm0, %v84_v41  ;;  %5739 = vmatmul.mubr.msk.f32.gmra.mrb[42].mxu1 %vm225_vm0, %v1806_v42  ;;  %v116_v41 = vld [vmem:[%s8221_s1 + $0x258] sm:$0xff] }
  0x73   :  { %5439 = vmatprep.mubr.msk.f32.mxu0 %vm225_vm0, %v85_v43  ;;  %5741 = vmatprep.mubr.msk.f32.mxu1 %vm225_vm0, %v1807_v44  ;;  %v1838_v42 = vld [vmem:[%s8222_s2 + $0x258] sm:$0xff]  ;;  %v117_v43 = vld [vmem:[%s8221_s1 + $0x260] sm:$0xff] }
  0x74   :  { %v1839_v44 = vld [vmem:[%s8222_s2 + $0x260] sm:$0xff] }
  0x76   :  { %5440 = vmatmul.mubr.msk.f32.gmra.mrb[44].mxu0 %vm225_vm0, %v86_v45  ;;  %5742 = vmatmul.mubr.msk.f32.gmra.mrb[44].mxu1 %vm225_vm0, %v1808_v46  ;;  %v118_v45 = vld [vmem:[%s8221_s1 + $0x268] sm:$0xff] }
  0x77   :  { %5442 = vmatprep.mubr.msk.f32.mxu0 %vm225_vm0, %v87_v47  ;;  %5744 = vmatprep.mubr.msk.f32.mxu1 %vm225_vm0, %v1809_v48  ;;  %v1840_v46 = vld [vmem:[%s8222_s2 + $0x268] sm:$0xff]  ;;  %v119_v47 = vld [vmem:[%s8221_s1 + $0x270] sm:$0xff] }
  0x78   :  { %v1841_v48 = vld [vmem:[%s8222_s2 + $0x270] sm:$0xff] }
  0x7a   :  { %5443 = vmatmul.mubr.msk.f32.gmra.mrb[46].mxu0 %vm225_vm0, %v88_v49  ;;  %5745 = vmatmul.mubr.msk.f32.gmra.mrb[46].mxu1 %vm225_vm0, %v1810_v50  ;;  %v120_v49 = vld [vmem:[%s8221_s1 + $0x278] sm:$0xff] }
  0x7b   :  { %5445 = vmatprep.mubr.msk.f32.mxu0 %vm225_vm0, %v89_v51  ;;  %5747 = vmatprep.mubr.msk.f32.mxu1 %vm225_vm0, %v1811_v52  ;;  %v1842_v50 = vld [vmem:[%s8222_s2 + $0x278] sm:$0xff]  ;;  %v121_v51 = vld [vmem:[%s8221_s1 + $0x280] sm:$0xff] }
  0x7c   :  { %v1843_v52 = vld [vmem:[%s8222_s2 + $0x280] sm:$0xff] }
  0x7e   :  { %5446 = vmatmul.mubr.msk.f32.gmra.mrb[48].mxu0 %vm225_vm0, %v90_v53  ;;  %5748 = vmatmul.mubr.msk.f32.gmra.mrb[48].mxu1 %vm225_vm0, %v1812_v54  ;;  %v122_v53 = vld [vmem:[%s8221_s1 + $0x288] sm:$0xff] }
  0x7f   :  { %5448 = vmatprep.mubr.msk.f32.mxu0 %vm225_vm0, %v91_v55  ;;  %5750 = vmatprep.mubr.msk.f32.mxu1 %vm225_vm0, %v1813_v56  ;;  %v1844_v54 = vld [vmem:[%s8222_s2 + $0x288] sm:$0xff]  ;;  %v123_v55 = vld [vmem:[%s8221_s1 + $0x290] sm:$0xff] }
  0x80   :  { %v1845_v56 = vld [vmem:[%s8222_s2 + $0x290] sm:$0xff] }
  0x82   :  { %5449 = vmatmul.mubr.msk.f32.gmra.mrb[50].mxu0 %vm225_vm0, %v92_v57  ;;  %5751 = vmatmul.mubr.msk.f32.gmra.mrb[50].mxu1 %vm225_vm0, %v1814_v58  ;;  %v124_v57 = vld [vmem:[%s8221_s1 + $0x298] sm:$0xff] }
  0x83   :  { %5451 = vmatprep.mubr.msk.f32.mxu0 %vm225_vm0, %v93_v59  ;;  %5753 = vmatprep.mubr.msk.f32.mxu1 %vm225_vm0, %v1815_v60  ;;  %v1846_v58 = vld [vmem:[%s8222_s2 + $0x298] sm:$0xff]  ;;  %v125_v59 = vld [vmem:[%s8221_s1 + $0x2a0] sm:$0xff] }
  0x84   :  { %v1847_v60 = vld [vmem:[%s8222_s2 + $0x2a0] sm:$0xff] }
  0x86   :  { %5452 = vmatmul.mubr.msk.f32.gmra.mrb[52].mxu0 %vm225_vm0, %v94_v61  ;;  %5754 = vmatmul.mubr.msk.f32.gmra.mrb[52].mxu1 %vm225_vm0, %v1816_v62  ;;  %v126_v61 = vld [vmem:[%s8221_s1 + $0x2a8] sm:$0xff] }
  0x87   :  { %5454 = vmatprep.mubr.msk.f32.mxu0 %vm225_vm0, %v95_v63  ;;  %5756 = vmatprep.mubr.msk.f32.mxu1 %vm225_vm0, %v1817_v0  ;;  %v1848_v62 = vld [vmem:[%s8222_s2 + $0x2a8] sm:$0xff]  ;;  %v127_v63 = vld [vmem:[%s8221_s1 + $0x2b0] sm:$0xff] }
  0x88   :  { %v1849_v0 = vld [vmem:[%s8222_s2 + $0x2b0] sm:$0xff] }
  0x8a   :  { %5455 = vmatmul.mubr.msk.f32.gmra.mrb[54].mxu0 %vm225_vm0, %v96_v1  ;;  %5757 = vmatmul.mubr.msk.f32.gmra.mrb[54].mxu1 %vm225_vm0, %v1818_v2  ;;  %v128_v1 = vld [vmem:[%s8221_s1 + $0x2b8] sm:$0xff] }
  0x8b   :  { %5457 = vmatprep.mubr.msk.f32.mxu0 %vm225_vm0, %v97_v3  ;;  %5759 = vmatprep.mubr.msk.f32.mxu1 %vm225_vm0, %v1819_v4  ;;  %v1850_v2 = vld [vmem:[%s8222_s2 + $0x2b8] sm:$0xff]  ;;  %v129_v3 = vld [vmem:[%s8221_s1 + $0x2c0] sm:$0xff] }
  0x8c   :  { %v1851_v4 = vld [vmem:[%s8222_s2 + $0x2c0] sm:$0xff] }
  0x8e   :  { %5458 = vmatmul.mubr.msk.f32.gmra.mrb[56].mxu0 %vm225_vm0, %v98_v5  ;;  %5760 = vmatmul.mubr.msk.f32.gmra.mrb[56].mxu1 %vm225_vm0, %v1820_v6  ;;  %v130_v5 = vld [vmem:[%s8221_s1 + $0x2c8] sm:$0xff] }
  0x8f   :  { %5460 = vmatprep.mubr.msk.f32.mxu0 %vm225_vm0, %v99_v7  ;;  %5762 = vmatprep.mubr.msk.f32.mxu1 %vm225_vm0, %v1821_v8  ;;  %v1852_v6 = vld [vmem:[%s8222_s2 + $0x2c8] sm:$0xff]  ;;  %v131_v7 = vld [vmem:[%s8221_s1 + $0x2d0] sm:$0xff] }
  0x90   :  { %v1853_v8 = vld [vmem:[%s8222_s2 + $0x2d0] sm:$0xff] }
  0x92   :  { %5461 = vmatmul.mubr.msk.f32.gmra.mrb[58].mxu0 %vm225_vm0, %v100_v9  ;;  %5763 = vmatmul.mubr.msk.f32.gmra.mrb[58].mxu1 %vm225_vm0, %v1822_v10  ;;  %v132_v9 = vld [vmem:[%s8221_s1 + $0x2d8] sm:$0xff] }
  0x93   :  { %5463 = vmatprep.mubr.msk.f32.mxu0 %vm225_vm0, %v101_v11  ;;  %5765 = vmatprep.mubr.msk.f32.mxu1 %vm225_vm0, %v1823_v12  ;;  %v1854_v10 = vld [vmem:[%s8222_s2 + $0x2d8] sm:$0xff]  ;;  %v133_v11 = vld [vmem:[%s8221_s1 + $0x2e0] sm:$0xff] }
  0x94   :  { %v1855_v12 = vld [vmem:[%s8222_s2 + $0x2e0] sm:$0xff] }
  0x96   :  { %5464 = vmatmul.mubr.msk.f32.gmra.mrb[60].mxu0 %vm225_vm0, %v102_v13  ;;  %5766 = vmatmul.mubr.msk.f32.gmra.mrb[60].mxu1 %vm225_vm0, %v1824_v14  ;;  %v134_v13 = vld [vmem:[%s8221_s1 + $0x2e8] sm:$0xff] }
  0x97   :  { %5466 = vmatprep.mubr.msk.f32.mxu0 %vm225_vm0, %v103_v15  ;;  %5768 = vmatprep.mubr.msk.f32.mxu1 %vm225_vm0, %v1825_v16  ;;  %v1856_v14 = vld [vmem:[%s8222_s2 + $0x2e8] sm:$0xff]  ;;  %v135_v15 = vld [vmem:[%s8221_s1 + $0x2f0] sm:$0xff] }
  0x98   :  { %v1857_v16 = vld [vmem:[%s8222_s2 + $0x2f0] sm:$0xff] }
  0x9a   :  { %5467 = vmatmul.mubr.msk.f32.gmra.mrb[62].mxu0 %vm225_vm0, %v104_v17  ;;  %5769 = vmatmul.mubr.msk.f32.gmra.mrb[62].mxu1 %vm225_vm0, %v1826_v18  ;;  %v136_v17 = vld [vmem:[%s8221_s1 + $0x2f8] sm:$0xff] }
  0x9b   :  { %5469 = vmatprep.mubr.msk.f32.mxu0 %vm225_vm0, %v105_v19  ;;  %5771 = vmatprep.mubr.msk.f32.mxu1 %vm225_vm0, %v1827_v20  ;;  %v1858_v18 = vld [vmem:[%s8222_s2 + $0x2f8] sm:$0xff]  ;;  %v137_v19 = vld [vmem:[%s8221_s1 + $0x300] sm:$0xff] }
  0x9c   :  { %v1859_v20 = vld [vmem:[%s8222_s2 + $0x300] sm:$0xff] }
  0x9e   :  { %5470 = vmatmul.mubr.msk.f32.gmra.mrb[64].mxu0 %vm225_vm0, %v106_v21  ;;  %5772 = vmatmul.mubr.msk.f32.gmra.mrb[64].mxu1 %vm225_vm0, %v1828_v22  ;;  %v138_v21 = vld [vmem:[%s8221_s1 + $0x308] sm:$0xff] }
  0x9f   :  { %5472 = vmatprep.mubr.msk.f32.mxu0 %vm225_vm0, %v107_v23  ;;  %5774 = vmatprep.mubr.msk.f32.mxu1 %vm225_vm0, %v1829_v24  ;;  %v1860_v22 = vld [vmem:[%s8222_s2 + $0x308] sm:$0xff]  ;;  %v139_v23 = vld [vmem:[%s8221_s1 + $0x310] sm:$0xff] }
  0xa0   :  { %v1861_v24 = vld [vmem:[%s8222_s2 + $0x310] sm:$0xff] }
  0xa2   :  { %5473 = vmatmul.mubr.msk.f32.gmra.mrb[66].mxu0 %vm225_vm0, %v108_v25  ;;  %5775 = vmatmul.mubr.msk.f32.gmra.mrb[66].mxu1 %vm225_vm0, %v1830_v26  ;;  %v140_v25 = vld [vmem:[%s8221_s1 + $0x318] sm:$0xff] }
  0xa3   :  { %5475 = vmatprep.mubr.msk.f32.mxu0 %vm225_vm0, %v109_v27  ;;  %5777 = vmatprep.mubr.msk.f32.mxu1 %vm225_vm0, %v1831_v28  ;;  %v1862_v26 = vld [vmem:[%s8222_s2 + $0x318] sm:$0xff]  ;;  %v141_v27 = vld [vmem:[%s8221_s1 + $0x320] sm:$0xff] }
  0xa4   :  { %v1863_v28 = vld [vmem:[%s8222_s2 + $0x320] sm:$0xff] }
  0xa6   :  { %5476 = vmatmul.mubr.msk.f32.gmra.mrb[68].mxu0 %vm225_vm0, %v110_v29  ;;  %5778 = vmatmul.mubr.msk.f32.gmra.mrb[68].mxu1 %vm225_vm0, %v1832_v30  ;;  %v142_v29 = vld [vmem:[%s8221_s1 + $0x328] sm:$0xff] }
  0xa7   :  { %5478 = vmatprep.mubr.msk.f32.mxu0 %vm225_vm0, %v111_v31  ;;  %5780 = vmatprep.mubr.msk.f32.mxu1 %vm225_vm0, %v1833_v32  ;;  %v1864_v30 = vld [vmem:[%s8222_s2 + $0x328] sm:$0xff]  ;;  %v143_v31 = vld [vmem:[%s8221_s1 + $0x330] sm:$0xff] }
  0xa8   :  { %v1865_v32 = vld [vmem:[%s8222_s2 + $0x330] sm:$0xff] }
  0xaa   :  { %5479 = vmatmul.mubr.msk.f32.gmra.mrb[70].mxu0 %vm225_vm0, %v112_v33  ;;  %5781 = vmatmul.mubr.msk.f32.gmra.mrb[70].mxu1 %vm225_vm0, %v1834_v34  ;;  %v144_v33 = vld [vmem:[%s8221_s1 + $0x338] sm:$0xff] }
  0xab   :  { %5481 = vmatprep.mubr.msk.f32.mxu0 %vm225_vm0, %v113_v35  ;;  %5783 = vmatprep.mubr.msk.f32.mxu1 %vm225_vm0, %v1835_v36  ;;  %v1866_v34 = vld [vmem:[%s8222_s2 + $0x338] sm:$0xff]  ;;  %v145_v35 = vld [vmem:[%s8221_s1 + $0x340] sm:$0xff] }
  0xac   :  { %v1867_v36 = vld [vmem:[%s8222_s2 + $0x340] sm:$0xff] }
  0xae   :  { %5482 = vmatmul.mubr.msk.f32.gmra.mrb[72].mxu0 %vm225_vm0, %v114_v37  ;;  %5784 = vmatmul.mubr.msk.f32.gmra.mrb[72].mxu1 %vm225_vm0, %v1836_v38  ;;  %v146_v37 = vld [vmem:[%s8221_s1 + $0x348] sm:$0xff] }
  0xaf   :  { %5484 = vmatprep.mubr.msk.f32.mxu0 %vm225_vm0, %v115_v39  ;;  %5786 = vmatprep.mubr.msk.f32.mxu1 %vm225_vm0, %v1837_v40  ;;  %v1868_v38 = vld [vmem:[%s8222_s2 + $0x348] sm:$0xff]  ;;  %v147_v39 = vld [vmem:[%s8221_s1 + $0x350] sm:$0xff] }
  0xb0   :  { %v1869_v40 = vld [vmem:[%s8222_s2 + $0x350] sm:$0xff] }
  0xb2   :  { %5485 = vmatmul.mubr.msk.f32.gmra.mrb[74].mxu0 %vm225_vm0, %v116_v41  ;;  %5787 = vmatmul.mubr.msk.f32.gmra.mrb[74].mxu1 %vm225_vm0, %v1838_v42  ;;  %v148_v41 = vld [vmem:[%s8221_s1 + $0x358] sm:$0xff] }
  0xb3   :  { %5487 = vmatprep.mubr.msk.f32.mxu0 %vm225_vm0, %v117_v43  ;;  %5789 = vmatprep.mubr.msk.f32.mxu1 %vm225_vm0, %v1839_v44  ;;  %v1870_v42 = vld [vmem:[%s8222_s2 + $0x358] sm:$0xff]  ;;  %v149_v43 = vld [vmem:[%s8221_s1 + $0x360] sm:$0xff] }
  0xb4   :  { %v1871_v44 = vld [vmem:[%s8222_s2 + $0x360] sm:$0xff] }
  0xb6   :  { %5488 = vmatmul.mubr.msk.f32.gmra.mrb[76].mxu0 %vm225_vm0, %v118_v45  ;;  %5790 = vmatmul.mubr.msk.f32.gmra.mrb[76].mxu1 %vm225_vm0, %v1840_v46 }
  0xb7   :  { %5490 = vmatprep.mubr.msk.f32.mxu0 %vm225_vm0, %v119_v47  ;;  %5792 = vmatprep.mubr.msk.f32.mxu1 %vm225_vm0, %v1841_v48 }
  0xba   :  { %5491 = vmatmul.mubr.msk.f32.gmra.mrb[78].mxu0 %vm225_vm0, %v120_v49  ;;  %5793 = vmatmul.mubr.msk.f32.gmra.mrb[78].mxu1 %vm225_vm0, %v1842_v50 }
  0xbb   :  { %5493 = vmatprep.mubr.msk.f32.mxu0 %vm225_vm0, %v121_v51  ;;  %5795 = vmatprep.mubr.msk.f32.mxu1 %vm225_vm0, %v1843_v52  ;;  %v150_v51 = vld [vmem:[%s8221_s1 + $0x368] sm:$0xff] }
  0xbc   :  { %v1872_v52 = vld [vmem:[%s8222_s2 + $0x368] sm:$0xff] }
  0xbe   :  { %5494 = vmatmul.mubr.msk.f32.gmra.mrb[80].mxu0 %vm225_vm0, %v122_v53  ;;  %5796 = vmatmul.mubr.msk.f32.gmra.mrb[80].mxu1 %vm225_vm0, %v1844_v54  ;;  %v151_v54 = vld [vmem:[%s8221_s1 + $0x370] sm:$0xff] }
  0xbf   :  { %5496 = vmatprep.mubr.msk.f32.mxu0 %vm225_vm0, %v123_v55  ;;  %5798 = vmatprep.mubr.msk.f32.mxu1 %vm225_vm0, %v1845_v56  ;;  %v1873_v55 = vld [vmem:[%s8222_s2 + $0x370] sm:$0xff] }
  0xc2   :  { %5497 = vmatmul.mubr.msk.f32.gmra.mrb[82].mxu0 %vm225_vm0, %v124_v57  ;;  %5799 = vmatmul.mubr.msk.f32.gmra.mrb[82].mxu1 %vm225_vm0, %v1846_v58 }
  0xc3   :  { %5499 = vmatprep.mubr.msk.f32.mxu0 %vm225_vm0, %v125_v59  ;;  %5801 = vmatprep.mubr.msk.f32.mxu1 %vm225_vm0, %v1847_v60 }
  0xc6   :  { %5500 = vmatmul.mubr.msk.f32.gmra.mrb[84].mxu0 %vm225_vm0, %v126_v61  ;;  %5802 = vmatmul.mubr.msk.f32.gmra.mrb[84].mxu1 %vm225_vm0, %v1848_v62 }
  0xc7   :  { %5502 = vmatprep.mubr.msk.f32.mxu0 %vm225_vm0, %v127_v63  ;;  %5804 = vmatprep.mubr.msk.f32.mxu1 %vm225_vm0, %v1849_v0  ;;  %v152_v0 = vld [vmem:[%s8221_s1 + $0x378] sm:$0xff] }
  0xca   :  { %5503 = vmatmul.mubr.msk.f32.gmra.mrb[86].mxu0 %vm225_vm0, %v128_v1  ;;  %5805 = vmatmul.mubr.msk.f32.gmra.mrb[86].mxu1 %vm225_vm0, %v1850_v2  ;;  %v1874_v1 = vld [vmem:[%s8222_s2 + $0x378] sm:$0xff] }
  0xcb   :  { %5505 = vmatprep.mubr.msk.f32.mxu0 %vm225_vm0, %v129_v3  ;;  %5807 = vmatprep.mubr.msk.f32.mxu1 %vm225_vm0, %v1851_v4  ;;  %v153_v3 = vld [vmem:[%s8221_s1 + $0x380] sm:$0xff] }
  0xcc   :  { %v1875_v4 = vld [vmem:[%s8222_s2 + $0x380] sm:$0xff] }
  0xce   :  { %5506 = vmatmul.mubr.msk.f32.gmra.mrb[88].mxu0 %vm225_vm0, %v130_v5  ;;  %5808 = vmatmul.mubr.msk.f32.gmra.mrb[88].mxu1 %vm225_vm0, %v1852_v6 }
  0xcf   :  { %5508 = vmatprep.mubr.msk.f32.mxu0 %vm225_vm0, %v131_v7  ;;  %5810 = vmatprep.mubr.msk.f32.mxu1 %vm225_vm0, %v1853_v8 }
  0xd2   :  { %5509 = vmatmul.mubr.msk.f32.gmra.mrb[90].mxu0 %vm225_vm0, %v132_v9  ;;  %5811 = vmatmul.mubr.msk.f32.gmra.mrb[90].mxu1 %vm225_vm0, %v1854_v10 }
  0xd3   :  { %5511 = vmatprep.mubr.msk.f32.mxu0 %vm225_vm0, %v133_v11  ;;  %5813 = vmatprep.mubr.msk.f32.mxu1 %vm225_vm0, %v1855_v12 }
  0xd6   :  { %5512 = vmatmul.mubr.msk.f32.gmra.mrb[92].mxu0 %vm225_vm0, %v134_v13  ;;  %5814 = vmatmul.mubr.msk.f32.gmra.mrb[92].mxu1 %vm225_vm0, %v1856_v14  ;;  %v154_v13 = vld [vmem:[%s8221_s1 + $0x388] sm:$0xff] }
  0xd7   :  { %5514 = vmatprep.mubr.msk.f32.mxu0 %vm225_vm0, %v135_v15  ;;  %5816 = vmatprep.mubr.msk.f32.mxu1 %vm225_vm0, %v1857_v16  ;;  %v1876_v14 = vld [vmem:[%s8222_s2 + $0x388] sm:$0xff]  ;;  %v155_v16 = vld [vmem:[%s8221_s1 + $0x390] sm:$0xff] }
  0xda   :  { %5515 = vmatmul.mubr.msk.f32.gmra.mrb[94].mxu0 %vm225_vm0, %v136_v17  ;;  %5817 = vmatmul.mubr.msk.f32.gmra.mrb[94].mxu1 %vm225_vm0, %v1858_v18  ;;  %v1877_v17 = vld [vmem:[%s8222_s2 + $0x390] sm:$0xff] }
  0xdb   :  { %5517 = vmatprep.mubr.msk.f32.mxu0 %vm225_vm0, %v137_v19  ;;  %5819 = vmatprep.mubr.msk.f32.mxu1 %vm225_vm0, %v1859_v20 }
  0xde   :  { %5518 = vmatmul.mubr.msk.f32.gmra.mrb[96].mxu0 %vm225_vm0, %v138_v21  ;;  %5820 = vmatmul.mubr.msk.f32.gmra.mrb[96].mxu1 %vm225_vm0, %v1860_v22 }
  0xdf   :  { %5520 = vmatprep.mubr.msk.f32.mxu0 %vm225_vm0, %v139_v23  ;;  %5822 = vmatprep.mubr.msk.f32.mxu1 %vm225_vm0, %v1861_v24 }
  0xe2   :  { %5521 = vmatmul.mubr.msk.f32.gmra.mrb[98].mxu0 %vm225_vm0, %v140_v25  ;;  %5823 = vmatmul.mubr.msk.f32.gmra.mrb[98].mxu1 %vm225_vm0, %v1862_v26  ;;  %v156_v26 = vld [vmem:[%s8221_s1 + $0x398] sm:$0xff] }
  0xe3   :  { %5523 = vmatprep.mubr.msk.f32.mxu0 %vm225_vm0, %v141_v27  ;;  %5825 = vmatprep.mubr.msk.f32.mxu1 %vm225_vm0, %v1863_v28  ;;  %v1878_v27 = vld [vmem:[%s8222_s2 + $0x398] sm:$0xff] }
  0xe6   :  { %5524 = vmatmul.mubr.msk.f32.gmra.mrb[100].mxu0 %vm225_vm0, %v142_v29  ;;  %5826 = vmatmul.mubr.msk.f32.gmra.mrb[100].mxu1 %vm225_vm0, %v1864_v30  ;;  %v157_v29 = vld [vmem:[%s8221_s1 + $0x3a0] sm:$0xff] }
  0xe7   :  { %5526 = vmatprep.mubr.msk.f32.mxu0 %vm225_vm0, %v143_v31  ;;  %5828 = vmatprep.mubr.msk.f32.mxu1 %vm225_vm0, %v1865_v32  ;;  %v1879_v30 = vld [vmem:[%s8222_s2 + $0x3a0] sm:$0xff] }
  0xea   :  { %5527 = vmatmul.mubr.msk.f32.gmra.mrb[102].mxu0 %vm225_vm0, %v144_v33  ;;  %5829 = vmatmul.mubr.msk.f32.gmra.mrb[102].mxu1 %vm225_vm0, %v1866_v34 }
  0xeb   :  { %5529 = vmatprep.mubr.msk.f32.mxu0 %vm225_vm0, %v145_v35  ;;  %5831 = vmatprep.mubr.msk.f32.mxu1 %vm225_vm0, %v1867_v36 }
  0xee   :  { %5530 = vmatmul.mubr.msk.f32.gmra.mrb[104].mxu0 %vm225_vm0, %v146_v37  ;;  %5832 = vmatmul.mubr.msk.f32.gmra.mrb[104].mxu1 %vm225_vm0, %v1868_v38 }
  0xef   :  { %5532 = vmatprep.mubr.msk.f32.mxu0 %vm225_vm0, %v147_v39  ;;  %5834 = vmatprep.mubr.msk.f32.mxu1 %vm225_vm0, %v1869_v40  ;;  %v158_v39 = vld [vmem:[%s8221_s1 + $0x3a8] sm:$0xff] }
  0xf0   :  { %v1880_v40 = vld [vmem:[%s8222_s2 + $0x3a8] sm:$0xff] }
  0xf1   :  { %v5375_v45 = vpop.f32.mrb[0].mxu0  ;;  %v5677_v46 = vpop.f32.mrb[0].mxu1 }
  0xf2   :  { %v3485_v47 = vmax.f32 %v5375_v45, %v5677_v46  ;;  %v844_v48 = vpop.f32.mrb[1].mxu0  ;;  %v2565_v49 = vpop.f32.mrb[1].mxu1  ;;  %5533 = vmatmul.mubr.msk.f32.gmra.mrb[106].mxu0 %vm225_vm0, %v148_v41  ;;  %5835 = vmatmul.mubr.msk.f32.gmra.mrb[106].mxu1 %vm225_vm0, %v1870_v42  ;;  %v159_v42 = vld [vmem:[%s8221_s1 + $0x3b0] sm:$0xff] }
  0xf3   :  { %v3484_v50 = vmax.f32 %v844_v48, %v2565_v49  ;;  %5535 = vmatprep.mubr.msk.f32.mxu0 %vm225_vm0, %v149_v43  ;;  %5837 = vmatprep.mubr.msk.f32.mxu1 %vm225_vm0, %v1871_v44  ;;  %v1881_v43 = vld [vmem:[%s8222_s2 + $0x3b0] sm:$0xff] }
  0xf4   :  { %v7162_v53 = vmax.f32 %v3485_v47, 0.0 }
  0xf5   :  { %v7170_v56 = vmax.f32 %v3484_v50, 0.0  ;;  %v5378_v57 = vpop.f32.mrb[2].mxu0  ;;  %v5680_v58 = vpop.f32.mrb[2].mxu1 }
  0xf6   :  { %v3487_v59 = vmax.f32 %v5378_v57, %v5680_v58  ;;  %v854_v60 = vpop.f32.mrb[3].mxu0  ;;  %v2575_v61 = vpop.f32.mrb[3].mxu1  ;;  %5536 = vmatmul.mubr.msk.f32.gmra.mrb[108].mxu0 %vm225_vm0, %v150_v51  ;;  %5838 = vmatmul.mubr.msk.f32.gmra.mrb[108].mxu1 %vm225_vm0, %v1872_v52  ;;  %v160_v52 = vld [vmem:[%s8221_s1 + $0x3b8] sm:$0xff]  ;;  %v161_v57 = vld [vmem:[%s8221_s1 + $0x3c0] sm:$0xff] }
  0xf7   :  { %v6001_v62 = vpack.c.bf16 %v7162_v53, %v7170_v56  ;;  %v3486_v63 = vmax.f32 %v854_v60, %v2575_v61  ;;  %5538 = vmatprep.mubr.msk.f32.mxu0 %vm225_vm0, %v151_v54  ;;  %5840 = vmatprep.mubr.msk.f32.mxu1 %vm225_vm0, %v1873_v55  ;;  %v1882_v54 = vld [vmem:[%s8222_s2 + $0x3b8] sm:$0xff]  ;;  %v1883_v58 = vld [vmem:[%s8222_s2 + $0x3c0] sm:$0xff]  ;;  %v170_v53 = vld [vmem:[%s8221_s1 + $0x408] sm:$0xff] }
  0xf8   :  { %v7184_v2 = vmax.f32 %v3487_v59, 0.0  ;;  %v1893_v56 = vld [vmem:[%s8222_s2 + $0x410] sm:$0xff] }
  0xf9   :  { %v7192_v5 = vmax.f32 %v3486_v63, 0.0  ;;  %v5381_v6 = vpop.f32.mrb[4].mxu0  ;;  %v5683_v7 = vpop.f32.mrb[4].mxu1 }
  0xfa   :  { %v3489_v8 = vmax.f32 %v5381_v6, %v5683_v7  ;;  %v864_v9 = vpop.f32.mrb[5].mxu0  ;;  %v2585_v10 = vpop.f32.mrb[5].mxu1  ;;  %5539 = vmatmul.mubr.msk.f32.gmra.mrb[110].mxu0 %vm225_vm0, %v152_v0  ;;  %5841 = vmatmul.mubr.msk.f32.gmra.mrb[110].mxu1 %vm225_vm0, %v1874_v1  ;;  %v162_v6 = vld [vmem:[%s8221_s1 + $0x3c8] sm:$0xff] }
  0xfb   :  { %v6005_v11 = vpack.c.bf16 %v7184_v2, %v7192_v5  ;;  %v3488_v12 = vmax.f32 %v864_v9, %v2585_v10  ;;  %5541 = vmatprep.mubr.msk.f32.mxu0 %vm225_vm0, %v153_v3  ;;  %5843 = vmatprep.mubr.msk.f32.mxu1 %vm225_vm0, %v1875_v4  ;;  %v1884_v7 = vld [vmem:[%s8222_s2 + $0x3c8] sm:$0xff]  ;;  %v163_v9 = vld [vmem:[%s8221_s1 + $0x3d0] sm:$0xff]  ;;  %v172_v2 = vld [vmem:[%s8221_s1 + $0x418] sm:$0xff] }
  0xfc   :  { %v7206_v15 = vmax.f32 %v3489_v8, 0.0  ;;  %v1885_v10 = vld [vmem:[%s8222_s2 + $0x3d0] sm:$0xff]  ;;  %v1895_v5 = vld [vmem:[%s8222_s2 + $0x420] sm:$0xff] }
  0xfd   :  { %v7214_v18 = vmax.f32 %v3488_v12, 0.0  ;;  %v5384_v19 = vpop.f32.mrb[6].mxu0  ;;  %v5686_v20 = vpop.f32.mrb[6].mxu1 }
  0xfe   :  { %v3491_v21 = vmax.f32 %v5384_v19, %v5686_v20  ;;  %v874_v22 = vpop.f32.mrb[7].mxu0  ;;  %v2595_v23 = vpop.f32.mrb[7].mxu1  ;;  %5542 = vmatmul.mubr.msk.f32.gmra.mrb[112].mxu0 %vm225_vm0, %v154_v13  ;;  %5844 = vmatmul.mubr.msk.f32.gmra.mrb[112].mxu1 %vm225_vm0, %v1876_v14 }
  0xff   :  { %v6009_v24 = vpack.c.bf16 %v7206_v15, %v7214_v18  ;;  %v3490_v25 = vmax.f32 %v874_v22, %v2595_v23  ;;  %5544 = vmatprep.mubr.msk.f32.mxu0 %vm225_vm0, %v155_v16  ;;  %5846 = vmatprep.mubr.msk.f32.mxu1 %vm225_vm0, %v1877_v17  ;;  %v164_v22 = vld [vmem:[%s8221_s1 + $0x3d8] sm:$0xff]  ;;  %v174_v15 = vld [vmem:[%s8221_s1 + $0x428] sm:$0xff]  ;;  %v1897_v18 = vld [vmem:[%s8222_s2 + $0x430] sm:$0xff] }
 0x100   :  { %v7228_v28 = vmax.f32 %v3491_v21, 0.0  ;;  %v1886_v23 = vld [vmem:[%s8222_s2 + $0x3d8] sm:$0xff] }
 0x101   :  { %v7236_v31 = vmax.f32 %v3490_v25, 0.0  ;;  %v5387_v32 = vpop.f32.mrb[8].mxu0  ;;  %v5689_v33 = vpop.f32.mrb[8].mxu1 }
 0x102   :  { %v3493_v34 = vmax.f32 %v5387_v32, %v5689_v33  ;;  %v884_v35 = vpop.f32.mrb[9].mxu0  ;;  %v2605_v36 = vpop.f32.mrb[9].mxu1  ;;  %5545 = vmatmul.mubr.msk.f32.gmra.mrb[114].mxu0 %vm225_vm0, %v156_v26  ;;  %5847 = vmatmul.mubr.msk.f32.gmra.mrb[114].mxu1 %vm225_vm0, %v1878_v27  ;;  %v165_v26 = vld [vmem:[%s8221_s1 + $0x3e0] sm:$0xff] }
 0x103   :  { %v6013_v37 = vpack.c.bf16 %v7228_v28, %v7236_v31  ;;  %v3492_v38 = vmax.f32 %v884_v35, %v2605_v36  ;;  %5547 = vmatprep.mubr.msk.f32.mxu0 %vm225_vm0, %v157_v29  ;;  %5849 = vmatprep.mubr.msk.f32.mxu1 %vm225_vm0, %v1879_v30  ;;  %v1887_v27 = vld [vmem:[%s8222_s2 + $0x3e0] sm:$0xff]  ;;  %v176_v28 = vld [vmem:[%s8221_s1 + $0x438] sm:$0xff] }
 0x104   :  { %v7250_v41 = vmax.f32 %v3493_v34, 0.0  ;;  %v1899_v31 = vld [vmem:[%s8222_s2 + $0x440] sm:$0xff] }
 0x105   :  { %v7258_v44 = vmax.f32 %v3492_v38, 0.0  ;;  %v5390_v45 = vpop.f32.mrb[10].mxu0  ;;  %v5692_v46 = vpop.f32.mrb[10].mxu1 }
 0x106   :  { %v3495_v47 = vmax.f32 %v5390_v45, %v5692_v46  ;;  %v894_v48 = vpop.f32.mrb[11].mxu0  ;;  %v2615_v49 = vpop.f32.mrb[11].mxu1  ;;  %5548 = vmatmul.mubr.msk.f32.gmra.mrb[116].mxu0 %vm225_vm0, %v158_v39  ;;  %5850 = vmatmul.mubr.msk.f32.gmra.mrb[116].mxu1 %vm225_vm0, %v1880_v40  ;;  %v166_v39 = vld [vmem:[%s8221_s1 + $0x3e8] sm:$0xff]  ;;  %v1889_v45 = vld [vmem:[%s8222_s2 + $0x3f0] sm:$0xff] }
 0x107   :  { %v6017_v50 = vpack.c.bf16 %v7250_v41, %v7258_v44  ;;  %v3494_v51 = vmax.f32 %v894_v48, %v2615_v49  ;;  %5550 = vmatprep.mubr.msk.f32.mxu0 %vm225_vm0, %v159_v42  ;;  %5852 = vmatprep.mubr.msk.f32.mxu1 %vm225_vm0, %v1881_v43  ;;  %v1888_v40 = vld [vmem:[%s8222_s2 + $0x3e8] sm:$0xff]  ;;  %v167_v43 = vld [vmem:[%s8221_s1 + $0x3f0] sm:$0xff] }
 0x108   :  { %v7272_v55 = vmax.f32 %v3495_v47, 0.0  ;;  %v178_v41 = vld [vmem:[%s8221_s1 + $0x448] sm:$0xff]  ;;  %v1901_v44 = vld [vmem:[%s8222_s2 + $0x450] sm:$0xff] }
 0x109   :  { %v7280_v59 = vmax.f32 %v3494_v51, 0.0  ;;  %v5393_v60 = vpop.f32.mrb[12].mxu0  ;;  %v5695_v61 = vpop.f32.mrb[12].mxu1 }
 0x10a   :  { %v3497_v63 = vmax.f32 %v5393_v60, %v5695_v61  ;;  %v904_v0 = vpop.f32.mrb[13].mxu0  ;;  %v2625_v1 = vpop.f32.mrb[13].mxu1  ;;  %5551 = vmatmul.mubr.msk.f32.gmra.mrb[118].mxu0 %vm225_vm0, %v160_v52  ;;  %5853 = vmatmul.mubr.msk.f32.gmra.mrb[118].mxu1 %vm225_vm0, %v1882_v54  ;;  %v168_v61 = vld [vmem:[%s8221_s1 + $0x3f8] sm:$0xff] }
 0x10b   :  { %v6021_v3 = vpack.c.bf16 %v7272_v55, %v7280_v59  ;;  %v3496_v4 = vmax.f32 %v904_v0, %v2625_v1  ;;  %5553 = vmatprep.mubr.msk.f32.mxu0 %vm225_vm0, %v161_v57  ;;  %5855 = vmatprep.mubr.msk.f32.mxu1 %vm225_vm0, %v1883_v58  ;;  %v1890_v58 = vld [vmem:[%s8222_s2 + $0x3f8] sm:$0xff]  ;;  %v1903_v59 = vld [vmem:[%s8222_s2 + $0x460] sm:$0xff] }
 0x10c   :  { %v7294_v8 = vmax.f32 %v3497_v63, 0.0  ;;  %v1891_v63 = vld [vmem:[%s8222_s2 + $0x400] sm:$0xff]  ;;  %v180_v55 = vld [vmem:[%s8221_s1 + $0x458] sm:$0xff] }
 0x10d   :  { %v7302_v12 = vmax.f32 %v3496_v4, 0.0  ;;  %v5396_v13 = vpop.f32.mrb[14].mxu0  ;;  %v5698_v14 = vpop.f32.mrb[14].mxu1 }
 0x10e   :  { %v3499_v16 = vmax.f32 %v5396_v13, %v5698_v14  ;;  %v914_v17 = vpop.f32.mrb[15].mxu0  ;;  %v2635_v19 = vpop.f32.mrb[15].mxu1  ;;  %5554 = vmatmul.mubr.msk.f32.gmra.mrb[120].mxu0 %vm225_vm0, %v162_v6  ;;  %5856 = vmatmul.mubr.msk.f32.gmra.mrb[120].mxu1 %vm225_vm0, %v1884_v7  ;;  %v169_v6 = vld [vmem:[%s8221_s1 + $0x400] sm:$0xff] }
 0x10f   :  { %v6025_v20 = vpack.c.bf16 %v7294_v8, %v7302_v12  ;;  %v3498_v21 = vmax.f32 %v914_v17, %v2635_v19  ;;  %5556 = vmatprep.mubr.msk.f32.mxu0 %vm225_vm0, %v163_v9  ;;  %5858 = vmatprep.mubr.msk.f32.mxu1 %vm225_vm0, %v1885_v10  ;;  %v182_v8 = vld [vmem:[%s8221_s1 + $0x468] sm:$0xff]  ;;  %v1905_v12 = vld [vmem:[%s8222_s2 + $0x470] sm:$0xff] }
 0x110   :  { %v7316_v25 = vmax.f32 %v3499_v16, 0.0  ;;  %v1892_v16 = vld [vmem:[%s8222_s2 + $0x408] sm:$0xff] }
 0x111   :  { %v7324_v29 = vmax.f32 %v3498_v21, 0.0  ;;  %v5399_v30 = vpop.f32.mrb[16].mxu0  ;;  %v5701_v32 = vpop.f32.mrb[16].mxu1 }
 0x112   :  { %v3501_v33 = vmax.f32 %v5399_v30, %v5701_v32  ;;  %v924_v34 = vpop.f32.mrb[17].mxu0  ;;  %v2645_v35 = vpop.f32.mrb[17].mxu1  ;;  %5557 = vmatmul.mubr.msk.f32.gmra.mrb[122].mxu0 %vm225_vm0, %v164_v22  ;;  %5859 = vmatmul.mubr.msk.f32.gmra.mrb[122].mxu1 %vm225_vm0, %v1886_v23  ;;  %v171_v22 = vld [vmem:[%s8221_s1 + $0x410] sm:$0xff] }
 0x113   :  { %v6029_v36 = vpack.c.bf16 %v7316_v25, %v7324_v29  ;;  %v3500_v38 = vmax.f32 %v924_v34, %v2645_v35  ;;  %5559 = vmatprep.mubr.msk.f32.mxu0 %vm225_vm0, %v165_v26  ;;  %5861 = vmatprep.mubr.msk.f32.mxu1 %vm225_vm0, %v1887_v27  ;;  %v184_v25 = vld [vmem:[%s8221_s1 + $0x478] sm:$0xff]  ;;  %v1907_v29 = vld [vmem:[%s8222_s2 + $0x480] sm:$0xff] }
 0x114   :  { %v3685_v42 = vmax.f32 %v3501_v33, 0.0  ;;  %v1894_v33 = vld [vmem:[%s8222_s2 + $0x418] sm:$0xff] }
 0x115   :  { %v3684_v46 = vmax.f32 %v3500_v38, 0.0  ;;  %v5402_v47 = vpop.f32.mrb[18].mxu0  ;;  %v5704_v48 = vpop.f32.mrb[18].mxu1 }
 0x116   :  { %v3503_v49 = vmax.f32 %v5402_v47, %v5704_v48  ;;  %v934_v51 = vpop.f32.mrb[19].mxu0  ;;  %v2655_v52 = vpop.f32.mrb[19].mxu1  ;;  %5560 = vmatmul.mubr.msk.f32.gmra.mrb[124].mxu0 %vm225_vm0, %v166_v39  ;;  %5862 = vmatmul.mubr.msk.f32.gmra.mrb[124].mxu1 %vm225_vm0, %v1888_v40  ;;  %v173_v39 = vld [vmem:[%s8221_s1 + $0x420] sm:$0xff]  ;;  %v1896_v47 = vld [vmem:[%s8222_s2 + $0x428] sm:$0xff] }
 0x117   :  { %v5999_v54 = vpack.c.bf16 %v3685_v42, %v3684_v46  ;;  %v3502_v57 = vmax.f32 %v934_v51, %v2655_v52  ;;  %5562 = vmatprep.mubr.msk.f32.mxu0 %vm225_vm0, %v167_v43  ;;  %5864 = vmatprep.mubr.msk.f32.mxu1 %vm225_vm0, %v1889_v45  ;;  %v175_v52 = vld [vmem:[%s8221_s1 + $0x430] sm:$0xff] }
 0x118   :  { %v3687_v60 = vmax.f32 %v3503_v49, 0.0 }
 0x119   :  { %v3686_v0 = vmax.f32 %v3502_v57, 0.0  ;;  %v5405_v1 = vpop.f32.mrb[20].mxu0  ;;  %v5707_v4 = vpop.f32.mrb[20].mxu1  ;;  %6000 = vmatprep.subr.bf16.mxu0 %v5999_v54 }
 0x11a   :  { %v3505_v7 = vmax.f32 %v5405_v1, %v5707_v4  ;;  %v944_v9 = vpop.f32.mrb[21].mxu0  ;;  %v2665_v10 = vpop.f32.mrb[21].mxu1  ;;  %6002 = vmatpush3.bf16.msra.mxu0 %v6001_v62  ;;  %5865 = vmatmul.mubr.msk.f32.gmra.mrb[126].mxu1 %vm225_vm0, %v1890_v58 }
 0x11b   :  { %v6003_v13 = vpack.c.bf16 %v3687_v60, %v3686_v0  ;;  %v3504_v14 = vmax.f32 %v944_v9, %v2665_v10  ;;  %5563 = vmatmul.mubr.msk.f32.gmra.mrb[126].mxu0 %vm225_vm0, %v168_v61  ;;  %5867 = vmatprep.mubr.msk.f32.mxu1 %vm225_vm0, %v1891_v63  ;;  %v1898_v63 = vld [vmem:[%s8222_s2 + $0x438] sm:$0xff] }
 0x11c   :  { %v3689_v17 = vmax.f32 %v3505_v7, 0.0  ;;  %5565 = vmatprep.mubr.msk.f32.mxu0 %vm225_vm0, %v169_v6  ;;  %v177_v6 = vld [vmem:[%s8221_s1 + $0x440] sm:$0xff] }
 0x11d   :  { %v3688_v62 = vmax.f32 %v3504_v14, 0.0  ;;  %v5408_v19 = vpop.f32.mrb[22].mxu0  ;;  %v5710_v21 = vpop.f32.mrb[22].mxu1  ;;  %6004 = vmatprep.subr.bf16.mxu0 %v6003_v13 }
 0x11e   :  { %v3507_v23 = vmax.f32 %v5408_v19, %v5710_v21  ;;  %v954_v26 = vpop.f32.mrb[23].mxu0  ;;  %v2675_v27 = vpop.f32.mrb[23].mxu1  ;;  %6006 = vmatpush3.bf16.msra.mxu0 %v6005_v11  ;;  %5868 = vmatmul.mubr.msk.f32.gmra.mrb[128].mxu1 %vm225_vm0, %v1892_v16  ;;  %v1900_v16 = vld [vmem:[%s8222_s2 + $0x448] sm:$0xff] }
 0x11f   :  { %v6007_v30 = vpack.c.bf16 %v3689_v17, %v3688_v62  ;;  %v3506_v32 = vmax.f32 %v954_v26, %v2675_v27  ;;  %5566 = vmatmul.mubr.msk.f32.gmra.mrb[128].mxu0 %vm225_vm0, %v170_v53  ;;  %5870 = vmatprep.mubr.msk.f32.mxu1 %vm225_vm0, %v1893_v56  ;;  %v179_v62 = vld [vmem:[%s8221_s1 + $0x450] sm:$0xff]  ;;  %v1902_v27 = vld [vmem:[%s8222_s2 + $0x458] sm:$0xff] }
 0x120   :  { %v3691_v34 = vmax.f32 %v3507_v23, 0.0  ;;  %5568 = vmatprep.mubr.msk.f32.mxu0 %vm225_vm0, %v171_v22 }
 0x121   :  { %v3690_v11 = vmax.f32 %v3506_v32, 0.0  ;;  %v5411_v35 = vpop.f32.mrb[24].mxu0  ;;  %v5713_v38 = vpop.f32.mrb[24].mxu1  ;;  %6008 = vmatprep.subr.bf16.mxu0 %v6007_v30 }
 0x122   :  { %v3509_v40 = vmax.f32 %v5411_v35, %v5713_v38  ;;  %v964_v42 = vpop.f32.mrb[25].mxu0  ;;  %v2685_v43 = vpop.f32.mrb[25].mxu1  ;;  %6010 = vmatpush3.bf16.msra.mxu0 %v6009_v24  ;;  %5871 = vmatmul.mubr.msk.f32.gmra.mrb[130].mxu1 %vm225_vm0, %v1894_v33 }
 0x123   :  { %v6011_v45 = vpack.c.bf16 %v3691_v34, %v3690_v11  ;;  %v3508_v46 = vmax.f32 %v964_v42, %v2685_v43  ;;  %5569 = vmatmul.mubr.msk.f32.gmra.mrb[130].mxu0 %vm225_vm0, %v172_v2  ;;  %5873 = vmatprep.mubr.msk.f32.mxu1 %vm225_vm0, %v1895_v5  ;;  %v181_v34 = vld [vmem:[%s8221_s1 + $0x460] sm:$0xff] }
 0x124   :  { %v3693_v48 = vmax.f32 %v3509_v40, 0.0  ;;  %5571 = vmatprep.mubr.msk.f32.mxu0 %vm225_vm0, %v173_v39  ;;  %v1904_v39 = vld [vmem:[%s8222_s2 + $0x468] sm:$0xff] }
 0x125   :  { %v3692_v24 = vmax.f32 %v3508_v46, 0.0  ;;  %v5414_v49 = vpop.f32.mrb[26].mxu0  ;;  %v5716_v51 = vpop.f32.mrb[26].mxu1  ;;  %6012 = vmatprep.subr.bf16.mxu0 %v6011_v45  ;;  %v183_v45 = vld [vmem:[%s8221_s1 + $0x470] sm:$0xff] }
 0x126   :  { %v3511_v54 = vmax.f32 %v5414_v49, %v5716_v51  ;;  %v974_v57 = vpop.f32.mrb[27].mxu0  ;;  %v2695_v58 = vpop.f32.mrb[27].mxu1  ;;  %6014 = vmatpush3.bf16.msra.mxu0 %v6013_v37  ;;  %5874 = vmatmul.mubr.msk.f32.gmra.mrb[132].mxu1 %vm225_vm0, %v1896_v47 }
 0x127   :  { %v6015_v60 = vpack.c.bf16 %v3693_v48, %v3692_v24  ;;  %v3510_v61 = vmax.f32 %v974_v57, %v2695_v58  ;;  %5572 = vmatmul.mubr.msk.f32.gmra.mrb[132].mxu0 %vm225_vm0, %v174_v15  ;;  %5876 = vmatprep.mubr.msk.f32.mxu1 %vm225_vm0, %v1897_v18  ;;  %v1906_v24 = vld [vmem:[%s8222_s2 + $0x478] sm:$0xff] }
 0x128   :  { %v3695_v0 = vmax.f32 %v3511_v54, 0.0  ;;  %5574 = vmatprep.mubr.msk.f32.mxu0 %vm225_vm0, %v175_v52  ;;  %v185_v54 = vld [vmem:[%s8221_s1 + $0x480] sm:$0xff] }
 0x129   :  { %v3694_v37 = vmax.f32 %v3510_v61, 0.0  ;;  %v5417_v1 = vpop.f32.mrb[28].mxu0  ;;  %v5719_v4 = vpop.f32.mrb[28].mxu1  ;;  %6016 = vmatprep.subr.bf16.mxu0 %v6015_v60 }
 0x12a   :  { %v3513_v7 = vmax.f32 %v5417_v1, %v5719_v4  ;;  %v984_v9 = vpop.f32.mrb[29].mxu0  ;;  %v2705_v10 = vpop.f32.mrb[29].mxu1  ;;  %6018 = vmatpush3.bf16.msra.mxu0 %v6017_v50  ;;  %5877 = vmatmul.mubr.msk.f32.gmra.mrb[134].mxu1 %vm225_vm0, %v1898_v63 }
 0x12b   :  { %v6019_v13 = vpack.c.bf16 %v3695_v0, %v3694_v37  ;;  %v3512_v14 = vmax.f32 %v984_v9, %v2705_v10  ;;  %5575 = vmatmul.mubr.msk.f32.gmra.mrb[134].mxu0 %vm225_vm0, %v176_v28  ;;  %5879 = vmatprep.mubr.msk.f32.mxu1 %vm225_vm0, %v1899_v31  ;;  %v1908_v0 = vld [vmem:[%s8222_s2 + $0x488] sm:$0xff]  ;;  %v1909_v37 = vld [vmem:[%s8222_s2 + $0x490] sm:$0xff] }
 0x12c   :  { %v3697_v17 = vmax.f32 %v3513_v7, 0.0  ;;  %5577 = vmatprep.mubr.msk.f32.mxu0 %vm225_vm0, %v177_v6  ;;  %v186_v31 = vld [vmem:[%s8221_s1 + $0x488] sm:$0xff]  ;;  %v187_v7 = vld [vmem:[%s8221_s1 + $0x490] sm:$0xff] }
 0x12d   :  { %v3696_v50 = vmax.f32 %v3512_v14, 0.0  ;;  %v5420_v53 = vpop.f32.mrb[30].mxu0  ;;  %v5722_v56 = vpop.f32.mrb[30].mxu1  ;;  %6020 = vmatprep.subr.bf16.mxu0 %v6019_v13 }
 0x12e   :  { %v3515_v19 = vmax.f32 %v5420_v53, %v5722_v56  ;;  %v994_v21 = vpop.f32.mrb[31].mxu0  ;;  %v2715_v22 = vpop.f32.mrb[31].mxu1  ;;  %6022 = vmatpush3.bf16.msra.mxu0 %v6021_v3  ;;  %5880 = vmatmul.mubr.msk.f32.gmra.mrb[136].mxu1 %vm225_vm0, %v1900_v16 }
 0x12f   :  { %v6023_v23 = vpack.c.bf16 %v3697_v17, %v3696_v50  ;;  %v3514_v26 = vmax.f32 %v994_v21, %v2715_v22  ;;  %5578 = vmatmul.mubr.msk.f32.gmra.mrb[136].mxu0 %vm225_vm0, %v178_v41  ;;  %5882 = vmatprep.mubr.msk.f32.mxu1 %vm225_vm0, %v1901_v44  ;;  %v1910_v17 = vld [vmem:[%s8222_s2 + $0x498] sm:$0xff]  ;;  %v1911_v50 = vld [vmem:[%s8222_s2 + $0x4a0] sm:$0xff] }
 0x130   :  { %v3699_v30 = vmax.f32 %v3515_v19, 0.0  ;;  %5580 = vmatprep.mubr.msk.f32.mxu0 %vm225_vm0, %v179_v62  ;;  %v188_v44 = vld [vmem:[%s8221_s1 + $0x498] sm:$0xff]  ;;  %v189_v19 = vld [vmem:[%s8221_s1 + $0x4a0] sm:$0xff] }
 0x131   :  { %v3698_v3 = vmax.f32 %v3514_v26, 0.0  ;;  %v5423_v32 = vpop.f32.mrb[32].mxu0  ;;  %v5725_v33 = vpop.f32.mrb[32].mxu1  ;;  %6024 = vmatprep.subr.bf16.mxu0 %v6023_v23 }
 0x132   :  { %v3517_v2 = vmax.f32 %v5423_v32, %v5725_v33  ;;  %v1004_v5 = vpop.f32.mrb[33].mxu0  ;;  %v2725_v11 = vpop.f32.mrb[33].mxu1  ;;  %6026 = vmatpush3.bf16.msra.mxu0 %v6025_v20  ;;  %5883 = vmatmul.mubr.msk.f32.gmra.mrb[138].mxu1 %vm225_vm0, %v1902_v27 }
 0x133   :  { %v6027_v35 = vpack.c.bf16 %v3699_v30, %v3698_v3  ;;  %v3516_v38 = vmax.f32 %v1004_v5, %v2725_v11  ;;  %5581 = vmatmul.mubr.msk.f32.gmra.mrb[138].mxu0 %vm225_vm0, %v180_v55  ;;  %5885 = vmatprep.mubr.msk.f32.mxu1 %vm225_vm0, %v1903_v59  ;;  %v1912_v30 = vld [vmem:[%s8222_s2 + $0x4a8] sm:$0xff]  ;;  %v1913_v3 = vld [vmem:[%s8222_s2 + $0x4b0] sm:$0xff] }
 0x134   :  { %v7483_v40 = vmax.f32 %v3517_v2, 0.0  ;;  %5583 = vmatprep.mubr.msk.f32.mxu0 %vm225_vm0, %v181_v34  ;;  %v190_v59 = vld [vmem:[%s8221_s1 + $0x4a8] sm:$0xff]  ;;  %v191_v2 = vld [vmem:[%s8221_s1 + $0x4b0] sm:$0xff] }
 0x135   :  { %v7492_v20 = vmax.f32 %v3516_v38, 0.0  ;;  %v5426_v42 = vpop.f32.mrb[34].mxu0  ;;  %v5728_v43 = vpop.f32.mrb[34].mxu1  ;;  %6028 = vmatprep.subr.bf16.mxu0 %v6027_v35 }
 0x136   :  { %v3519_v46 = vmax.f32 %v5426_v42, %v5728_v43  ;;  %v1014_v47 = vpop.f32.mrb[35].mxu0  ;;  %v2735_v48 = vpop.f32.mrb[35].mxu1  ;;  %6030 = vmatpush3.bf16.msra.mxu0 %v6029_v36  ;;  %5886 = vmatmul.mubr.msk.f32.gmra.mrb[140].mxu1 %vm225_vm0, %v1904_v39  ;;  %v192_v42 = vld [vmem:[%s8221_s1 + $0x4b8] sm:$0xff]  ;;  %v1915_v43 = vld [vmem:[%s8222_s2 + $0x4c0] sm:$0xff] }
 0x137   :  { %v6033_v15 = vpack.c.bf16 %v7483_v40, %v7492_v20  ;;  %v3518_v18 = vmax.f32 %v1014_v47, %v2735_v48  ;;  %5584 = vmatmul.mubr.msk.f32.gmra.mrb[140].mxu0 %vm225_vm0, %v182_v8  ;;  %5888 = vmatprep.mubr.msk.f32.mxu1 %vm225_vm0, %v1905_v12  ;;  %v1914_v8 = vld [vmem:[%s8222_s2 + $0x4b8] sm:$0xff]  ;;  %v193_v48 = vld [vmem:[%s8221_s1 + $0x4c0] sm:$0xff]  ;;  %v1924_v40 = vld [vmem:[%s8222_s2 + $0x508] sm:$0xff] }
 0x138   :  { %v7508_v49 = vmax.f32 %v3519_v46, 0.0  ;;  %5586 = vmatprep.mubr.msk.f32.mxu0 %vm225_vm0, %v183_v45 }
 0x139   :  { %v7517_v36 = vmax.f32 %v3518_v18, 0.0  ;;  %v5429_v51 = vpop.f32.mrb[36].mxu0  ;;  %v5731_v52 = vpop.f32.mrb[36].mxu1 }
 0x13a   :  { %v3521_v57 = vmax.f32 %v5429_v51, %v5731_v52  ;;  %v1024_v58 = vpop.f32.mrb[37].mxu0  ;;  %v2745_v60 = vpop.f32.mrb[37].mxu1  ;;  %5889 = vmatmul.mubr.msk.f32.gmra.mrb[142].mxu1 %vm225_vm0, %v1906_v24  ;;  %v1916_v52 = vld [vmem:[%s8222_s2 + $0x4c8] sm:$0xff] }
 0x13b   :  { %v6037_v61 = vpack.c.bf16 %v7508_v49, %v7517_v36  ;;  %v3520_v63 = vmax.f32 %v1024_v58, %v2745_v60  ;;  %5587 = vmatmul.mubr.msk.f32.gmra.mrb[142].mxu0 %vm225_vm0, %v184_v25  ;;  %5891 = vmatprep.mubr.msk.f32.mxu1 %vm225_vm0, %v1907_v29  ;;  %v1917_v58 = vld [vmem:[%s8222_s2 + $0x4d0] sm:$0xff]  ;;  %v1926_v49 = vld [vmem:[%s8222_s2 + $0x518] sm:$0xff] }
 0x13c   :  { %v7530_v28 = vmax.f32 %v3521_v57, 0.0  ;;  %5589 = vmatprep.mubr.msk.f32.mxu0 %vm225_vm0, %v185_v54  ;;  %v194_v57 = vld [vmem:[%s8221_s1 + $0x4c8] sm:$0xff] }
 0x13d   :  { %v7539_v1 = vmax.f32 %v3520_v63, 0.0  ;;  %v5432_v4 = vpop.f32.mrb[38].mxu0  ;;  %v5734_v6 = vpop.f32.mrb[38].mxu1 }
 0x13e   :  { %v3523_v9 = vmax.f32 %v5432_v4, %v5734_v6  ;;  %v1034_v10 = vpop.f32.mrb[39].mxu0  ;;  %v2755_v13 = vpop.f32.mrb[39].mxu1  ;;  %5892 = vmatmul.mubr.msk.f32.gmra.mrb[144].mxu1 %vm225_vm0, %v1908_v0 }
 0x13f   :  { %v6041_v14 = vpack.c.bf16 %v7530_v28, %v7539_v1  ;;  %v3522_v16 = vmax.f32 %v1034_v10, %v2755_v13  ;;  %5590 = vmatmul.mubr.msk.f32.gmra.mrb[144].mxu0 %vm225_vm0, %v186_v31  ;;  %5894 = vmatprep.mubr.msk.f32.mxu1 %vm225_vm0, %v1909_v37  ;;  %v195_v31 = vld [vmem:[%s8221_s1 + $0x4d0] sm:$0xff]  ;;  %v1918_v10 = vld [vmem:[%s8222_s2 + $0x4d8] sm:$0xff]  ;;  %v1928_v28 = vld [vmem:[%s8222_s2 + $0x528] sm:$0xff] }
 0x140   :  { %v7552_v41 = vmax.f32 %v3523_v9, 0.0  ;;  %5592 = vmatprep.mubr.msk.f32.mxu0 %vm225_vm0, %v187_v7 }
 0x141   :  { %v7561_v53 = vmax.f32 %v3522_v16, 0.0  ;;  %v5435_v56 = vpop.f32.mrb[40].mxu0  ;;  %v5737_v62 = vpop.f32.mrb[40].mxu1  ;;  %v196_v16 = vld [vmem:[%s8221_s1 + $0x4d8] sm:$0xff] }
 0x142   :  { %v3525_v21 = vmax.f32 %v5435_v56, %v5737_v62  ;;  %v1044_v22 = vpop.f32.mrb[41].mxu0  ;;  %v2765_v23 = vpop.f32.mrb[41].mxu1  ;;  %5895 = vmatmul.mubr.msk.f32.gmra.mrb[146].mxu1 %vm225_vm0, %v1910_v17  ;;  %v1919_v17 = vld [vmem:[%s8222_s2 + $0x4e0] sm:$0xff] }
 0x143   :  { %v6045_v26 = vpack.c.bf16 %v7552_v41, %v7561_v53  ;;  %v3524_v27 = vmax.f32 %v1044_v22, %v2765_v23  ;;  %5593 = vmatmul.mubr.msk.f32.gmra.mrb[146].mxu0 %vm225_vm0, %v188_v44  ;;  %5897 = vmatprep.mubr.msk.f32.mxu1 %vm225_vm0, %v1911_v50  ;;  %v197_v62 = vld [vmem:[%s8221_s1 + $0x4e0] sm:$0xff]  ;;  %v1930_v41 = vld [vmem:[%s8222_s2 + $0x538] sm:$0xff] }
 0x144   :  { %v7574_v55 = vmax.f32 %v3525_v21, 0.0  ;;  %5595 = vmatprep.mubr.msk.f32.mxu0 %vm225_vm0, %v189_v19 }
 0x145   :  { %v7583_v32 = vmax.f32 %v3524_v27, 0.0  ;;  %v5438_v33 = vpop.f32.mrb[42].mxu0  ;;  %v5740_v34 = vpop.f32.mrb[42].mxu1 }
 0x146   :  { %v3527_v5 = vmax.f32 %v5438_v33, %v5740_v34  ;;  %v1054_v11 = vpop.f32.mrb[43].mxu0  ;;  %v2775_v35 = vpop.f32.mrb[43].mxu1  ;;  %5898 = vmatmul.mubr.msk.f32.gmra.mrb[148].mxu1 %vm225_vm0, %v1912_v30  ;;  %v1920_v30 = vld [vmem:[%s8222_s2 + $0x4e8] sm:$0xff]  ;;  %v1921_v33 = vld [vmem:[%s8222_s2 + $0x4f0] sm:$0xff] }
 0x147   :  { %v6049_v38 = vpack.c.bf16 %v7574_v55, %v7583_v32  ;;  %v3526_v39 = vmax.f32 %v1054_v11, %v2775_v35  ;;  %5596 = vmatmul.mubr.msk.f32.gmra.mrb[148].mxu0 %vm225_vm0, %v190_v59  ;;  %5900 = vmatprep.mubr.msk.f32.mxu1 %vm225_vm0, %v1913_v3  ;;  %v198_v3 = vld [vmem:[%s8221_s1 + $0x4e8] sm:$0xff]  ;;  %v199_v11 = vld [vmem:[%s8221_s1 + $0x4f0] sm:$0xff] }
 0x148   :  { %v7596_v12 = vmax.f32 %v3527_v5, 0.0  ;;  %5598 = vmatprep.mubr.msk.f32.mxu0 %vm225_vm0, %v191_v2  ;;  %v1932_v55 = vld [vmem:[%s8222_s2 + $0x548] sm:$0xff] }
 0x149   :  { %v7605_v45 = vmax.f32 %v3526_v39, 0.0  ;;  %v5441_v46 = vpop.f32.mrb[44].mxu0  ;;  %v5743_v47 = vpop.f32.mrb[44].mxu1 }
 0x14a   :  { %v3529_v18 = vmax.f32 %v5441_v46, %v5743_v47  ;;  %v1064_v24 = vpop.f32.mrb[45].mxu0  ;;  %v2785_v25 = vpop.f32.mrb[45].mxu1  ;;  %5901 = vmatmul.mubr.msk.f32.gmra.mrb[150].mxu1 %vm225_vm0, %v1914_v8  ;;  %v200_v47 = vld [vmem:[%s8221_s1 + $0x4f8] sm:$0xff] }
 0x14b   :  { %v6053_v29 = vpack.c.bf16 %v7596_v12, %v7605_v45  ;;  %v3528_v51 = vmax.f32 %v1064_v24, %v2785_v25  ;;  %5599 = vmatmul.mubr.msk.f32.gmra.mrb[150].mxu0 %vm225_vm0, %v192_v42  ;;  %5903 = vmatprep.mubr.msk.f32.mxu1 %vm225_vm0, %v1915_v43  ;;  %v1934_v12 = vld [vmem:[%s8222_s2 + $0x558] sm:$0xff] }
 0x14c   :  { %v7618_v54 = vmax.f32 %v3529_v18, 0.0  ;;  %5601 = vmatprep.mubr.msk.f32.mxu0 %vm225_vm0, %v193_v48  ;;  %v1922_v48 = vld [vmem:[%s8222_s2 + $0x4f8] sm:$0xff] }
 0x14d   :  { %v7627_v60 = vmax.f32 %v3528_v51, 0.0  ;;  %v5444_v63 = vpop.f32.mrb[46].mxu0  ;;  %v5746_v0 = vpop.f32.mrb[46].mxu1  ;;  %v201_v51 = vld [vmem:[%s8221_s1 + $0x500] sm:$0xff] }
 0x14e   :  { %v3531_v37 = vmax.f32 %v5444_v63, %v5746_v0  ;;  %v1074_v4 = vpop.f32.mrb[47].mxu0  ;;  %v2795_v6 = vpop.f32.mrb[47].mxu1  ;;  %5904 = vmatmul.mubr.msk.f32.gmra.mrb[152].mxu1 %vm225_vm0, %v1916_v52  ;;  %v1923_v52 = vld [vmem:[%s8222_s2 + $0x500] sm:$0xff] }
 0x14f   :  { %v6057_v7 = vpack.c.bf16 %v7618_v54, %v7627_v60  ;;  %v3530_v9 = vmax.f32 %v1074_v4, %v2795_v6  ;;  %5602 = vmatmul.mubr.msk.f32.gmra.mrb[152].mxu0 %vm225_vm0, %v194_v57  ;;  %5906 = vmatprep.mubr.msk.f32.mxu1 %vm225_vm0, %v1917_v58  ;;  %v202_v4 = vld [vmem:[%s8221_s1 + $0x508] sm:$0xff] }
 0x150   :  { %v7640_v13 = vmax.f32 %v3531_v37, 0.0  ;;  %5604 = vmatprep.mubr.msk.f32.mxu0 %vm225_vm0, %v195_v31  ;;  %v1936_v54 = vld [vmem:[%s8222_s2 + $0x568] sm:$0xff] }
 0x151   :  { %v7649_v44 = vmax.f32 %v3530_v9, 0.0  ;;  %v5447_v50 = vpop.f32.mrb[48].mxu0  ;;  %v5749_v56 = vpop.f32.mrb[48].mxu1  ;;  %v203_v9 = vld [vmem:[%s8221_s1 + $0x510] sm:$0xff] }
 0x152   :  { %v3533_v19 = vmax.f32 %v5447_v50, %v5749_v56  ;;  %v1084_v21 = vpop.f32.mrb[49].mxu0  ;;  %v2805_v22 = vpop.f32.mrb[49].mxu1  ;;  %5907 = vmatmul.mubr.msk.f32.gmra.mrb[154].mxu1 %vm225_vm0, %v1918_v10  ;;  %v1925_v10 = vld [vmem:[%s8222_s2 + $0x510] sm:$0xff] }
 0x153   :  { %v6061_v23 = vpack.c.bf16 %v7640_v13, %v7649_v44  ;;  %v3532_v27 = vmax.f32 %v1084_v21, %v2805_v22  ;;  %5605 = vmatmul.mubr.msk.f32.gmra.mrb[154].mxu0 %vm225_vm0, %v196_v16  ;;  %5909 = vmatprep.mubr.msk.f32.mxu1 %vm225_vm0, %v1919_v17  ;;  %v204_v21 = vld [vmem:[%s8221_s1 + $0x518] sm:$0xff] }
 0x154   :  { %v3717_v59 = vmax.f32 %v3533_v19, 0.0  ;;  %5607 = vmatprep.mubr.msk.f32.mxu0 %vm225_vm0, %v197_v62  ;;  %v216_v13 = vld [vmem:[%s8221_s1 + $0x578] sm:$0xff] }
 0x155   :  { %v3716_v34 = vmax.f32 %v3532_v27, 0.0  ;;  %v5450_v2 = vpop.f32.mrb[50].mxu0  ;;  %v5752_v5 = vpop.f32.mrb[50].mxu1  ;;  %v205_v27 = vld [vmem:[%s8221_s1 + $0x520] sm:$0xff]  ;;  %v1938_v44 = vld [vmem:[%s8222_s2 + $0x578] sm:$0xff] }
 0x156   :  { %v3535_v35 = vmax.f32 %v5450_v2, %v5752_v5  ;;  %v1094_v39 = vpop.f32.mrb[51].mxu0  ;;  %v2815_v8 = vpop.f32.mrb[51].mxu1  ;;  %5910 = vmatmul.mubr.msk.f32.gmra.mrb[156].mxu1 %vm225_vm0, %v1920_v30  ;;  %v1927_v30 = vld [vmem:[%s8222_s2 + $0x520] sm:$0xff] }
 0x157   :  { %v6031_v42 = vpack.c.bf16 %v3717_v59, %v3716_v34  ;;  %v3534_v43 = vmax.f32 %v1094_v39, %v2815_v8  ;;  %5608 = vmatmul.mubr.msk.f32.gmra.mrb[156].mxu0 %vm225_vm0, %v198_v3  ;;  %5912 = vmatprep.mubr.msk.f32.mxu1 %vm225_vm0, %v1921_v33  ;;  %v207_v39 = vld [vmem:[%s8221_s1 + $0x530] sm:$0xff] }
 0x158   :  { %v3719_v46 = vmax.f32 %v3535_v35, 0.0  ;;  %5610 = vmatprep.mubr.msk.f32.mxu0 %vm225_vm0, %v199_v11  ;;  %v206_v11 = vld [vmem:[%s8221_s1 + $0x528] sm:$0xff]  ;;  %v1929_v8 = vld [vmem:[%s8222_s2 + $0x530] sm:$0xff] }
 0x159   :  { %v3718_v18 = vmax.f32 %v3534_v43, 0.0  ;;  %v5453_v24 = vpop.f32.mrb[52].mxu0  ;;  %v5755_v25 = vpop.f32.mrb[52].mxu1  ;;  %6032 = vmatprep.subr.bf16.mxu1 %v6031_v42 }
 0x15a   :  { %v3537_v57 = vmax.f32 %v5453_v24, %v5755_v25  ;;  %v1104_v58 = vpop.f32.mrb[53].mxu0  ;;  %v2825_v63 = vpop.f32.mrb[53].mxu1  ;;  %6034 = vmatpush3.bf16.msra.mxu1 %v6033_v15  ;;  %v208_v24 = vld [vmem:[%s8221_s1 + $0x538] sm:$0xff] }
 0x15b   :  { %v6035_v0 = vpack.c.bf16 %v3719_v46, %v3718_v18  ;;  %v3536_v31 = vmax.f32 %v1104_v58, %v2825_v63  ;;  %5611 = vmatmul.mubr.msk.f32.gmra.mrb[158].mxu0 %vm225_vm0, %v200_v47  ;;  %5913 = vmatmul.mubr.msk.f32.gmra.mrb[158].mxu1 %vm225_vm0, %v1922_v48 }
 0x15c   :  { %v3721_v37 = vmax.f32 %v3537_v57, 0.0  ;;  %5613 = vmatprep.mubr.msk.f32.mxu0 %vm225_vm0, %v201_v51  ;;  %5915 = vmatprep.mubr.msk.f32.mxu1 %vm225_vm0, %v1923_v52  ;;  %v209_v51 = vld [vmem:[%s8221_s1 + $0x540] sm:$0xff] }
 0x15d   :  { %v3720_v20 = vmax.f32 %v3536_v31, 0.0  ;;  %v5456_v15 = vpop.f32.mrb[54].mxu0  ;;  %v5758_v6 = vpop.f32.mrb[54].mxu1  ;;  %6036 = vmatprep.subr.bf16.mxu1 %v6035_v0  ;;  %v1931_v52 = vld [vmem:[%s8222_s2 + $0x540] sm:$0xff] }
 0x15e   :  { %v3539_v16 = vmax.f32 %v5456_v15, %v5758_v6  ;;  %v1114_v17 = vpop.f32.mrb[55].mxu0  ;;  %v2835_v50 = vpop.f32.mrb[55].mxu1  ;;  %6038 = vmatpush3.bf16.msra.mxu1 %v6037_v61  ;;  %v1933_v15 = vld [vmem:[%s8222_s2 + $0x550] sm:$0xff] }
 0x15f   :  { %v6039_v56 = vpack.c.bf16 %v3721_v37, %v3720_v20  ;;  %v3538_v62 = vmax.f32 %v1114_v17, %v2835_v50  ;;  %5614 = vmatmul.mubr.msk.f32.gmra.mrb[160].mxu0 %vm225_vm0, %v202_v4  ;;  %5916 = vmatmul.mubr.msk.f32.gmra.mrb[160].mxu1 %vm225_vm0, %v1924_v40  ;;  %v210_v4 = vld [vmem:[%s8221_s1 + $0x548] sm:$0xff]  ;;  %v211_v20 = vld [vmem:[%s8221_s1 + $0x550] sm:$0xff] }
 0x160   :  { %v3723_v19 = vmax.f32 %v3539_v16, 0.0  ;;  %5616 = vmatprep.mubr.msk.f32.mxu0 %vm225_vm0, %v203_v9  ;;  %5918 = vmatprep.mubr.msk.f32.mxu1 %vm225_vm0, %v1925_v10 }
 0x161   :  { %v3722_v36 = vmax.f32 %v3538_v62, 0.0  ;;  %v5459_v61 = vpop.f32.mrb[56].mxu0  ;;  %v5761_v22 = vpop.f32.mrb[56].mxu1  ;;  %6040 = vmatprep.subr.bf16.mxu1 %v6039_v56  ;;  %v212_v56 = vld [vmem:[%s8221_s1 + $0x558] sm:$0xff]  ;;  %v1935_v62 = vld [vmem:[%s8222_s2 + $0x560] sm:$0xff] }
 0x162   :  { %v3541_v59 = vmax.f32 %v5459_v61, %v5761_v22  ;;  %v1124_v3 = vpop.f32.mrb[57].mxu0  ;;  %v2845_v33 = vpop.f32.mrb[57].mxu1  ;;  %6042 = vmatpush3.bf16.msra.mxu1 %v6041_v14 }
 0x163   :  { %v6043_v34 = vpack.c.bf16 %v3723_v19, %v3722_v36  ;;  %v3540_v2 = vmax.f32 %v1124_v3, %v2845_v33  ;;  %5617 = vmatmul.mubr.msk.f32.gmra.mrb[162].mxu0 %vm225_vm0, %v204_v21  ;;  %5919 = vmatmul.mubr.msk.f32.gmra.mrb[162].mxu1 %vm225_vm0, %v1926_v49 }
 0x164   :  { %v3725_v5 = vmax.f32 %v3541_v59, 0.0  ;;  %5619 = vmatprep.mubr.msk.f32.mxu0 %vm225_vm0, %v205_v27  ;;  %5921 = vmatprep.mubr.msk.f32.mxu1 %vm225_vm0, %v1927_v30  ;;  %v214_v30 = vld [vmem:[%s8221_s1 + $0x568] sm:$0xff]  ;;  %v1937_v59 = vld [vmem:[%s8222_s2 + $0x570] sm:$0xff] }
 0x165   :  { %v3724_v1 = vmax.f32 %v3540_v2, 0.0  ;;  %v5462_v14 = vpop.f32.mrb[58].mxu0  ;;  %v5764_v35 = vpop.f32.mrb[58].mxu1  ;;  %6044 = vmatprep.subr.bf16.mxu1 %v6043_v34 }
 0x166   :  { %v3543_v42 = vmax.f32 %v5462_v14, %v5764_v35  ;;  %v1134_v43 = vpop.f32.mrb[59].mxu0  ;;  %v2855_v46 = vpop.f32.mrb[59].mxu1  ;;  %6046 = vmatpush3.bf16.msra.mxu1 %v6045_v26  ;;  %v217_v14 = vld [vmem:[%s8221_s1 + $0x580] sm:$0xff] }
 0x167   :  { %v6047_v47 = vpack.c.bf16 %v3725_v5, %v3724_v1  ;;  %v3542_v48 = vmax.f32 %v1134_v43, %v2855_v46  ;;  %5620 = vmatmul.mubr.msk.f32.gmra.mrb[164].mxu0 %vm225_vm0, %v206_v11  ;;  %5922 = vmatmul.mubr.msk.f32.gmra.mrb[164].mxu1 %vm225_vm0, %v1928_v28  ;;  %v1939_v35 = vld [vmem:[%s8222_s2 + $0x580] sm:$0xff] }
 0x168   :  { %v3727_v18 = vmax.f32 %v3543_v42, 0.0  ;;  %5622 = vmatprep.mubr.msk.f32.mxu0 %vm225_vm0, %v207_v39  ;;  %5924 = vmatprep.mubr.msk.f32.mxu1 %vm225_vm0, %v1929_v8 }
 0x169   :  { %v3726_v53 = vmax.f32 %v3542_v48, 0.0  ;;  %v5465_v26 = vpop.f32.mrb[60].mxu0  ;;  %v5767_v25 = vpop.f32.mrb[60].mxu1  ;;  %6048 = vmatprep.subr.bf16.mxu1 %v6047_v47 }
 0x16a   :  { %v3545_v57 = vmax.f32 %v5465_v26, %v5767_v25  ;;  %v1144_v58 = vpop.f32.mrb[61].mxu0  ;;  %v2865_v63 = vpop.f32.mrb[61].mxu1  ;;  %6050 = vmatpush3.bf16.msra.mxu1 %v6049_v38  ;;  %v219_v26 = vld [vmem:[%s8221_s1 + $0x590] sm:$0xff] }
 0x16b   :  { %v6051_v0 = vpack.c.bf16 %v3727_v18, %v3726_v53  ;;  %v3544_v31 = vmax.f32 %v1144_v58, %v2865_v63  ;;  %5623 = vmatmul.mubr.msk.f32.gmra.mrb[166].mxu0 %vm225_vm0, %v208_v24  ;;  %5925 = vmatmul.mubr.msk.f32.gmra.mrb[166].mxu1 %vm225_vm0, %v1930_v41  ;;  %v218_v24 = vld [vmem:[%s8221_s1 + $0x588] sm:$0xff]  ;;  %v1941_v25 = vld [vmem:[%s8222_s2 + $0x590] sm:$0xff] }
 0x16c   :  { %v3729_v37 = vmax.f32 %v3545_v57, 0.0  ;;  %5625 = vmatprep.mubr.msk.f32.mxu0 %vm225_vm0, %v209_v51  ;;  %5927 = vmatprep.mubr.msk.f32.mxu1 %vm225_vm0, %v1931_v52  ;;  %v1940_v41 = vld [vmem:[%s8222_s2 + $0x588] sm:$0xff] }
 0x16d   :  { %v3728_v32 = vmax.f32 %v3544_v31, 0.0  ;;  %v5468_v38 = vpop.f32.mrb[62].mxu0  ;;  %v5770_v40 = vpop.f32.mrb[62].mxu1  ;;  %6052 = vmatprep.subr.bf16.mxu1 %v6051_v0 }
 0x16e   :  { %v3547_v6 = vmax.f32 %v5468_v38, %v5770_v40  ;;  %v1154_v9 = vpop.f32.mrb[63].mxu0  ;;  %v2875_v10 = vpop.f32.mrb[63].mxu1  ;;  %6054 = vmatpush3.bf16.msra.mxu1 %v6053_v29  ;;  %v213_v29 = vld [vmem:[%s8221_s1 + $0x560] sm:$0xff] }
 0x16f   :  { %v6055_v16 = vpack.c.bf16 %v3729_v37, %v3728_v32  ;;  %v3546_v17 = vmax.f32 %v1154_v9, %v2875_v10  ;;  %5626 = vmatmul.mubr.msk.f32.gmra.mrb[168].mxu0 %vm225_vm0, %v210_v4  ;;  %5928 = vmatmul.mubr.msk.f32.gmra.mrb[168].mxu1 %vm225_vm0, %v1932_v55  ;;  %v220_v4 = vld [vmem:[%s8221_s1 + $0x598] sm:$0xff]  ;;  %v221_v38 = vld [vmem:[%s8221_s1 + $0x5a0] sm:$0xff] }
 0x170   :  { %v3731_v50 = vmax.f32 %v3547_v6, 0.0  ;;  %5628 = vmatprep.mubr.msk.f32.mxu0 %vm225_vm0, %v211_v20  ;;  %5930 = vmatprep.mubr.msk.f32.mxu1 %vm225_vm0, %v1933_v15  ;;  %v1942_v55 = vld [vmem:[%s8222_s2 + $0x598] sm:$0xff]  ;;  %v1943_v40 = vld [vmem:[%s8222_s2 + $0x5a0] sm:$0xff] }
 0x171   :  { %v3730_v45 = vmax.f32 %v3546_v17, 0.0  ;;  %6056 = vmatprep.subr.bf16.mxu1 %v6055_v16  ;;  %v5471_v19 = vpop.f32.mrb[64].mxu0  ;;  %v5773_v21 = vpop.f32.mrb[64].mxu1 }
 0x172   :  { %6058 = vmatpush3.bf16.msra.mxu1 %v6057_v7  ;;  %v3549_v49 = vmax.f32 %v5471_v19, %v5773_v21  ;;  %v1164_v36 = vpop.f32.mrb[65].mxu0  ;;  %v2885_v61 = vpop.f32.mrb[65].mxu1  ;;  %v215_v7 = vld [vmem:[%s8221_s1 + $0x570] sm:$0xff] }
 0x173   :  { %v6059_v22 = vpack.c.bf16 %v3731_v50, %v3730_v45  ;;  %5629 = vmatmul.mubr.msk.f32.gmra.mrb[170].mxu0 %vm225_vm0, %v212_v56  ;;  %5931 = vmatmul.mubr.msk.f32.gmra.mrb[170].mxu1 %vm225_vm0, %v1934_v12  ;;  %v3548_v27 = vmax.f32 %v1164_v36, %v2885_v61  ;;  %v222_v56 = vld [vmem:[%s8221_s1 + $0x5a8] sm:$0xff] }
 0x174   :  { %5631 = vmatprep.mubr.msk.f32.mxu0 %vm225_vm0, %v213_v29  ;;  %5933 = vmatprep.mubr.msk.f32.mxu1 %vm225_vm0, %v1935_v62  ;;  %v7815_v60 = vmax.f32 %v3549_v49, 0.0  ;;  %v1944_v12 = vld [vmem:[%s8222_s2 + $0x5a8] sm:$0xff]  ;;  %v223_v29 = vld [vmem:[%s8221_s1 + $0x5b0] sm:$0xff] }
 0x175   :  { %6060 = vmatprep.subr.bf16.mxu1 %v6059_v22  ;;  %v7823_v3 = vmax.f32 %v3548_v27, 0.0  ;;  %v5474_v33 = vpop.f32.mrb[66].mxu0  ;;  %v5776_v34 = vpop.f32.mrb[66].mxu1  ;;  %v1945_v62 = vld [vmem:[%s8222_s2 + $0x5b0] sm:$0xff] }
 0x176   :  { %6062 = vmatpush3.bf16.msra.mxu1 %v6061_v23  ;;  %v3551_v2 = vmax.f32 %v5474_v33, %v5776_v34  ;;  %v1174_v5 = vpop.f32.mrb[67].mxu0  ;;  %v2895_v11 = vpop.f32.mrb[67].mxu1 }
 0x177   :  { %5632 = vmatmul.mubr.msk.f32.gmra.mrb[172].mxu0 %vm225_vm0, %v214_v30  ;;  %5934 = vmatmul.mubr.msk.f32.gmra.mrb[172].mxu1 %vm225_vm0, %v1936_v54  ;;  %v6065_v28 = vpack.c.bf16 %v7815_v60, %v7823_v3  ;;  %v3550_v1 = vmax.f32 %v1174_v5, %v2895_v11  ;;  %v224_v54 = vld [vmem:[%s8221_s1 + $0x5b8] sm:$0xff]  ;;  %v3853_v5 = vld [vmem:[%s8223_s3 + $0x8] sm:$0xff] }
 0x178   :  { %5634 = vmatprep.mubr.msk.f32.mxu0 %vm225_vm0, %v215_v7  ;;  %5936 = vmatprep.mubr.msk.f32.mxu1 %vm225_vm0, %v1937_v59  ;;  %v7840_v23 = vmax.f32 %v3551_v2, 0.0  ;;  %v1946_v7 = vld [vmem:[%s8222_s2 + $0x5b8] sm:$0xff] }
 0x179   :  { %v7848_v39 = vmax.f32 %v3550_v1, 0.0  ;;  %v5477_v8 = vpop.f32.mrb[68].mxu0  ;;  %v5779_v42 = vpop.f32.mrb[68].mxu1  ;;  %v3855_v11 = vld [vmem:[%s8223_s3 + $0x18] sm:$0xff] }
 0x17a   :  { %v3553_v43 = vmax.f32 %v5477_v8, %v5779_v42  ;;  %v1184_v46 = vpop.f32.mrb[69].mxu0  ;;  %v2905_v47 = vpop.f32.mrb[69].mxu1  ;;  %v3852_v42 = vld [vmem:[%s8223_s3] sm:$0xff] }
 0x17b   :  { %5635 = vmatmul.mubr.msk.f32.gmra.mrb[174].mxu0 %vm225_vm0, %v216_v13  ;;  %5937 = vmatmul.mubr.msk.f32.gmra.mrb[174].mxu1 %vm225_vm0, %v1938_v44  ;;  %v6069_v48 = vpack.c.bf16 %v7840_v23, %v7848_v39  ;;  %v3552_v18 = vmax.f32 %v1184_v46, %v2905_v47 }
 0x17c   :  { %5637 = vmatprep.mubr.msk.f32.mxu0 %vm225_vm0, %v217_v14  ;;  %5939 = vmatprep.mubr.msk.f32.mxu1 %vm225_vm0, %v1939_v35  ;;  %v7862_v53 = vmax.f32 %v3553_v43, 0.0  ;;  %v3854_v43 = vld [vmem:[%s8223_s3 + $0x10] sm:$0xff] }
 0x17d   :  { %v7870_v51 = vmax.f32 %v3552_v18, 0.0  ;;  %v5480_v52 = vpop.f32.mrb[70].mxu0  ;;  %v5782_v57 = vpop.f32.mrb[70].mxu1 }
 0x17e   :  { %v3555_v58 = vmax.f32 %v5480_v52, %v5782_v57  ;;  %v1194_v63 = vpop.f32.mrb[71].mxu0  ;;  %v2915_v0 = vpop.f32.mrb[71].mxu1 }
 0x17f   :  { %5638 = vmatmul.mubr.msk.f32.gmra.mrb[176].mxu0 %vm225_vm0, %v218_v24  ;;  %5940 = vmatmul.mubr.msk.f32.gmra.mrb[176].mxu1 %vm225_vm0, %v1940_v41  ;;  %v6073_v31 = vpack.c.bf16 %v7862_v53, %v7870_v51  ;;  %v3554_v37 = vmax.f32 %v1194_v63, %v2915_v0 }
 0x180   :  { %5640 = vmatprep.mubr.msk.f32.mxu0 %vm225_vm0, %v219_v26  ;;  %5942 = vmatprep.mubr.msk.f32.mxu1 %vm225_vm0, %v1941_v25  ;;  %v7884_v32 = vmax.f32 %v3555_v58, 0.0 }
 0x181   :  { %v7892_v20 = vmax.f32 %v3554_v37, 0.0  ;;  %v5483_v15 = vpop.f32.mrb[72].mxu0  ;;  %v5785_v6 = vpop.f32.mrb[72].mxu1 }
 0x182   :  { %v3557_v9 = vmax.f32 %v5483_v15, %v5785_v6  ;;  %v1204_v10 = vpop.f32.mrb[73].mxu0  ;;  %v2925_v16 = vpop.f32.mrb[73].mxu1 }
 0x183   :  { %5641 = vmatmul.mubr.msk.f32.gmra.mrb[178].mxu0 %vm225_vm0, %v220_v4  ;;  %5943 = vmatmul.mubr.msk.f32.gmra.mrb[178].mxu1 %vm225_vm0, %v1942_v55  ;;  %v6077_v17 = vpack.c.bf16 %v7884_v32, %v7892_v20  ;;  %v3556_v50 = vmax.f32 %v1204_v10, %v2925_v16  ;;  %v3865_v16 = vld [vmem:[%s8223_s3 + $0x68] sm:$0x3] }
 0x184   :  { %5643 = vmatprep.mubr.msk.f32.mxu0 %vm225_vm0, %v221_v38  ;;  %5945 = vmatprep.mubr.msk.f32.mxu1 %vm225_vm0, %v1943_v40  ;;  %v7906_v45 = vmax.f32 %v3557_v9, 0.0 }
 0x185   :  { %v7914_v19 = vmax.f32 %v3556_v50, 0.0  ;;  %v5486_v21 = vpop.f32.mrb[74].mxu0  ;;  %v5788_v49 = vpop.f32.mrb[74].mxu1 }
 0x186   :  { %v3559_v36 = vmax.f32 %v5486_v21, %v5788_v49  ;;  %v1214_v61 = vpop.f32.mrb[75].mxu0  ;;  %v2935_v22 = vpop.f32.mrb[75].mxu1  ;;  %v3867_v49 = vld [vmem:[%s8223_s3 + $0x78] sm:$0x3] }
 0x187   :  { %5644 = vmatmul.mubr.msk.f32.gmra.mrb[180].mxu0 %vm225_vm0, %v222_v56  ;;  %5946 = vmatmul.mubr.msk.f32.gmra.mrb[180].mxu1 %vm225_vm0, %v1944_v12  ;;  %v6081_v27 = vpack.c.bf16 %v7906_v45, %v7914_v19  ;;  %v3558_v30 = vmax.f32 %v1214_v61, %v2935_v22  ;;  %v3866_v61 = vld [vmem:[%s8223_s3 + $0x70] sm:$0x3] }
 0x188   :  { %5646 = vmatprep.mubr.msk.f32.mxu0 %vm225_vm0, %v223_v29  ;;  %5948 = vmatprep.mubr.msk.f32.mxu1 %vm225_vm0, %v1945_v62  ;;  %v7928_v59 = vmax.f32 %v3559_v36, 0.0  ;;  %v3864_v29 = vld [vmem:[%s8223_s3 + $0x60] sm:$0x3] }
 0x189   :  { %v7930_v33 = vmax.f32 %v3558_v30, 0.0  ;;  %v5489_v34 = vpop.f32.mrb[76].mxu0  ;;  %v5791_v2 = vpop.f32.mrb[76].mxu1 }
 0x18a   :  { %v3561_v1 = vmax.f32 %v5489_v34, %v5791_v2  ;;  %v1224_v13 = vpop.f32.mrb[77].mxu0  ;;  %v2945_v44 = vpop.f32.mrb[77].mxu1 }
 0x18b   :  { %5647 = vmatmul.mubr.msk.f32.gmra.mrb[182].mxu0 %vm225_vm0, %v224_v54  ;;  %5949 = vmatmul.mubr.msk.f32.gmra.mrb[182].mxu1 %vm225_vm0, %v1946_v7  ;;  %v6085_v14 = vpack.c.bf16 %v7928_v59, %v7930_v33  ;;  %v3560_v35 = vmax.f32 %v1224_v13, %v2945_v44  ;;  %v3857_v7 = vld [vmem:[%s8223_s3 + $0x28] sm:$0xff]  ;;  %v3859_v13 = vld [vmem:[%s8223_s3 + $0x38] sm:$0xff] }
 0x18c   :  { %v7942_v8 = vmax.f32 %v3561_v1, 0.0  ;;  %3959 = vmatprep.mubr.f32.mxu0 %v3853_v5  ;;  %4034 = vmatprep.mubr.f32.mxu1 %v3855_v11 }
 0x18d   :  { %v7950_v46 = vmax.f32 %v3560_v35, 0.0  ;;  %v5492_v47 = vpop.f32.mrb[78].mxu0  ;;  %v5794_v18 = vpop.f32.mrb[78].mxu1 }
 0x18e   :  { %v3563_v24 = vmax.f32 %v5492_v47, %v5794_v18  ;;  %v1234_v41 = vpop.f32.mrb[79].mxu0  ;;  %v2955_v26 = vpop.f32.mrb[79].mxu1 }
 0x18f   :  { %v6089_v25 = vpack.c.bf16 %v7942_v8, %v7950_v46  ;;  %v3562_v52 = vmax.f32 %v1234_v41, %v2955_v26  ;;  %3960 = vmatmul.mubr.f32.vlgmr.msra.gmra.mrb[184].mxu0 %v3852_v42  ;;  %4035 = vmatmul.mubr.f32.vlgmr.msra.gmra.mrb[184].mxu1 %v3854_v43  ;;  %v3856_v46 = vld [vmem:[%s8223_s3 + $0x20] sm:$0xff] }
 0x190   :  { %v7954_v57 = vmax.f32 %v3563_v24, 0.0  ;;  %3964 = vmatprep.mubr.f32.mxu0 %v3865_v16  ;;  %4039 = vmatprep.mubr.f32.mxu1 %v3867_v49 }
 0x191   :  { %v7956_v58 = vmax.f32 %v3562_v52, 0.0  ;;  %v5495_v63 = vpop.f32.mrb[80].mxu0  ;;  %v5797_v0 = vpop.f32.mrb[80].mxu1 }
 0x192   :  { %v3565_v37 = vmax.f32 %v5495_v63, %v5797_v0  ;;  %v1244_v4 = vpop.f32.mrb[81].mxu0  ;;  %v2965_v55 = vpop.f32.mrb[81].mxu1 }
 0x193   :  { %v6093_v38 = vpack.c.bf16 %v7954_v57, %v7956_v58  ;;  %v3564_v40 = vmax.f32 %v1244_v4, %v2965_v55  ;;  %3965 = vmatmul.mubr.f32.gmra.mrb[186].mxu0 %v3864_v29  ;;  %4040 = vmatmul.mubr.f32.gmra.mrb[186].mxu1 %v3866_v61 }
 0x194   :  { %v3749_v15 = vmax.f32 %v3565_v37, 0.0  ;;  %4109 = vmatprep.mubr.f32.mxu0 %v3857_v7  ;;  %4184 = vmatprep.mubr.f32.mxu1 %v3859_v13 }
 0x195   :  { %v3748_v6 = vmax.f32 %v3564_v40, 0.0  ;;  %v5498_v9 = vpop.f32.mrb[82].mxu0  ;;  %v5800_v10 = vpop.f32.mrb[82].mxu1 }
 0x196   :  { %v3567_v50 = vmax.f32 %v5498_v9, %v5800_v10  ;;  %v1254_v56 = vpop.f32.mrb[83].mxu0  ;;  %v2975_v12 = vpop.f32.mrb[83].mxu1 }
 0x197   :  { %v6063_v62 = vpack.c.bf16 %v3749_v15, %v3748_v6  ;;  %v3566_v21 = vmax.f32 %v1254_v56, %v2975_v12 }
 0x198   :  { %v3751_v36 = vmax.f32 %v3567_v50, 0.0 }
 0x199   :  { %v3750_v22 = vmax.f32 %v3566_v21, 0.0  ;;  %v5501_v30 = vpop.f32.mrb[84].mxu0  ;;  %v5803_v54 = vpop.f32.mrb[84].mxu1  ;;  %6064 = vmatprep.subr.bf16.mxu0 %v6063_v62 }
 0x19a   :  { %v3569_v34 = vmax.f32 %v5501_v30, %v5803_v54  ;;  %v1264_v2 = vpop.f32.mrb[85].mxu0  ;;  %v2985_v5 = vpop.f32.mrb[85].mxu1  ;;  %6066 = vmatpush3.bf16.msra.mxu0 %v6065_v28 }
 0x19b   :  { %v6067_v11 = vpack.c.bf16 %v3751_v36, %v3750_v22  ;;  %v3568_v1 = vmax.f32 %v1264_v2, %v2985_v5 }
 0x19c   :  { %v3753_v44 = vmax.f32 %v3569_v34, 0.0 }
 0x19d   :  { %v3752_v35 = vmax.f32 %v3568_v1, 0.0  ;;  %v5504_v42 = vpop.f32.mrb[86].mxu0  ;;  %v5806_v43 = vpop.f32.mrb[86].mxu1  ;;  %6068 = vmatprep.subr.bf16.mxu0 %v6067_v11 }
 0x19e   :  { %v3571_v47 = vmax.f32 %v5504_v42, %v5806_v43  ;;  %v1274_v18 = vpop.f32.mrb[87].mxu0  ;;  %v2995_v24 = vpop.f32.mrb[87].mxu1  ;;  %6070 = vmatpush3.bf16.msra.mxu0 %v6069_v48  ;;  %v3869_v43 = vld [vmem:[%s8223_s3 + $0x88] sm:$0x3] }
 0x19f   :  { %v6071_v60 = vpack.c.bf16 %v3753_v44, %v3752_v35  ;;  %v3570_v3 = vmax.f32 %v1274_v18, %v2995_v24 }
 0x1a0   :  { %v3755_v28 = vmax.f32 %v3571_v47, 0.0 }
 0x1a1   :  { %v3754_v41 = vmax.f32 %v3570_v3, 0.0  ;;  %v5507_v26 = vpop.f32.mrb[88].mxu0  ;;  %v5809_v52 = vpop.f32.mrb[88].mxu1  ;;  %6072 = vmatprep.subr.bf16.mxu0 %v6071_v60  ;;  %v3868_v3 = vld [vmem:[%s8223_s3 + $0x80] sm:$0x3] }
 0x1a2   :  { %v3573_v63 = vmax.f32 %v5507_v26, %v5809_v52  ;;  %v1284_v0 = vpop.f32.mrb[89].mxu0  ;;  %v3005_v37 = vpop.f32.mrb[89].mxu1  ;;  %6074 = vmatpush3.bf16.msra.mxu0 %v6073_v31  ;;  %v3861_v26 = vld [vmem:[%s8223_s3 + $0x48] sm:$0xff] }
 0x1a3   :  { %v6075_v4 = vpack.c.bf16 %v3755_v28, %v3754_v41  ;;  %v3572_v55 = vmax.f32 %v1284_v0, %v3005_v37 }
 0x1a4   :  { %v3757_v40 = vmax.f32 %v3573_v63, 0.0 }
 0x1a5   :  { %v3756_v15 = vmax.f32 %v3572_v55, 0.0  ;;  %v5510_v23 = vpop.f32.mrb[90].mxu0  ;;  %v5812_v39 = vpop.f32.mrb[90].mxu1  ;;  %6076 = vmatprep.subr.bf16.mxu0 %v6075_v4 }
 0x1a6   :  { %v3575_v48 = vmax.f32 %v5510_v23, %v5812_v39  ;;  %v1294_v6 = vpop.f32.mrb[91].mxu0  ;;  %v3015_v9 = vpop.f32.mrb[91].mxu1  ;;  %6078 = vmatpush3.bf16.msra.mxu0 %v6077_v17 }
 0x1a7   :  { %v6079_v10 = vpack.c.bf16 %v3757_v40, %v3756_v15  ;;  %v3574_v16 = vmax.f32 %v1294_v6, %v3015_v9 }
 0x1a8   :  { %v3759_v50 = vmax.f32 %v3575_v48, 0.0 }
 0x1a9   :  { %v3758_v56 = vmax.f32 %v3574_v16, 0.0  ;;  %v5513_v53 = vpop.f32.mrb[92].mxu0  ;;  %v5815_v51 = vpop.f32.mrb[92].mxu1  ;;  %6080 = vmatprep.subr.bf16.mxu0 %v6079_v10 }
 0x1aa   :  { %v3577_v31 = vmax.f32 %v5513_v53, %v5815_v51  ;;  %v1304_v12 = vpop.f32.mrb[93].mxu0  ;;  %v3025_v29 = vpop.f32.mrb[93].mxu1  ;;  %6082 = vmatpush3.bf16.msra.mxu0 %v6081_v27 }
 0x1ab   :  { %v6083_v62 = vpack.c.bf16 %v3759_v50, %v3758_v56  ;;  %v3576_v21 = vmax.f32 %v1304_v12, %v3025_v29 }
 0x1ac   :  { %v3761_v49 = vmax.f32 %v3577_v31, 0.0 }
 0x1ad   :  { %v3760_v36 = vmax.f32 %v3576_v21, 0.0  ;;  %v5516_v32 = vpop.f32.mrb[94].mxu0  ;;  %v5818_v20 = vpop.f32.mrb[94].mxu1  ;;  %6084 = vmatprep.subr.bf16.mxu0 %v6083_v62 }
 0x1ae   :  { %v3579_v17 = vmax.f32 %v5516_v32, %v5818_v20  ;;  %v1314_v61 = vpop.f32.mrb[95].mxu0  ;;  %v3035_v22 = vpop.f32.mrb[95].mxu1  ;;  %6086 = vmatpush3.bf16.msra.mxu0 %v6085_v14 }
 0x1af   :  { %v6087_v30 = vpack.c.bf16 %v3761_v49, %v3760_v36  ;;  %v3578_v54 = vmax.f32 %v1314_v61, %v3035_v22 }
 0x1b0   :  { %v3763_v7 = vmax.f32 %v3579_v17, 0.0 }
 0x1b1   :  { %v3762_v34 = vmax.f32 %v3578_v54, 0.0  ;;  %6088 = vmatprep.subr.bf16.mxu0 %v6087_v30  ;;  %v5519_v45 = vpop.f32.mrb[96].mxu0  ;;  %v5821_v19 = vpop.f32.mrb[96].mxu1 }
 0x1b2   :  { %6090 = vmatpush3.bf16.msra.mxu0 %v6089_v25  ;;  %v3581_v27 = vmax.f32 %v5519_v45, %v5821_v19  ;;  %v1324_v2 = vpop.f32.mrb[97].mxu0  ;;  %v3045_v5 = vpop.f32.mrb[97].mxu1 }
 0x1b3   :  { %v6091_v11 = vpack.c.bf16 %v3763_v7, %v3762_v34  ;;  %v3580_v1 = vmax.f32 %v1324_v2, %v3045_v5 }
 0x1b4   :  { %v7999_v13 = vmax.f32 %v3581_v27, 0.0 }
 0x1b5   :  { %6092 = vmatprep.subr.bf16.mxu0 %v6091_v11  ;;  %v8001_v59 = vmax.f32 %v3580_v1, 0.0  ;;  %v5522_v33 = vpop.f32.mrb[98].mxu0  ;;  %v5824_v14 = vpop.f32.mrb[98].mxu1 }
 0x1b6   :  { %6094 = vmatpush3.bf16.msra.mxu0 %v6093_v38  ;;  %v3583_v44 = vmax.f32 %v5522_v33, %v5824_v14  ;;  %v1334_v35 = vpop.f32.mrb[99].mxu0  ;;  %v3055_v8 = vpop.f32.mrb[99].mxu1 }
 0x1b7   :  { %v6097_v25 = vpack.c.bf16 %v7999_v13, %v8001_v59  ;;  %v3582_v42 = vmax.f32 %v1334_v35, %v3055_v8 }
 0x1b8   :  { %v8014_v47 = vmax.f32 %v3583_v44, 0.0 }
 0x1b9   :  { %v8016_v18 = vmax.f32 %v3582_v42, 0.0  ;;  %v5525_v57 = vpop.f32.mrb[100].mxu0  ;;  %v5827_v58 = vpop.f32.mrb[100].mxu1  ;;  %4110 = vmatmul.mubr.f32.vlgmr.msra.gmra.mrb[188].mxu0 %v3856_v46 }
 0x1ba   :  { %v3585_v38 = vmax.f32 %v5525_v57, %v5827_v58  ;;  %v1344_v24 = vpop.f32.mrb[101].mxu0  ;;  %v3065_v60 = vpop.f32.mrb[101].mxu1  ;;  %4114 = vmatprep.mubr.f32.mxu0 %v3869_v43 }
 0x1bb   :  { %v6101_v28 = vpack.c.bf16 %v8014_v47, %v8016_v18  ;;  %v3584_v41 = vmax.f32 %v1344_v24, %v3065_v60 }
 0x1bc   :  { %v8026_v52 = vmax.f32 %v3585_v38, 0.0 }
 0x1bd   :  { %v8028_v63 = vmax.f32 %v3584_v41, 0.0  ;;  %v5528_v0 = vpop.f32.mrb[102].mxu0  ;;  %v5830_v37 = vpop.f32.mrb[102].mxu1  ;;  %4115 = vmatmul.mubr.f32.gmra.mrb[190].mxu0 %v3868_v3 }
 0x1be   :  { %v3587_v4 = vmax.f32 %v5528_v0, %v5830_v37  ;;  %v1354_v55 = vpop.f32.mrb[103].mxu0  ;;  %v3075_v40 = vpop.f32.mrb[103].mxu1  ;;  %4259 = vmatprep.mubr.f32.mxu0 %v3861_v26 }
 0x1bf   :  { %v6105_v15 = vpack.c.bf16 %v8026_v52, %v8028_v63  ;;  %v3586_v23 = vmax.f32 %v1354_v55, %v3075_v40 }
 0x1c0   :  { %v8032_v39 = vmax.f32 %v3587_v4, 0.0 }
 0x1c1   :  { %v8034_v48 = vmax.f32 %v3586_v23, 0.0  ;;  %v5531_v6 = vpop.f32.mrb[104].mxu0  ;;  %v5833_v9 = vpop.f32.mrb[104].mxu1 }
 0x1c2   :  { %v3589_v10 = vmax.f32 %v5531_v6, %v5833_v9  ;;  %v1364_v16 = vpop.f32.mrb[105].mxu0  ;;  %v3085_v50 = vpop.f32.mrb[105].mxu1 }
 0x1c3   :  { %v6109_v56 = vpack.c.bf16 %v8032_v39, %v8034_v48  ;;  %v3588_v53 = vmax.f32 %v1364_v16, %v3085_v50  ;;  %v3877_v39 = vld [vmem:[%s8224_s4 + $0x8] sm:$0x3] }
 0x1c4   :  { %v8038_v51 = vmax.f32 %v3589_v10, 0.0 }
 0x1c5   :  { %v8040_v31 = vmax.f32 %v3588_v53, 0.0  ;;  %v5534_v12 = vpop.f32.mrb[106].mxu0  ;;  %v5836_v29 = vpop.f32.mrb[106].mxu1 }
 0x1c6   :  { %v3591_v62 = vmax.f32 %v5534_v12, %v5836_v29  ;;  %v1374_v21 = vpop.f32.mrb[107].mxu0  ;;  %v3095_v49 = vpop.f32.mrb[107].mxu1 }
 0x1c7   :  { %v6113_v36 = vpack.c.bf16 %v8038_v51, %v8040_v31  ;;  %v3590_v32 = vmax.f32 %v1374_v21, %v3095_v49  ;;  %v4348_v51 = vld [vmem:[%s8225_s5 + $0x8] sm:$0x3]  ;;  %v12_v31 = vstv %s8226_s6 }
 0x1c8   :  { %v8044_v20 = vmax.f32 %v3591_v62, 0.0  ;;  %13 = vst [vmem:[#allocation2] sm:$0x1] %v12_v31 }
 0x1c9   :  { %v8046_v17 = vmax.f32 %v3590_v32, 0.0  ;;  %v5537_v61 = vpop.f32.mrb[108].mxu0  ;;  %v5839_v22 = vpop.f32.mrb[108].mxu1 }
 0x1ca   :  { %v3593_v30 = vmax.f32 %v5537_v61, %v5839_v22  ;;  %v1384_v54 = vpop.f32.mrb[109].mxu0  ;;  %v3105_v7 = vpop.f32.mrb[109].mxu1 }
 0x1cb   :  { %v6117_v34 = vpack.c.bf16 %v8044_v20, %v8046_v17  ;;  %v3592_v45 = vmax.f32 %v1384_v54, %v3105_v7  ;;  %v4347_v20 = vld [vmem:[%s8225_s5] sm:$0xff] }
 0x1cc   :  { %v8050_v19 = vmax.f32 %v3593_v30, 0.0 }
 0x1cd   :  { %v8052_v27 = vmax.f32 %v3592_v45, 0.0  ;;  %v5540_v2 = vpop.f32.mrb[110].mxu0  ;;  %v5842_v5 = vpop.f32.mrb[110].mxu1 }
 0x1ce   :  { %v3595_v11 = vmax.f32 %v5540_v2, %v5842_v5  ;;  %v1394_v1 = vpop.f32.mrb[111].mxu0  ;;  %v3115_v33 = vpop.f32.mrb[111].mxu1 }
 0x1cf   :  { %v6121_v14 = vpack.c.bf16 %v8050_v19, %v8052_v27  ;;  %v3594_v44 = vmax.f32 %v1394_v1, %v3115_v33  ;;  %v3858_v19 = vld [vmem:[%s8223_s3 + $0x30] sm:$0xff] }
 0x1d0   :  { %v8056_v35 = vmax.f32 %v3595_v11, 0.0 }
 0x1d1   :  { %v8058_v8 = vmax.f32 %v3594_v44, 0.0  ;;  %v5543_v46 = vpop.f32.mrb[112].mxu0  ;;  %v5845_v42 = vpop.f32.mrb[112].mxu1 }
 0x1d2   :  { %v3597_v43 = vmax.f32 %v5543_v46, %v5845_v42  ;;  %v1404_v57 = vpop.f32.mrb[113].mxu0  ;;  %v3125_v58 = vpop.f32.mrb[113].mxu1 }
 0x1d3   :  { %v6125_v38 = vpack.c.bf16 %v8056_v35, %v8058_v8  ;;  %v3596_v24 = vmax.f32 %v1404_v57, %v3125_v58 }
 0x1d4   :  { %v3781_v60 = vmax.f32 %v3597_v43, 0.0 }
 0x1d5   :  { %v3780_v3 = vmax.f32 %v3596_v24, 0.0  ;;  %v5546_v41 = vpop.f32.mrb[114].mxu0  ;;  %v5848_v26 = vpop.f32.mrb[114].mxu1 }
 0x1d6   :  { %v3599_v0 = vmax.f32 %v5546_v41, %v5848_v26  ;;  %v1414_v37 = vpop.f32.mrb[115].mxu0  ;;  %v3135_v4 = vpop.f32.mrb[115].mxu1 }
 0x1d7   :  { %v6095_v55 = vpack.c.bf16 %v3781_v60, %v3780_v3  ;;  %v3598_v40 = vmax.f32 %v1414_v37, %v3135_v4 }
 0x1d8   :  { %v3783_v23 = vmax.f32 %v3599_v0, 0.0 }
 0x1d9   :  { %v3782_v6 = vmax.f32 %v3598_v40, 0.0  ;;  %v5549_v9 = vpop.f32.mrb[116].mxu0  ;;  %v5851_v10 = vpop.f32.mrb[116].mxu1  ;;  %6096 = vmatprep.subr.bf16.mxu1 %v6095_v55  ;;  %v3876_v55 = vld [vmem:[%s8224_s4] sm:$0xff] }
 0x1da   :  { %v3601_v16 = vmax.f32 %v5549_v9, %v5851_v10  ;;  %v1424_v50 = vpop.f32.mrb[117].mxu0  ;;  %v3145_v53 = vpop.f32.mrb[117].mxu1  ;;  %6098 = vmatpush3.bf16.msra.mxu1 %v6097_v25 }
 0x1db   :  { %v6099_v12 = vpack.c.bf16 %v3783_v23, %v3782_v6  ;;  %v3600_v29 = vmax.f32 %v1424_v50, %v3145_v53 }
 0x1dc   :  { %v3785_v62 = vmax.f32 %v3601_v16, 0.0 }
 0x1dd   :  { %v3784_v21 = vmax.f32 %v3600_v29, 0.0  ;;  %v5552_v49 = vpop.f32.mrb[118].mxu0  ;;  %v5854_v32 = vpop.f32.mrb[118].mxu1  ;;  %6100 = vmatprep.subr.bf16.mxu1 %v6099_v12 }
 0x1de   :  { %v3603_v61 = vmax.f32 %v5552_v49, %v5854_v32  ;;  %v1434_v22 = vpop.f32.mrb[119].mxu0  ;;  %v3155_v30 = vpop.f32.mrb[119].mxu1  ;;  %6102 = vmatpush3.bf16.msra.mxu1 %v6101_v28 }
 0x1df   :  { %v6103_v54 = vpack.c.bf16 %v3785_v62, %v3784_v21  ;;  %v3602_v7 = vmax.f32 %v1434_v22, %v3155_v30 }
 0x1e0   :  { %v3787_v45 = vmax.f32 %v3603_v61, 0.0 }
 0x1e1   :  { %v3786_v2 = vmax.f32 %v3602_v7, 0.0  ;;  %v5555_v13 = vpop.f32.mrb[120].mxu0  ;;  %v5857_v59 = vpop.f32.mrb[120].mxu1  ;;  %6104 = vmatprep.subr.bf16.mxu1 %v6103_v54  ;;  %v4370_v54 = vld [vmem:[#allocation2] sm:$0x1] }
 0x1e2   :  { %v3605_v25 = vmax.f32 %v5555_v13, %v5857_v59  ;;  %v1444_v5 = vpop.f32.mrb[121].mxu0  ;;  %v3165_v11 = vpop.f32.mrb[121].mxu1  ;;  %6106 = vmatpush3.bf16.msra.mxu1 %v6105_v15  ;;  %v6203_v15 = vmov 0   ;;  %v3871_v13 = vld [vmem:[%s8223_s3 + $0x98] sm:$0x3] }
 0x1e3   :  { %v6107_v1 = vpack.c.bf16 %v3787_v45, %v3786_v2  ;;  %v3604_v33 = vmax.f32 %v1444_v5, %v3165_v11  ;;  %6197 = vset.pattern.permute.xlu0 %v6203_v15  ;;  %6198 = vset.pattern.permute.xlu1 %v6203_v15  ;;  %v6204_v2 = vmov 0.0|0.0  }
 0x1e4   :  { %v3789_v44 = vmax.f32 %v3605_v25, 0.0  ;;  %3885 = vperm.xlu0 %6197, %v3877_v39   ;;  %4356 = vperm.xlu1 %6198, %v4348_v51  }
 0x1e5   :  { %v3788_v46 = vmax.f32 %v3604_v33, 0.0  ;;  %v5558_v47 = vpop.f32.mrb[122].mxu0  ;;  %v5860_v18 = vpop.f32.mrb[122].mxu1  ;;  %6108 = vmatprep.subr.bf16.mxu1 %v6107_v1  ;;  %v3870_v1 = vld [vmem:[%s8223_s3 + $0x90] sm:$0x3] }
 0x1e6   :  { %v3607_v28 = vmax.f32 %v5558_v47, %v5860_v18  ;;  %v1454_v42 = vpop.f32.mrb[123].mxu0  ;;  %v3175_v43 = vpop.f32.mrb[123].mxu1  ;;  %6110 = vmatpush3.bf16.msra.mxu1 %v6109_v56 }
 0x1e7   :  { %v6111_v57 = vpack.c.bf16 %v3789_v44, %v3788_v46  ;;  %v3606_v58 = vmax.f32 %v1454_v42, %v3175_v43  ;;  %v3863_v46 = vld [vmem:[%s8223_s3 + $0x58] sm:$0xff] }
 0x1e8   :  { %v3791_v24 = vmax.f32 %v3607_v28, 0.0  ;;  %3880 = vperm.xlu0 %6197, %v3876_v55   ;;  %4351 = vperm.xlu1 %6198, %v4347_v20  }
 0x1e9   :  { %v3790_v60 = vmax.f32 %v3606_v58, 0.0  ;;  %v5561_v52 = vpop.f32.mrb[124].mxu0  ;;  %v5863_v63 = vpop.f32.mrb[124].mxu1  ;;  %6112 = vmatprep.subr.bf16.mxu1 %v6111_v57 }
 0x1ea   :  { %v3609_v3 = vmax.f32 %v5561_v52, %v5863_v63  ;;  %v1464_v41 = vpop.f32.mrb[125].mxu0  ;;  %v3185_v26 = vpop.f32.mrb[125].mxu1  ;;  %6114 = vmatpush3.bf16.msra.mxu1 %v6113_v36 }
 0x1eb   :  { %v6115_v48 = vpack.c.bf16 %v3791_v24, %v3790_v60  ;;  %v3608_v56 = vmax.f32 %v1464_v41, %v3185_v26 }
 0x1ec   :  { %v3793_v0 = vmax.f32 %v3609_v3, 0.0  ;;  %4373 = vperm.xlu0 %6197, %v4370_v54  }
 0x1ed   :  { %v3792_v37 = vmax.f32 %v3608_v56, 0.0  ;;  %v5866_v4 = vpop.f32.mrb[126].mxu1  ;;  %6116 = vmatprep.subr.bf16.mxu1 %v6115_v48 }
 0x1ee   :  { %v5564_v40 = vpop.f32.mrb[126].mxu0  ;;  %v3195_v23 = vpop.f32.mrb[127].mxu1  ;;  %6118 = vmatpush3.bf16.msra.mxu1 %v6117_v34 }
 0x1ef   :  { %v6119_v36 = vpack.c.bf16 %v3793_v0, %v3792_v37  ;;  %v3611_v6 = vmax.f32 %v5564_v40, %v5866_v4  ;;  %v1474_v9 = vpop.f32.mrb[127].mxu0 }
 0x1f0   :  { %v3610_v10 = vmax.f32 %v1474_v9, %v3195_v23 }
 0x1f1   :  { %v3795_v17 = vmax.f32 %v3611_v6, 0.0  ;;  %v5869_v34 = vpop.f32.mrb[128].mxu1  ;;  %6120 = vmatprep.subr.bf16.mxu1 %v6119_v36 }
 0x1f2   :  { %v3794_v16 = vmax.f32 %v3610_v10, 0.0  ;;  %v5567_v50 = vpop.f32.mrb[128].mxu0  ;;  %v3205_v53 = vpop.f32.mrb[129].mxu1  ;;  %6122 = vmatpush3.bf16.msra.mxu1 %v6121_v14 }
 0x1f3   :  { %v3613_v12 = vmax.f32 %v5567_v50, %v5869_v34  ;;  %v1484_v29 = vpop.f32.mrb[129].mxu0 }
 0x1f4   :  { %v6123_v62 = vpack.c.bf16 %v3795_v17, %v3794_v16  ;;  %v3612_v21 = vmax.f32 %v1484_v29, %v3205_v53 }
 0x1f5   :  { %v8098_v49 = vmax.f32 %v3613_v12, 0.0  ;;  %v5872_v32 = vpop.f32.mrb[130].mxu1 }
 0x1f6   :  { %v8100_v61 = vmax.f32 %v3612_v21, 0.0  ;;  %v5570_v22 = vpop.f32.mrb[130].mxu0  ;;  %v3215_v30 = vpop.f32.mrb[131].mxu1  ;;  %6124 = vmatprep.subr.bf16.mxu1 %v6123_v62 }
 0x1f7   :  { %v3615_v7 = vmax.f32 %v5570_v22, %v5872_v32  ;;  %v1494_v45 = vpop.f32.mrb[131].mxu0  ;;  %6126 = vmatpush3.bf16.msra.mxu1 %v6125_v38 }
 0x1f8   :  { %v6129_v27 = vpack.c.bf16 %v8098_v49, %v8100_v61  ;;  %v3614_v14 = vmax.f32 %v1494_v45, %v3215_v30  ;;  %6159 = vmatprep.subr.bf16.mxu1 %v6204_v2 }
 0x1f9   :  { %v8114_v59 = vmax.f32 %v3615_v7, 0.0  ;;  %v5875_v35 = vpop.f32.mrb[132].mxu1 }
 0x1fa   :  { %v8116_v8 = vmax.f32 %v3614_v14, 0.0  ;;  %v5573_v38 = vpop.f32.mrb[132].mxu0  ;;  %v3225_v25 = vpop.f32.mrb[133].mxu1  ;;  %4185 = vmatmul.mubr.f32.vlgmr.msra.gmra.mrb[188].mxu1 %v3858_v19 }
 0x1fb   :  { %v3617_v5 = vmax.f32 %v5573_v38, %v5875_v35  ;;  %v1504_v11 = vpop.f32.mrb[133].mxu0  ;;  %4189 = vmatprep.mubr.f32.mxu1 %v3871_v13 }
 0x1fc   :  { %v6133_v33 = vpack.c.bf16 %v8114_v59, %v8116_v8  ;;  %v3616_v44 = vmax.f32 %v1504_v11, %v3225_v25 }
 0x1fd   :  { %v8126_v47 = vmax.f32 %v3617_v5, 0.0  ;;  %v5878_v18 = vpop.f32.mrb[134].mxu1 }
 0x1fe   :  { %v8128_v28 = vmax.f32 %v3616_v44, 0.0  ;;  %v5576_v42 = vpop.f32.mrb[134].mxu0  ;;  %v3235_v43 = vpop.f32.mrb[135].mxu1  ;;  %4190 = vmatmul.mubr.f32.gmra.mrb[190].mxu1 %v3870_v1 }
 0x1ff   :  { %v3619_v57 = vmax.f32 %v5576_v42, %v5878_v18  ;;  %v1514_v58 = vpop.f32.mrb[135].mxu0  ;;  %4760 = vmatprep.mubr.msk.f32.mxu1 %vm3888_vm1, %v3863_v46 }
 0x200   :  { %v6137_v24 = vpack.c.bf16 %v8126_v47, %v8128_v28  ;;  %v3618_v60 = vmax.f32 %v1514_v58, %v3235_v43 }
 0x201   :  { %v8133_v52 = vmax.f32 %v3619_v57, 0.0  ;;  %v5881_v63 = vpop.f32.mrb[136].mxu1 }
 0x202   :  { %v8135_v15 = vmax.f32 %v3618_v60, 0.0  ;;  %v5579_v3 = vpop.f32.mrb[136].mxu0  ;;  %v3245_v41 = vpop.f32.mrb[137].mxu1 }
 0x203   :  { %v3621_v26 = vmax.f32 %v5579_v3, %v5881_v63  ;;  %v1524_v39 = vpop.f32.mrb[137].mxu0 }
 0x204   :  { %v6141_v48 = vpack.c.bf16 %v8133_v52, %v8135_v15  ;;  %v3620_v56 = vmax.f32 %v1524_v39, %v3245_v41 }
 0x205   :  { %v8139_v0 = vmax.f32 %v3621_v26, 0.0  ;;  %v5884_v37 = vpop.f32.mrb[138].mxu1 }
 0x206   :  { %v8141_v4 = vmax.f32 %v3620_v56, 0.0  ;;  %v5582_v55 = vpop.f32.mrb[138].mxu0  ;;  %v3255_v40 = vpop.f32.mrb[139].mxu1 }
 0x207   :  { %v3623_v23 = vmax.f32 %v5582_v55, %v5884_v37  ;;  %v1534_v51 = vpop.f32.mrb[139].mxu0 }
 0x208   :  { %v6145_v31 = vpack.c.bf16 %v8139_v0, %v8141_v4  ;;  %v3622_v36 = vmax.f32 %v1534_v51, %v3255_v40 }
 0x209   :  { %v8145_v6 = vmax.f32 %v3623_v23, 0.0  ;;  %v5887_v9 = vpop.f32.mrb[140].mxu1 }
 0x20a   :  { %v8147_v10 = vmax.f32 %v3622_v36, 0.0  ;;  %v5585_v20 = vpop.f32.mrb[140].mxu0  ;;  %v3265_v17 = vpop.f32.mrb[141].mxu1 }
 0x20b   :  { %v3625_v34 = vmax.f32 %v5585_v20, %v5887_v9  ;;  %v1544_v16 = vpop.f32.mrb[141].mxu0 }
 0x20c   :  { %v6149_v50 = vpack.c.bf16 %v8145_v6, %v8147_v10  ;;  %v3624_v53 = vmax.f32 %v1544_v16, %v3265_v17 }
 0x20d   :  { %v8151_v12 = vmax.f32 %v3625_v34, 0.0  ;;  %v5890_v29 = vpop.f32.mrb[142].mxu1 }
 0x20e   :  { %v8153_v62 = vmax.f32 %v3624_v53, 0.0  ;;  %v5588_v21 = vpop.f32.mrb[142].mxu0  ;;  %v3275_v32 = vpop.f32.mrb[143].mxu1 }
 0x20f   :  { %v3627_v22 = vmax.f32 %v5588_v21, %v5890_v29  ;;  %v1554_v30 = vpop.f32.mrb[143].mxu0 }
 0x210   :  { %v6153_v54 = vpack.c.bf16 %v8151_v12, %v8153_v62  ;;  %v3626_v7 = vmax.f32 %v1554_v30, %v3275_v32 }
 0x211   :  { %v8157_v45 = vmax.f32 %v3627_v22, 0.0  ;;  %v5893_v19 = vpop.f32.mrb[144].mxu1 }
 0x212   :  { %v8159_v14 = vmax.f32 %v3626_v7, 0.0  ;;  %v5591_v13 = vpop.f32.mrb[144].mxu0  ;;  %v3285_v35 = vpop.f32.mrb[145].mxu1 }
 0x213   :  { %v3629_v38 = vmax.f32 %v5591_v13, %v5893_v19  ;;  %v1564_v25 = vpop.f32.mrb[145].mxu0 }
 0x214   :  { %v6157_v5 = vpack.c.bf16 %v8157_v45, %v8159_v14  ;;  %v3628_v11 = vmax.f32 %v1564_v25, %v3285_v35  ;;  %v3872_v14 = vld [vmem:[%s8223_s3 + $0xa0] sm:$0x3] }
 0x215   :  { %v3813_v1 = vmax.f32 %v3629_v38, 0.0  ;;  %v5896_v44 = vpop.f32.mrb[146].mxu1 }
 0x216   :  { %v3812_v46 = vmax.f32 %v3628_v11, 0.0  ;;  %v5594_v18 = vpop.f32.mrb[146].mxu0  ;;  %v3295_v42 = vpop.f32.mrb[147].mxu1 }
 0x217   :  { %v3631_v43 = vmax.f32 %v5594_v18, %v5896_v44  ;;  %v1574_v57 = vpop.f32.mrb[147].mxu0 }
 0x218   :  { %v6127_v58 = vpack.c.bf16 %v3813_v1, %v3812_v46  ;;  %v3630_v60 = vmax.f32 %v1574_v57, %v3295_v42 }
 0x219   :  { %v3815_v63 = vmax.f32 %v3631_v43, 0.0  ;;  %v5899_v3 = vpop.f32.mrb[148].mxu1 }
 0x21a   :  { %v3814_v41 = vmax.f32 %v3630_v60, 0.0  ;;  %v5597_v26 = vpop.f32.mrb[148].mxu0  ;;  %v3305_v39 = vpop.f32.mrb[149].mxu1  ;;  %6128 = vmatprep.subr.bf16.mxu0 %v6127_v58 }
 0x21b   :  { %v3633_v56 = vmax.f32 %v5597_v26, %v5899_v3  ;;  %v1584_v37 = vpop.f32.mrb[149].mxu0  ;;  %6130 = vmatpush3.bf16.msra.mxu0 %v6129_v27 }
 0x21c   :  { %v6131_v55 = vpack.c.bf16 %v3815_v63, %v3814_v41  ;;  %v3632_v40 = vmax.f32 %v1584_v37, %v3305_v39 }
 0x21d   :  { %v3817_v23 = vmax.f32 %v3633_v56, 0.0  ;;  %v5902_v51 = vpop.f32.mrb[150].mxu1 }
 0x21e   :  { %v3816_v36 = vmax.f32 %v3632_v40, 0.0  ;;  %v5600_v9 = vpop.f32.mrb[150].mxu0  ;;  %v3315_v20 = vpop.f32.mrb[151].mxu1  ;;  %6132 = vmatprep.subr.bf16.mxu0 %v6131_v55 }
 0x21f   :  { %v3635_v17 = vmax.f32 %v5600_v9, %v5902_v51  ;;  %v1594_v34 = vpop.f32.mrb[151].mxu0  ;;  %6134 = vmatpush3.bf16.msra.mxu0 %v6133_v33 }
 0x220   :  { %v6135_v16 = vpack.c.bf16 %v3817_v23, %v3816_v36  ;;  %v3634_v53 = vmax.f32 %v1594_v34, %v3315_v20  ;;  %v3860_v20 = vld [vmem:[%s8223_s3 + $0x40] sm:$0xff] }
 0x221   :  { %v3819_v29 = vmax.f32 %v3635_v17, 0.0  ;;  %v5905_v21 = vpop.f32.mrb[152].mxu1 }
 0x222   :  { %v3818_v49 = vmax.f32 %v3634_v53, 0.0  ;;  %v5603_v61 = vpop.f32.mrb[152].mxu0  ;;  %v3325_v27 = vpop.f32.mrb[153].mxu1  ;;  %6136 = vmatprep.subr.bf16.mxu0 %v6135_v16 }
 0x223   :  { %v3637_v32 = vmax.f32 %v5603_v61, %v5905_v21  ;;  %v1604_v22 = vpop.f32.mrb[153].mxu0  ;;  %6138 = vmatpush3.bf16.msra.mxu0 %v6137_v24 }
 0x224   :  { %v6139_v30 = vpack.c.bf16 %v3819_v29, %v3818_v49  ;;  %v3636_v7 = vmax.f32 %v1604_v22, %v3325_v27 }
 0x225   :  { %v3821_v19 = vmax.f32 %v3637_v32, 0.0  ;;  %v5908_v13 = vpop.f32.mrb[154].mxu1 }
 0x226   :  { %v3820_v59 = vmax.f32 %v3636_v7, 0.0  ;;  %v5606_v8 = vpop.f32.mrb[154].mxu0  ;;  %v3335_v33 = vpop.f32.mrb[155].mxu1  ;;  %6140 = vmatprep.subr.bf16.mxu0 %v6139_v30 }
 0x227   :  { %v3639_v35 = vmax.f32 %v5606_v8, %v5908_v13  ;;  %v1614_v38 = vpop.f32.mrb[155].mxu0  ;;  %6142 = vmatpush3.bf16.msra.mxu0 %v6141_v48 }
 0x228   :  { %v6143_v25 = vpack.c.bf16 %v3821_v19, %v3820_v59  ;;  %v3638_v11 = vmax.f32 %v1614_v38, %v3335_v33 }
 0x229   :  { %v3823_v1 = vmax.f32 %v3639_v35, 0.0  ;;  %v5911_v44 = vpop.f32.mrb[156].mxu1 }
 0x22a   :  { %v3822_v47 = vmax.f32 %v3638_v11, 0.0  ;;  %v5609_v28 = vpop.f32.mrb[156].mxu0  ;;  %v3345_v24 = vpop.f32.mrb[157].mxu1  ;;  %6144 = vmatprep.subr.bf16.mxu0 %v6143_v25 }
 0x22b   :  { %v3641_v46 = vmax.f32 %v5609_v28, %v5911_v44  ;;  %v1624_v18 = vpop.f32.mrb[157].mxu0  ;;  %6146 = vmatpush3.bf16.msra.mxu0 %v6145_v31 }
 0x22c   :  { %v6147_v42 = vpack.c.bf16 %v3823_v1, %v3822_v47  ;;  %v3640_v43 = vmax.f32 %v1624_v18, %v3345_v24 }
 0x22d   :  { %v3825_v57 = vmax.f32 %v3641_v46, 0.0 }
 0x22e   :  { %v3824_v58 = vmax.f32 %v3640_v43, 0.0  ;;  %v5612_v52 = vpop.f32.mrb[158].mxu0  ;;  %v5914_v15 = vpop.f32.mrb[158].mxu1  ;;  %6148 = vmatprep.subr.bf16.mxu0 %v6147_v42 }
 0x22f   :  { %v3643_v48 = vmax.f32 %v5612_v52, %v5914_v15  ;;  %v1634_v60 = vpop.f32.mrb[159].mxu0  ;;  %v3355_v63 = vpop.f32.mrb[159].mxu1  ;;  %6150 = vmatpush3.bf16.msra.mxu0 %v6149_v50 }
 0x230   :  { %v6151_v3 = vpack.c.bf16 %v3825_v57, %v3824_v58  ;;  %v3642_v41 = vmax.f32 %v1634_v60, %v3355_v63 }
 0x231   :  { %v3827_v26 = vmax.f32 %v3643_v48, 0.0 }
 0x232   :  { %v3826_v39 = vmax.f32 %v3642_v41, 0.0  ;;  %v5615_v0 = vpop.f32.mrb[160].mxu0  ;;  %v5917_v4 = vpop.f32.mrb[160].mxu1  ;;  %6152 = vmatprep.subr.bf16.mxu0 %v6151_v3 }
 0x233   :  { %v3645_v31 = vmax.f32 %v5615_v0, %v5917_v4  ;;  %v1644_v56 = vpop.f32.mrb[161].mxu0  ;;  %v3365_v37 = vpop.f32.mrb[161].mxu1  ;;  %6154 = vmatpush3.bf16.msra.mxu0 %v6153_v54  ;;  %v3873_v54 = vld [vmem:[%s8223_s3 + $0xa8] sm:$0x3] }
 0x234   :  { %v6155_v55 = vpack.c.bf16 %v3827_v26, %v3826_v39  ;;  %v3644_v40 = vmax.f32 %v1644_v56, %v3365_v37 }
 0x235   :  { %v3829_v23 = vmax.f32 %v3645_v31, 0.0 }
 0x236   :  { %v3828_v51 = vmax.f32 %v3644_v40, 0.0  ;;  %v5618_v6 = vpop.f32.mrb[162].mxu0  ;;  %v5920_v10 = vpop.f32.mrb[162].mxu1  ;;  %6156 = vmatprep.subr.bf16.mxu0 %v6155_v55 }
 0x237   :  { %v3647_v50 = vmax.f32 %v5618_v6, %v5920_v10  ;;  %v1654_v36 = vpop.f32.mrb[163].mxu0  ;;  %v3375_v9 = vpop.f32.mrb[163].mxu1  ;;  %6158 = vmatpush3.bf16.msra.mxu0 %v6157_v5 }
 0x238   :  { %v6160_v12 = vpack.c.bf16 %v3829_v23, %v3828_v51  ;;  %v3646_v62 = vmax.f32 %v1654_v36, %v3375_v9 }
 0x239   :  { %v3831_v17 = vmax.f32 %v3647_v50, 0.0 }
 0x23a   :  { %v3830_v34 = vmax.f32 %v3646_v62, 0.0  ;;  %v5621_v16 = vpop.f32.mrb[164].mxu0  ;;  %v5923_v53 = vpop.f32.mrb[164].mxu1  ;;  %6161 = vmatpush1.bf16.msra.mxu1 %v6160_v12  ;;  %4260 = vmatmul.mubr.f32.vlgmr.msra.gmra.mrb[192].mxu0 %v3860_v20 }
 0x23b   :  { %v3649_v29 = vmax.f32 %v5621_v16, %v5923_v53  ;;  %v1664_v21 = vpop.f32.mrb[165].mxu0  ;;  %v3385_v45 = vpop.f32.mrb[165].mxu1  ;;  %6162 = vmatprep.subr.bf16.mxu1 %v6204_v2  ;;  %4264 = vmatprep.mubr.f32.mxu0 %v3873_v54 }
 0x23c   :  { %v6163_v5 = vpack.c.bf16 %v3831_v17, %v3830_v34  ;;  %v3648_v49 = vmax.f32 %v1664_v21, %v3385_v45 }
 0x23d   :  { %v3833_v61 = vmax.f32 %v3649_v29, 0.0 }
 0x23e   :  { %v3832_v27 = vmax.f32 %v3648_v49, 0.0  ;;  %v5624_v32 = vpop.f32.mrb[166].mxu0  ;;  %v5926_v22 = vpop.f32.mrb[166].mxu1  ;;  %6164 = vmatpush1.bf16.msra.mxu1 %v6163_v5  ;;  %4265 = vmatmul.mubr.f32.gmra.mrb[194].mxu0 %v3872_v14 }
 0x23f   :  { %v3651_v30 = vmax.f32 %v5624_v32, %v5926_v22  ;;  %v1674_v7 = vpop.f32.mrb[167].mxu0  ;;  %v3395_v19 = vpop.f32.mrb[167].mxu1  ;;  %6165 = vmatprep.subr.bf16.mxu1 %v6204_v2 }
 0x240   :  { %v6166_v13 = vpack.c.bf16 %v3833_v61, %v3832_v27  ;;  %v3650_v59 = vmax.f32 %v1674_v7, %v3395_v19 }
 0x241   :  { %v3835_v8 = vmax.f32 %v3651_v30, 0.0 }
 0x242   :  { %v3834_v33 = vmax.f32 %v3650_v59, 0.0  ;;  %v5627_v35 = vpop.f32.mrb[168].mxu0  ;;  %v5929_v38 = vpop.f32.mrb[168].mxu1  ;;  %6167 = vmatpush1.bf16.msra.mxu1 %v6166_v13 }
 0x243   :  { %v3653_v25 = vmax.f32 %v5627_v35, %v5929_v38  ;;  %v1684_v11 = vpop.f32.mrb[169].mxu0  ;;  %v3405_v1 = vpop.f32.mrb[169].mxu1  ;;  %6168 = vmatprep.subr.bf16.mxu1 %v6204_v2 }
 0x244   :  { %v6169_v44 = vpack.c.bf16 %v3835_v8, %v3834_v33  ;;  %v3652_v47 = vmax.f32 %v1684_v11, %v3405_v1 }
 0x245   :  { %v3837_v28 = vmax.f32 %v3653_v25, 0.0 }
 0x246   :  { %v3836_v24 = vmax.f32 %v3652_v47, 0.0  ;;  %v5630_v46 = vpop.f32.mrb[170].mxu0  ;;  %v5932_v18 = vpop.f32.mrb[170].mxu1  ;;  %6170 = vmatpush1.bf16.msra.mxu1 %v6169_v44 }
 0x247   :  { %v3655_v42 = vmax.f32 %v5630_v46, %v5932_v18  ;;  %v1694_v43 = vpop.f32.mrb[171].mxu0  ;;  %v3415_v57 = vpop.f32.mrb[171].mxu1  ;;  %6171 = vmatprep.subr.bf16.mxu1 %v6204_v2 }
 0x248   :  { %v6172_v58 = vpack.c.bf16 %v3837_v28, %v3836_v24  ;;  %v3654_v52 = vmax.f32 %v1694_v43, %v3415_v57 }
 0x249   :  { %v3839_v15 = vmax.f32 %v3655_v42, 0.0 }
 0x24a   :  { %v3838_v48 = vmax.f32 %v3654_v52, 0.0  ;;  %v5633_v60 = vpop.f32.mrb[172].mxu0  ;;  %v5935_v63 = vpop.f32.mrb[172].mxu1  ;;  %6173 = vmatpush1.bf16.msra.mxu1 %v6172_v58 }
 0x24b   :  { %v3657_v3 = vmax.f32 %v5633_v60, %v5935_v63  ;;  %v1704_v41 = vpop.f32.mrb[173].mxu0  ;;  %v3425_v26 = vpop.f32.mrb[173].mxu1  ;;  %6174 = vmatprep.subr.bf16.mxu1 %v6204_v2 }
 0x24c   :  { %v6175_v39 = vpack.c.bf16 %v3839_v15, %v3838_v48  ;;  %v3656_v0 = vmax.f32 %v1704_v41, %v3425_v26  ;;  %v3862_v15 = vld [vmem:[%s8223_s3 + $0x50] sm:$0xff]  ;;  %v3875_v48 = vld [vmem:[%s8223_s3 + $0xb8] sm:$0x3] }
 0x24d   :  { %v3841_v4 = vmax.f32 %v3657_v3, 0.0 }
 0x24e   :  { %v3840_v31 = vmax.f32 %v3656_v0, 0.0  ;;  %v5636_v56 = vpop.f32.mrb[174].mxu0  ;;  %v5938_v37 = vpop.f32.mrb[174].mxu1  ;;  %6176 = vmatpush1.bf16.msra.mxu1 %v6175_v39 }
 0x24f   :  { %v3659_v55 = vmax.f32 %v5636_v56, %v5938_v37  ;;  %v1714_v40 = vpop.f32.mrb[175].mxu0  ;;  %v3435_v23 = vpop.f32.mrb[175].mxu1  ;;  %6177 = vmatprep.subr.bf16.mxu1 %v6204_v2 }
 0x250   :  { %v6178_v51 = vpack.c.bf16 %v3841_v4, %v3840_v31  ;;  %v3658_v6 = vmax.f32 %v1714_v40, %v3435_v23 }
 0x251   :  { %v3843_v10 = vmax.f32 %v3659_v55, 0.0 }
 0x252   :  { %v3842_v50 = vmax.f32 %v3658_v6, 0.0  ;;  %v5639_v36 = vpop.f32.mrb[176].mxu0  ;;  %v5941_v9 = vpop.f32.mrb[176].mxu1  ;;  %6179 = vmatpush1.bf16.msra.mxu1 %v6178_v51 }
 0x253   :  { %v3661_v20 = vmax.f32 %v5639_v36, %v5941_v9  ;;  %v1724_v12 = vpop.f32.mrb[177].mxu0  ;;  %v3445_v62 = vpop.f32.mrb[177].mxu1  ;;  %6180 = vmatprep.subr.bf16.mxu1 %v6204_v2 }
 0x254   :  { %v6181_v54 = vpack.c.bf16 %v3843_v10, %v3842_v50  ;;  %v3660_v17 = vmax.f32 %v1724_v12, %v3445_v62 }
 0x255   :  { %v3845_v34 = vmax.f32 %v3661_v20, 0.0 }
 0x256   :  { %v3844_v16 = vmax.f32 %v3660_v17, 0.0  ;;  %v5642_v53 = vpop.f32.mrb[178].mxu0  ;;  %v5944_v29 = vpop.f32.mrb[178].mxu1  ;;  %6182 = vmatpush1.bf16.msra.mxu1 %v6181_v54 }
 0x257   :  { %v3663_v21 = vmax.f32 %v5642_v53, %v5944_v29  ;;  %v1734_v45 = vpop.f32.mrb[179].mxu0  ;;  %v3455_v14 = vpop.f32.mrb[179].mxu1  ;;  %6183 = vmatprep.subr.bf16.mxu1 %v6204_v2 }
 0x258   :  { %v6184_v5 = vpack.c.bf16 %v3845_v34, %v3844_v16  ;;  %v3662_v49 = vmax.f32 %v1734_v45, %v3455_v14 }
 0x259   :  { %v3847_v61 = vmax.f32 %v3663_v21, 0.0 }
 0x25a   :  { %v3846_v27 = vmax.f32 %v3662_v49, 0.0  ;;  %v5645_v32 = vpop.f32.mrb[180].mxu0  ;;  %v5947_v22 = vpop.f32.mrb[180].mxu1  ;;  %6185 = vmatpush1.bf16.msra.mxu1 %v6184_v5 }
 0x25b   :  { %v3665_v30 = vmax.f32 %v5645_v32, %v5947_v22  ;;  %v1744_v7 = vpop.f32.mrb[181].mxu0  ;;  %v3465_v19 = vpop.f32.mrb[181].mxu1  ;;  %6186 = vmatprep.subr.bf16.mxu1 %v6204_v2 }
 0x25c   :  { %v6187_v13 = vpack.c.bf16 %v3847_v61, %v3846_v27  ;;  %v3664_v59 = vmax.f32 %v1744_v7, %v3465_v19 }
 0x25d   :  { %v3849_v8 = vmax.f32 %v3665_v30, 0.0 }
 0x25e   :  { %v3848_v33 = vmax.f32 %v3664_v59, 0.0  ;;  %v5648_v35 = vpop.f32.mrb[182].mxu0  ;;  %v5950_v38 = vpop.f32.mrb[182].mxu1  ;;  %6188 = vmatpush1.bf16.msra.mxu1 %v6187_v13 }
 0x25f   :  { %v3667_v25 = vmax.f32 %v5648_v35, %v5950_v38  ;;  %v1754_v11 = vpop.f32.mrb[183].mxu0  ;;  %v3475_v1 = vpop.f32.mrb[183].mxu1  ;;  %6189 = vmatprep.subr.bf16.mxu1 %v6204_v2 }
 0x260   :  { %v6190_v44 = vpack.c.bf16 %v3849_v8, %v3848_v33  ;;  %v3666_v47 = vmax.f32 %v1754_v11, %v3475_v1 }
 0x261   :  { %v3851_v28 = vmax.f32 %v3667_v25, 0.0 }
 0x262   :  { %v3850_v24 = vmax.f32 %v3666_v47, 0.0  ;;  %6191 = vmatpush1.bf16.msra.mxu1 %v6190_v44  ;;  %v5189_v46 = vpop.f32.mrb[184].mxu0  ;;  %v5227_v18 = vpop.f32.mrb[184].mxu1  ;;  %v4376_v44 = vlaneseq }
 0x263   :  { %6192 = vmatprep.subr.bf16.mxu1 %v6204_v2  ;;  %v5190_v42 = vpop.f32.mrb[185].mxu0  ;;  %v5228_v43 = vpop.f32.mrb[185].mxu1  ;;  %v3874_v2 = vld [vmem:[%s8223_s3 + $0xb0] sm:$0x3] }
 0x264   :  { %v6193_v57 = vpack.c.bf16 %v3851_v28, %v3850_v24  ;;  %v5191_v58 = vadd.f32 %v5190_v42, %v5189_v46  ;;  %v5229_v52 = vadd.f32 %v5228_v43, %v5227_v18  ;;  %v3886_v60 = vpop.permute.xlu0 %3885  ;;  %v4357_v7 = vpop.permute.xlu1 %4356  ;;  %v4377_v24 = vshrl.u32 %v4376_v44, 7 }
 0x266   :  { %6194 = vmatpush1.bf16.msra.mxu1 %v6193_v57  ;;  %v5192_v63 = vpop.f32.mrb[186].mxu0  ;;  %v5230_v26 = vpop.f32.mrb[186].mxu1  ;;  %v4378_v18 = vsub.s32 0, %v4377_v24 }
 0x267   :  { %v5193_v3 = vpop.f32.mrb[187].mxu0  ;;  %v5231_v39 = vpop.f32.mrb[187].mxu1 }
 0x268   :  { %v5194_v41 = vadd.f32 %v5193_v3, %v5192_v63  ;;  %v5232_v4 = vadd.f32 %v5231_v39, %v5230_v26  ;;  %v3881_v31 = vpop.permute.xlu0 %3880  ;;  %v4352_v35 = vpop.permute.xlu1 %4351 }
 0x269   :  { %4335 = vmatmul.mubr.f32.vlgmr.msra.gmra.mrb[192].mxu1 %v3862_v15  ;;  %v3962_v56 = vadd.f32 %v5191_v58, %v3881_v31 }
 0x26a   :  { %4761 = vmatprep.mubr.msk.f32.mxu1 %vm3888_vm1, %v3875_v48  ;;  %v3967_v0 = vadd.f32 %v5194_v41, %v3886_v60 }
 0x26b   :  { %v4037_v55 = vadd.f32 %v5229_v52, %v3962_v56 }
 0x26c   :  { %v4042_v37 = vadd.f32 %v5232_v4, %v3967_v0  ;;  %v4374_v43 = vpop.permute.xlu0 %4373 }
 0x26d   :  { %4340 = vmatmul.mubr.f32.gmra.mrb[194].mxu1 %v3874_v2  ;;  %v4379_v52 = vrot.slane %v4374_v43, %v4378_v18 }
 0x28c   :  { %v5265_v40 = vpop.f32.mrb[188].mxu0 }
 0x28d   :  { %v5266_v23 = vpop.f32.mrb[189].mxu0 }
 0x28e   :  { %v5267_v51 = vadd.f32 %v5266_v23, %v5265_v40 }
 0x290   :  { %v5268_v6 = vpop.f32.mrb[190].mxu0  ;;  %v4112_v10 = vadd.f32 %v5267_v51, %v4037_v55 }
 0x291   :  { %v5269_v50 = vpop.f32.mrb[191].mxu0 }
 0x292   :  { %v5270_v36 = vadd.f32 %v5269_v50, %v5268_v6 }
 0x294   :  { %v4117_v9 = vadd.f32 %v5270_v36, %v4042_v37 }
 0x2cd   :  { %v5303_v20 = vpop.f32.mrb[188].mxu1 }
 0x2ce   :  { %v5304_v12 = vpop.f32.mrb[189].mxu1 }
 0x2cf   :  { %v5305_v62 = vadd.f32 %v5304_v12, %v5303_v20 }
 0x2d1   :  { %v4187_v54 = vadd.f32 %v5305_v62, %v4112_v10  ;;  %v5306_v17 = vpop.f32.mrb[190].mxu1 }
 0x2d2   :  { %v5307_v34 = vpop.f32.mrb[191].mxu1 }
 0x2d3   :  { %v5308_v16 = vadd.f32 %v5307_v34, %v5306_v17 }
 0x2d5   :  { %v4192_v53 = vadd.f32 %v5308_v16, %v4117_v9 }
 0x30d   :  { %v5341_v29 = vpop.f32.mrb[192].mxu0 }
 0x30e   :  { %v5342_v21 = vpop.f32.mrb[193].mxu0 }
 0x30f   :  { %v5343_v45 = vadd.f32 %v5342_v21, %v5341_v29 }
 0x311   :  { %v5344_v14 = vpop.f32.mrb[194].mxu0  ;;  %v4262_v5 = vadd.f32 %v5343_v45, %v4187_v54 }
 0x312   :  { %v5345_v49 = vpop.f32.mrb[195].mxu0 }
 0x313   :  { %v5346_v61 = vadd.f32 %v5345_v49, %v5344_v14 }
 0x315   :  { %v4267_v27 = vadd.f32 %v5346_v61, %v4192_v53 }
 0x33c   :  { %v4336_v32 = vpop.f32.mrb[192].mxu1 }
 0x33d   :  { %v4337_v22 = vadd.f32 %v4336_v32, %v4262_v5  ;;  %v4338_v30 = vpop.f32.mrb[193].mxu1 }
 0x33f   :  { %v4345_v8 = vmax.f32 %v4337_v22, 0.0 }
 0x340   :  { %v4341_v19 = vpop.f32.mrb[194].mxu1 }
 0x341   :  { %v4342_v13 = vadd.f32 %v4341_v19, %v4267_v27  ;;  %v4343_v59 = vpop.f32.mrb[195].mxu1  ;;  %v4359_v25 = vmul.f32 %v4352_v35, %v4345_v8 }
 0x343   :  { %v4346_v33 = vmax.f32 %v4342_v13, 0.0 }
 0x345   :  { %v4360_v38 = vmul.f32 %v4357_v7, %v4346_v33 }
 0x347   :  { %v4362_v11 = vsel %vm4361_vm2, %v4360_v38, 0.0 }
 0x348   :  { %v4363_v1 = vadd.f32 %v4362_v11, %v4359_v25 }
 0x34a   :  { %v4364_v47 = vrot.slane %v4363_v1, 4 }
 0x34c   :  { %v4365_v28 = vadd.f32 %v4364_v47, %v4363_v1 }
 0x34e   :  { %v4366_v46 = vrot.slane %v4365_v28, 2 }
 0x350   :  { %v4367_v42 = vadd.f32 %v4366_v46, %v4365_v28 }
 0x352   :  { %v4368_v57 = vrot.slane %v4367_v42, 1 }
 0x354   :  { %v4369_v58 = vadd.f32 %v4368_v57, %v4367_v42 }
 0x356   :  { %v4380_v15 = vadd.f32 %v4379_v52, %v4369_v58 }
 0x358   :  { %v4762_v48 = vmul.f32 -1.442695, %v4380_v15 }
 0x35a   :  { %6199 = vpow2.f32 %v4762_v48 }
 0x364   :  { %v6200_v2 = vpop.eup %6199 }
 0x365   :  { %v4384_v60 = vadd.f32 1.0, %v6200_v2 }
 0x367   :  { %6201 = vrcp.f32 %v4384_v60 }
 0x371   :  { %v6202_v63 = vpop.eup %6201 }
 0x372   :  { %4387 = vst [vmem:[%s8227_s7] sm:$0x1] %v6202_v63 }

</bundles_post_ra>
